<compile_context>
chip_gen: v6e
topology: v6e:2x2x1
jax: 0.10.0
libtpu: 0.0.40
codegen_flags: <defaults>
</compile_context>

<pallas_src>
import functools

import numpy as np

import jax
import jax.numpy as jnp
from jax.experimental import pallas as pl
from jax.experimental.pallas import tpu as pltpu


# --------------------------------- helpers -----------------------------------

_DEF_BLOCK_ROWS = 256  # sweepable; largest row tile that comfortably double-buffers


def _round_up(a, b):
    return ((a + b - 1) // b) * b


def _row_tiling(rows, max_block_rows):
    block_rows = min(max_block_rows, _round_up(rows, 8))
    padded = _round_up(rows, block_rows)
    return block_rows, padded


def _gelu_tanh(x):
    # TODO(synk): nn.GELU() defaults to the exact erf form; the tanh
    # approximation (EUP-friendly) is used here and in the reference below.
    c = 0.7978845608028654  # sqrt(2/pi)
    return 0.5 * x * (1.0 + jnp.tanh(c * (x + 0.044715 * x * x * x)))


def _create_mask(window_size, displacement, upper_lower, left_right):
    """NumPy port of create_mask() from the PyTorch code."""
    mask = np.zeros((window_size ** 2, window_size ** 2), dtype=np.float32)
    if upper_lower:
        mask[-displacement * window_size:, :-displacement * window_size] = float("-inf")
        mask[:-displacement * window_size, -displacement * window_size:] = float("-inf")
    if left_right:
        mask = mask.reshape(window_size, window_size, window_size, window_size)
        mask[:, -displacement:, :, :-displacement] = float("-inf")
        mask[:, :-displacement, :, -displacement:] = float("-inf")
        mask = mask.reshape(window_size ** 2, window_size ** 2)
    return mask


# ------------------------------ Pallas kernels --------------------------------

def _ln_matmul_kernel(x_ref, g_ref, b_ref, w_ref, bias_ref, o_ref, *, eps, compute_dtype):
    """y = LayerNorm(x) @ W + bias   (LN stats and accumulation in f32)."""
    x = x_ref[...].astype(jnp.float32)
    mean = jnp.mean(x, axis=-1, keepdims=True)
    cen = x - mean
    var = jnp.mean(cen * cen, axis=-1, keepdims=True)
    normed = cen * jax.lax.rsqrt(var + eps)
    normed = normed * g_ref[...].astype(jnp.float32) + b_ref[...].astype(jnp.float32)
    acc = jnp.dot(normed.astype(compute_dtype), w_ref[...].astype(compute_dtype),
                  preferred_element_type=jnp.float32)
    o_ref[...] = (acc + bias_ref[...].astype(jnp.float32)).astype(o_ref.dtype)


def _linear_residual_kernel(x_ref, w_ref, bias_ref, r_ref, o_ref, *, compute_dtype):
    """y = x @ W + bias + residual."""
    acc = jnp.dot(x_ref[...].astype(compute_dtype), w_ref[...].astype(compute_dtype),
                  preferred_element_type=jnp.float32)
    acc = acc + bias_ref[...].astype(jnp.float32) + r_ref[...].astype(jnp.float32)
    o_ref[...] = acc.astype(o_ref.dtype)


def _ln_mlp_residual_kernel(x_ref, g_ref, b_ref, w1_ref, b1_ref, w2_ref, b2_ref,
                            o_ref, *, eps, compute_dtype):
    """y = x + (GELU(LayerNorm(x) @ W1 + b1) @ W2 + b2)   — whole MLP block fused."""
    x = x_ref[...].astype(jnp.float32)
    mean = jnp.mean(x, axis=-1, keepdims=True)
    cen = x - mean
    var = jnp.mean(cen * cen, axis=-1, keepdims=True)
    normed = cen * jax.lax.rsqrt(var + eps)
    normed = normed * g_ref[...].astype(jnp.float32) + b_ref[...].astype(jnp.float32)
    h = jnp.dot(normed.astype(compute_dtype), w1_ref[...].astype(compute_dtype),
                preferred_element_type=jnp.float32)
    h = _gelu_tanh(h + b1_ref[...].astype(jnp.float32))
    y = jnp.dot(h.astype(compute_dtype), w2_ref[...].astype(compute_dtype),
                preferred_element_type=jnp.float32)
    y = y + b2_ref[...].astype(jnp.float32)
    o_ref[...] = (x + y).astype(o_ref.dtype)


def _window_attention_kernel(q_ref, k_ref, v_ref, bias_ref, o_ref, *, scale):
    """softmax(q k^T * scale + bias) v for all windows of one (batch, head)."""
    q = q_ref[0].astype(jnp.float32)   # (num_windows, ws2, head_dim)
    k = k_ref[0].astype(jnp.float32)
    v = v_ref[0].astype(jnp.float32)
    dots = jnp.einsum("wid,wjd->wij", q, k, preferred_element_type=jnp.float32) * scale
    dots = dots + bias_ref[...].astype(jnp.float32)
    m = jnp.max(dots, axis=-1, keepdims=True)
    p = jnp.exp(dots - m)
    attn = p / jnp.sum(p, axis=-1, keepdims=True)
    out = jnp.einsum("wij,wjd->wid", attn, v, preferred_element_type=jnp.float32)
    o_ref[0] = out.astype(o_ref.dtype)


# ------------------------------ kernel wrappers --------------------------------

def ln_matmul_pallas(x2d, gamma, beta, w, bias=None, *, eps=1e-5,
                     max_block_rows=_DEF_BLOCK_ROWS, compute_dtype=jnp.float32):
    rows, d = x2d.shape
    d_out = w.shape[1]
    block_rows, padded = _row_tiling(rows, max_block_rows)
    if padded != rows:
        x2d = jnp.pad(x2d, ((0, padded - rows), (0, 0)))
    bias2 = jnp.zeros((1, d_out), x2d.dtype) if bias is None else bias.reshape(1, d_out)
    out = pl.pallas_call(
        functools.partial(_ln_matmul_kernel, eps=eps, compute_dtype=compute_dtype),
        out_shape=jax.ShapeDtypeStruct((padded, d_out), x2d.dtype),
        grid_spec=pltpu.PrefetchScalarGridSpec(
            num_scalar_prefetch=0,
            grid=(padded // block_rows,),
            in_specs=[
                pl.BlockSpec((block_rows, d), lambda i: (i, 0)),
                pl.BlockSpec((1, d), lambda i: (0, 0)),
                pl.BlockSpec((1, d), lambda i: (0, 0)),
                pl.BlockSpec((d, d_out), lambda i: (0, 0)),
                pl.BlockSpec((1, d_out), lambda i: (0, 0)),
            ],
            out_specs=pl.BlockSpec((block_rows, d_out), lambda i: (i, 0)),
        ),
        compiler_params=pltpu.CompilerParams(dimension_semantics=("parallel",)),
    )(x2d, gamma.reshape(1, d), beta.reshape(1, d), w, bias2)
    return out[:rows]


def linear_residual_pallas(x2d, w, bias, res2d, *, max_block_rows=_DEF_BLOCK_ROWS,
                           compute_dtype=jnp.float32):
    rows, d_in = x2d.shape
    d_out = w.shape[1]
    block_rows, padded = _row_tiling(rows, max_block_rows)
    if padded != rows:
        pad = ((0, padded - rows), (0, 0))
        x2d = jnp.pad(x2d, pad)
        res2d = jnp.pad(res2d, pad)
    out = pl.pallas_call(
        functools.partial(_linear_residual_kernel, compute_dtype=compute_dtype),
        out_shape=jax.ShapeDtypeStruct((padded, d_out), x2d.dtype),
        grid_spec=pltpu.PrefetchScalarGridSpec(
            num_scalar_prefetch=0,
            grid=(padded // block_rows,),
            in_specs=[
                pl.BlockSpec((block_rows, d_in), lambda i: (i, 0)),
                pl.BlockSpec((d_in, d_out), lambda i: (0, 0)),
                pl.BlockSpec((1, d_out), lambda i: (0, 0)),
                pl.BlockSpec((block_rows, d_out), lambda i: (i, 0)),
            ],
            out_specs=pl.BlockSpec((block_rows, d_out), lambda i: (i, 0)),
        ),
        compiler_params=pltpu.CompilerParams(dimension_semantics=("parallel",)),
    )(x2d, w, bias.reshape(1, d_out), res2d)
    return out[:rows]


def ln_mlp_residual_pallas(x2d, gamma, beta, w1, b1, w2, b2, *, eps=1e-5,
                           max_block_rows=_DEF_BLOCK_ROWS, compute_dtype=jnp.float32):
    rows, d = x2d.shape
    hidden = w1.shape[1]
    block_rows, padded = _row_tiling(rows, max_block_rows)
    if padded != rows:
        x2d = jnp.pad(x2d, ((0, padded - rows), (0, 0)))
    out = pl.pallas_call(
        functools.partial(_ln_mlp_residual_kernel, eps=eps, compute_dtype=compute_dtype),
        out_shape=jax.ShapeDtypeStruct((padded, d), x2d.dtype),
        grid_spec=pltpu.PrefetchScalarGridSpec(
            num_scalar_prefetch=0,
            grid=(padded // block_rows,),
            in_specs=[
                pl.BlockSpec((block_rows, d), lambda i: (i, 0)),
                pl.BlockSpec((1, d), lambda i: (0, 0)),
                pl.BlockSpec((1, d), lambda i: (0, 0)),
                pl.BlockSpec((d, hidden), lambda i: (0, 0)),
                pl.BlockSpec((1, hidden), lambda i: (0, 0)),
                pl.BlockSpec((hidden, d), lambda i: (0, 0)),
                pl.BlockSpec((1, d), lambda i: (0, 0)),
            ],
            out_specs=pl.BlockSpec((block_rows, d), lambda i: (i, 0)),
        ),
        compiler_params=pltpu.CompilerParams(dimension_semantics=("parallel",)),
    )(x2d, gamma.reshape(1, d), beta.reshape(1, d), w1, b1.reshape(1, hidden),
      w2, b2.reshape(1, d))
    return out[:rows]


def window_attention_pallas(q, k, v, bias, *, scale):
    bh, nw, ws2, hd = q.shape
    return pl.pallas_call(
        functools.partial(_window_attention_kernel, scale=scale),
        out_shape=jax.ShapeDtypeStruct((bh, nw, ws2, hd), q.dtype),
        grid_spec=pltpu.PrefetchScalarGridSpec(
            num_scalar_prefetch=0,
            grid=(bh,),
            in_specs=[
                pl.BlockSpec((1, nw, ws2, hd), lambda i: (i, 0, 0, 0)),
                pl.BlockSpec((1, nw, ws2, hd), lambda i: (i, 0, 0, 0)),
                pl.BlockSpec((1, nw, ws2, hd), lambda i: (i, 0, 0, 0)),
                pl.BlockSpec((nw, ws2, ws2), lambda i: (0, 0, 0)),
            ],
            out_specs=pl.BlockSpec((1, nw, ws2, hd), lambda i: (i, 0, 0, 0)),
        ),
        compiler_params=pltpu.CompilerParams(dimension_semantics=("parallel",)),
    )(q, k, v, bias)


# --------------------------------- SwinBlock -----------------------------------

class SwinBlockPallas:
    """JAX/Pallas equivalent of the PyTorch SwinBlock forward pass."""

    def __init__(self, key, *, dim, heads, head_dim, mlp_dim, shifted, window_size,
                 relative_pos_embedding, cross_attn=False, eps=1e-5,
                 compute_dtype=jnp.float32):
        # TODO(synk): the cross_attn=True branch (separate to_q / to_kv on a second
        # stream) is not implemented; this block covers the cross_attn=False path.
        assert not cross_attn
        self.dim, self.heads, self.head_dim = dim, heads, head_dim
        self.mlp_dim = mlp_dim
        self.shifted = shifted
        self.window_size = window_size
        self.relative_pos_embedding = relative_pos_embedding
        self.eps = eps
        self.compute_dtype = compute_dtype
        self.scale = head_dim ** (-0.5)
        inner = heads * head_dim
        ws = window_size

        ks = jax.random.split(key, 8)
        f32 = jnp.float32
        # nn.LayerNorm default init: weight=1, bias=0.
        self.ln1_g = jnp.ones((dim,), f32)
        self.ln1_b = jnp.zeros((dim,), f32)
        self.ln2_g = jnp.ones((dim,), f32)
        self.ln2_b = jnp.zeros((dim,), f32)
        # Attention weights (to_qkv has no bias, to_out has bias).
        self.w_qkv = jax.random.normal(ks[0], (dim, inner * 3), f32) * 0.02
        self.w_out = jax.random.normal(ks[1], (inner, dim), f32) * 0.02
        self.b_out = jax.random.normal(ks[2], (dim,), f32) * 0.02
        # Positional embedding (torch.randn init in the spec).
        if relative_pos_embedding:
            self.pos_embedding = jax.random.normal(ks[3], (2 * ws - 1, 2 * ws - 1), f32)
            coords = np.array([[x, y] for x in range(ws) for y in range(ws)])
            self.relative_indices = (coords[None, :, :] - coords[:, None, :]) + ws - 1
        else:
            self.pos_embedding = jax.random.normal(ks[3], (ws * ws, ws * ws), f32)
            self.relative_indices = None
        # MLP weights.
        self.w1 = jax.random.normal(ks[4], (dim, mlp_dim), f32) * 0.02
        self.b1 = jax.random.normal(ks[5], (mlp_dim,), f32) * 0.02
        self.w2 = jax.random.normal(ks[6], (mlp_dim, dim), f32) * 0.02
        self.b2 = jax.random.normal(ks[7], (dim,), f32) * 0.02
        # Shift masks (same construction as create_mask in the PyTorch code).
        if shifted:
            disp = ws // 2
            self.upper_lower_mask = jnp.asarray(
                _create_mask(ws, disp, upper_lower=True, left_right=False))
            self.left_right_mask = jnp.asarray(
                _create_mask(ws, disp, upper_lower=False, left_right=True))

    # ---- layout helpers (pure XLA reshapes/transposes) ----
    def _to_windows(self, t, B, nw_h, nw_w):
        ws, h, hd = self.window_size, self.heads, self.head_dim
        t = t.reshape(B, nw_h, ws, nw_w, ws, h, hd)
        t = t.transpose(0, 5, 1, 3, 2, 4, 6)
        return t.reshape(B * h, nw_h * nw_w, ws * ws, hd)

    def _from_windows(self, t, B, nw_h, nw_w):
        ws, h, hd = self.window_size, self.heads, self.head_dim
        t = t.reshape(B, h, nw_h, nw_w, ws, ws, hd)
        t = t.transpose(0, 2, 4, 3, 5, 1, 6)
        return t.reshape(B, nw_h * ws, nw_w * ws, h * hd)

    def _window_bias(self, nw_h, nw_w):
        """Per-window additive bias = rel-pos bias (+ shift masks for edge windows)."""
        ws2 = self.window_size ** 2
        if self.relative_pos_embedding:
            ri = self.relative_indices
            pos_bias = self.pos_embedding[ri[..., 0], ri[..., 1]]
        else:
            pos_bias = self.pos_embedding
        nw = nw_h * nw_w
        bias = jnp.broadcast_to(pos_bias, (nw, ws2, ws2))
        if self.shifted:
            widx = np.arange(nw)
            ul_sel = jnp.asarray((widx // nw_w) == (nw_h - 1))[:, None, None]
            lr_sel = jnp.asarray((widx % nw_w) == (nw_w - 1))[:, None, None]
            bias = bias + jnp.where(ul_sel, self.upper_lower_mask, 0.0)
            bias = bias + jnp.where(lr_sel, self.left_right_mask, 0.0)
        return bias.astype(jnp.float32)

    def __call__(self, x):
        B, n_h, n_w, d = x.shape
        ws = self.window_size
        assert d == self.dim and n_h % ws == 0 and n_w % ws == 0
        heads, hd = self.heads, self.head_dim
        inner = heads * hd
        nw_h, nw_w = n_h // ws, n_w // ws
        rows = B * n_h * n_w
        disp = ws // 2

        # -------- Residual(PreNorm(WindowAttention)) --------
        # Cyclic shift commutes with the per-token LayerNorm, so shift the raw
        # input once and fuse LN into the QKV projection.
        x_s = jnp.roll(x, (-disp, -disp), axis=(1, 2)) if self.shifted else x
        x_s2d = x_s.reshape(rows, d)

        qkv2d = ln_matmul_pallas(x_s2d, self.ln1_g, self.ln1_b, self.w_qkv,
                                 bias=None, eps=self.eps,
                                 compute_dtype=self.compute_dtype)
        qkv = qkv2d.reshape(B, n_h, n_w, 3 * inner)
        q, k, v = jnp.split(qkv, 3, axis=-1)
        qw = self._to_windows(q, B, nw_h, nw_w)
        kw = self._to_windows(k, B, nw_h, nw_w)
        vw = self._to_windows(v, B, nw_h, nw_w)

        bias_w = self._window_bias(nw_h, nw_w)
        attn_w = window_attention_pallas(qw, kw, vw, bias_w, scale=self.scale)
        attn_sp = self._from_windows(attn_w, B, nw_h, nw_w)   # (B, n_h, n_w, inner)

        # to_out fused with the residual add; in the shifted frame the residual
        # is simply the shifted input (roll is a permutation, so
        # roll_back(out + roll(x)) == roll_back(out) + x).
        y2d = linear_residual_pallas(attn_sp.reshape(rows, inner), self.w_out,
                                     self.b_out, x_s2d,
                                     compute_dtype=self.compute_dtype)
        y = y2d.reshape(B, n_h, n_w, d)
        if self.shifted:
            y = jnp.roll(y, (disp, disp), axis=(1, 2))

        # -------- Residual(PreNorm(FeedForward)) — fully fused --------
        out2d = ln_mlp_residual_pallas(y.reshape(rows, d), self.ln2_g, self.ln2_b,
                                       self.w1, self.b1, self.w2, self.b2,
                                       eps=self.eps, compute_dtype=self.compute_dtype)
        return out2d.reshape(B, n_h, n_w, d)


# ------------------------------ pure-JAX reference ------------------------------

def swin_block_reference(blk, x):
    """Pure-JAX re-implementation of the PyTorch SwinBlock forward (same params)."""
    HIGH = jax.lax.Precision.HIGHEST

    def layernorm(z, g, b):
        m = jnp.mean(z, axis=-1, keepdims=True)
        v = jnp.mean((z - m) ** 2, axis=-1, keepdims=True)
        return (z - m) * jax.lax.rsqrt(v + blk.eps) * g + b

    B, n_h, n_w, _ = x.shape
    ws, h, hd = blk.window_size, blk.heads, blk.head_dim
    inner = h * hd
    nw_h, nw_w = n_h // ws, n_w // ws
    disp = ws // 2

    # Residual(PreNorm(WindowAttention))
    z = layernorm(x, blk.ln1_g, blk.ln1_b)
    if blk.shifted:
        z = jnp.roll(z, (-disp, -disp), axis=(1, 2))
    qkv = jnp.matmul(z, blk.w_qkv, precision=HIGH)
    q, k, v = jnp.split(qkv, 3, axis=-1)

    def to_w(t):
        t = t.reshape(B, nw_h, ws, nw_w, ws, h, hd)
        return t.transpose(0, 5, 1, 3, 2, 4, 6).reshape(B, h, nw_h * nw_w, ws * ws, hd)

    q, k, v = map(to_w, (q, k, v))
    dots = jnp.einsum("bhwid,bhwjd->bhwij", q, k, precision=HIGH) * blk.scale
    if blk.relative_pos_embedding:
        ri = blk.relative_indices
        dots = dots + blk.pos_embedding[ri[..., 0], ri[..., 1]]
    else:
        dots = dots + blk.pos_embedding
    if blk.shifted:
        dots = dots.at[:, :, -nw_w:].add(blk.upper_lower_mask)
        dots = dots.at[:, :, nw_w - 1::nw_w].add(blk.left_right_mask)
    attn = jax.nn.softmax(dots, axis=-1)
    out = jnp.einsum("bhwij,bhwjd->bhwid", attn, v, precision=HIGH)
    out = out.reshape(B, h, nw_h, nw_w, ws, ws, hd).transpose(0, 2, 4, 3, 5, 1, 6)
    out = out.reshape(B, n_h, n_w, inner)
    out = jnp.matmul(out, blk.w_out, precision=HIGH) + blk.b_out
    if blk.shifted:
        out = jnp.roll(out, (disp, disp), axis=(1, 2))
    x = x + out

    # Residual(PreNorm(FeedForward))
    z = layernorm(x, blk.ln2_g, blk.ln2_b)
    hidden = _gelu_tanh(jnp.matmul(z, blk.w1, precision=HIGH) + blk.b1)
    x = x + jnp.matmul(hidden, blk.w2, precision=HIGH) + blk.b2
    return x


# ------------------------------------ main ---------------------------------------

if __name__ == "__main__":
    key = jax.random.PRNGKey(0)
    k_param, k_x = jax.random.split(key)

    # Small but lane-dense shapes: dim / qkv / mlp widths are multiples of 128
    # so every kernel output is lane-dense (per the perf review).
    B, N_H, N_W = 2, 8, 8
    DIM, HEADS, HEAD_DIM, MLP_DIM, WS = 128, 4, 32, 256, 4

    blk = SwinBlockPallas(k_param, dim=DIM, heads=HEADS, head_dim=HEAD_DIM,
                          mlp_dim=MLP_DIM, shifted=True, window_size=WS,
                          relative_pos_embedding=True, cross_attn=False)

    x = jax.random.normal(k_x, (B, N_H, N_W, DIM), jnp.float32)

    y = jax.jit(blk.__call__)(x)
    y = jax.block_until_ready(y)

    y_ref = swin_block_reference(blk, x)
    assert y.shape == (B, N_H, N_W, DIM)
    assert bool(jnp.all(jnp.isfinite(y)))
    max_err = float(jnp.max(jnp.abs(y - y_ref)))
    assert jnp.allclose(y, y_ref, atol=5e-3, rtol=5e-3), max_err

    print("KERNEL_OK")
</pallas_src>

<mosaic_0001>
module attributes {stable_mosaic.version = 11 : i64} {
  func.func @_ln_matmul_kernel(%arg0: i32, %arg1: memref<128x128xf32, #tpu.memory_space<vmem>>, %arg2: memref<1x128xf32, #tpu.memory_space<vmem>>, %arg3: memref<1x128xf32, #tpu.memory_space<vmem>>, %arg4: memref<128x384xf32, #tpu.memory_space<vmem>>, %arg5: memref<1x384xf32, #tpu.memory_space<vmem>>, %arg6: memref<128x384xf32, #tpu.memory_space<vmem>>) attributes {dimension_semantics = [#tpu.dimension_semantics<parallel>], iteration_bounds = array<i64: 1>, scalar_prefetch = 0 : i64, scratch_operands = 0 : i64, tpu.core_type = #tpu.core_type<tc>, window_params = [{transform_indices = @transform_0, window_bounds = array<i64: 128, 128>}, {pipeline_mode = #tpu.pipeline_mode<synchronous>, transform_indices = @transform_1, window_bounds = array<i64: 1, 128>}, {pipeline_mode = #tpu.pipeline_mode<synchronous>, transform_indices = @transform_2, window_bounds = array<i64: 1, 128>}, {pipeline_mode = #tpu.pipeline_mode<synchronous>, transform_indices = @transform_3, window_bounds = array<i64: 128, 384>}, {pipeline_mode = #tpu.pipeline_mode<synchronous>, transform_indices = @transform_4, window_bounds = array<i64: 1, 384>}, {transform_indices = @transform_5, window_bounds = array<i64: 128, 384>}]} {
    %c0 = arith.constant 0 : index
    %c0_0 = arith.constant 0 : index
    %0 = vector.load %arg1[%c0, %c0_0] : memref<128x128xf32, #tpu.memory_space<vmem>>, vector<128x128xf32>
    %cst = arith.constant dense<0.000000e+00> : vector<128xf32>
    %1 = vector.multi_reduction <add>, %0, %cst [1] : vector<128x128xf32> to vector<128xf32>
    %2 = vector.shape_cast %1 : vector<128xf32> to vector<128x1xf32>
    %cst_1 = arith.constant 1.280000e+02 : f32
    %3 = vector.broadcast %cst_1 : f32 to vector<128x1xf32>
    %4 = arith.divf %2, %3 : vector<128x1xf32>
    %5 = vector.broadcast %4 : vector<128x1xf32> to vector<128x128xf32>
    %6 = arith.subf %0, %5 : vector<128x128xf32>
    %7 = arith.mulf %6, %6 : vector<128x128xf32>
    %cst_2 = arith.constant dense<0.000000e+00> : vector<128xf32>
    %8 = vector.multi_reduction <add>, %7, %cst_2 [1] : vector<128x128xf32> to vector<128xf32>
    %9 = vector.shape_cast %8 : vector<128xf32> to vector<128x1xf32>
    %cst_3 = arith.constant 1.280000e+02 : f32
    %10 = vector.broadcast %cst_3 : f32 to vector<128x1xf32>
    %11 = arith.divf %9, %10 : vector<128x1xf32>
    %cst_4 = arith.constant 9.99999974E-6 : f32
    %12 = vector.broadcast %cst_4 : f32 to vector<128x1xf32>
    %13 = arith.addf %11, %12 : vector<128x1xf32>
    %14 = math.rsqrt %13 : vector<128x1xf32>
    %15 = vector.broadcast %14 : vector<128x1xf32> to vector<128x128xf32>
    %16 = arith.mulf %6, %15 : vector<128x128xf32>
    %c0_5 = arith.constant 0 : index
    %c0_6 = arith.constant 0 : index
    %17 = vector.load %arg2[%c0_5, %c0_6] : memref<1x128xf32, #tpu.memory_space<vmem>>, vector<1x128xf32>
    %18 = vector.broadcast %17 : vector<1x128xf32> to vector<128x128xf32>
    %19 = arith.mulf %16, %18 : vector<128x128xf32>
    %c0_7 = arith.constant 0 : index
    %c0_8 = arith.constant 0 : index
    %20 = vector.load %arg3[%c0_7, %c0_8] : memref<1x128xf32, #tpu.memory_space<vmem>>, vector<1x128xf32>
    %21 = vector.broadcast %20 : vector<1x128xf32> to vector<128x128xf32>
    %22 = arith.addf %19, %21 : vector<128x128xf32>
    %c0_9 = arith.constant 0 : index
    %c0_10 = arith.constant 0 : index
    %23 = vector.load %arg4[%c0_9, %c0_10] : memref<128x384xf32, #tpu.memory_space<vmem>>, vector<128x384xf32>
    %cst_11 = arith.constant dense<0.000000e+00> : vector<128x384xf32>
    %24 = tpu.matmul %22, %23, %cst_11 {dimension_numbers = #tpu.dot_dimension_numbers<[1], [0], [0], [1], [0, 0, 1, 1], [], []>} : vector<128x128xf32>, vector<128x384xf32>, vector<128x384xf32> -> vector<128x384xf32>
    %c0_12 = arith.constant 0 : index
    %c0_13 = arith.constant 0 : index
    %25 = vector.load %arg5[%c0_12, %c0_13] : memref<1x384xf32, #tpu.memory_space<vmem>>, vector<1x384xf32>
    %26 = vector.broadcast %25 : vector<1x384xf32> to vector<128x384xf32>
    %27 = arith.addf %24, %26 : vector<128x384xf32>
    %c0_14 = arith.constant 0 : index
    %c0_15 = arith.constant 0 : index
    %28 = vector.load %arg6[%c0_14, %c0_15] : memref<128x384xf32, #tpu.memory_space<vmem>>, vector<128x384xf32>
    tpu.vector_store %arg6[%c0_14, %c0_15], %27 {strides = array<i32>} : memref<128x384xf32, #tpu.memory_space<vmem>>, vector<128x384xf32>,
    return
  }
  func.func @transform_0(%arg0: i32) -> (i32, i32) {
    %c0_i32 = arith.constant 0 : i32
    %c0_i32_0 = arith.constant 0 : i32
    return %arg0, %c0_i32 : i32, i32
  }
  func.func @transform_1(%arg0: i32) -> (i32, i32) {
    %c0_i32 = arith.constant 0 : i32
    %c0_i32_0 = arith.constant 0 : i32
    %c0_i32_1 = arith.constant 0 : i32
    return %c0_i32, %c0_i32_0 : i32, i32
  }
  func.func @transform_2(%arg0: i32) -> (i32, i32) {
    %c0_i32 = arith.constant 0 : i32
    %c0_i32_0 = arith.constant 0 : i32
    %c0_i32_1 = arith.constant 0 : i32
    return %c0_i32, %c0_i32_0 : i32, i32
  }
  func.func @transform_3(%arg0: i32) -> (i32, i32) {
    %c0_i32 = arith.constant 0 : i32
    %c0_i32_0 = arith.constant 0 : i32
    %c0_i32_1 = arith.constant 0 : i32
    return %c0_i32, %c0_i32_0 : i32, i32
  }
  func.func @transform_4(%arg0: i32) -> (i32, i32) {
    %c0_i32 = arith.constant 0 : i32
    %c0_i32_0 = arith.constant 0 : i32
    %c0_i32_1 = arith.constant 0 : i32
    return %c0_i32, %c0_i32_0 : i32, i32
  }
  func.func @transform_5(%arg0: i32) -> (i32, i32) {
    %c0_i32 = arith.constant 0 : i32
    %c0_i32_0 = arith.constant 0 : i32
    return %arg0, %c0_i32 : i32, i32
  }
}

module attributes {stable_mosaic.version = 11 : i64} {
  func.func @_window_attention_kernel(%arg0: i32, %arg1: memref<1x4x16x32xf32, #tpu.memory_space<vmem>>, %arg2: memref<1x4x16x32xf32, #tpu.memory_space<vmem>>, %arg3: memref<1x4x16x32xf32, #tpu.memory_space<vmem>>, %arg4: memref<4x16x16xf32, #tpu.memory_space<vmem>>, %arg5: memref<1x4x16x32xf32, #tpu.memory_space<vmem>>) attributes {dimension_semantics = [#tpu.dimension_semantics<parallel>], iteration_bounds = array<i64: 8>, scalar_prefetch = 0 : i64, scratch_operands = 0 : i64, tpu.core_type = #tpu.core_type<tc>, window_params = [{transform_indices = @transform_0, window_bounds = array<i64: 1, 4, 16, 32>}, {transform_indices = @transform_1, window_bounds = array<i64: 1, 4, 16, 32>}, {transform_indices = @transform_2, window_bounds = array<i64: 1, 4, 16, 32>}, {pipeline_mode = #tpu.pipeline_mode<synchronous>, transform_indices = @transform_3, window_bounds = array<i64: 4, 16, 16>}, {transform_indices = @transform_4, window_bounds = array<i64: 1, 4, 16, 32>}]} {
    %c0 = arith.constant 0 : index
    %c0_0 = arith.constant 0 : index
    %c0_1 = arith.constant 0 : index
    %c0_2 = arith.constant 0 : index
    %0 = vector.load %arg1[%c0, %c0_0, %c0_1, %c0_2] : memref<1x4x16x32xf32, #tpu.memory_space<vmem>>, vector<1x4x16x32xf32>
    %1 = vector.shape_cast %0 : vector<1x4x16x32xf32> to vector<4x16x32xf32>
    %c0_3 = arith.constant 0 : index
    %c0_4 = arith.constant 0 : index
    %c0_5 = arith.constant 0 : index
    %c0_6 = arith.constant 0 : index
    %2 = vector.load %arg2[%c0_3, %c0_4, %c0_5, %c0_6] : memref<1x4x16x32xf32, #tpu.memory_space<vmem>>, vector<1x4x16x32xf32>
    %3 = vector.shape_cast %2 : vector<1x4x16x32xf32> to vector<4x16x32xf32>
    %c0_7 = arith.constant 0 : index
    %c0_8 = arith.constant 0 : index
    %c0_9 = arith.constant 0 : index
    %c0_10 = arith.constant 0 : index
    %4 = vector.load %arg3[%c0_7, %c0_8, %c0_9, %c0_10] : memref<1x4x16x32xf32, #tpu.memory_space<vmem>>, vector<1x4x16x32xf32>
    %5 = vector.shape_cast %4 : vector<1x4x16x32xf32> to vector<4x16x32xf32>
    "tpu.trace_start"() <{level = 10 : i32, message = "wid,wjd->wij"}> : () -> ()
    %cst = arith.constant dense<0.000000e+00> : vector<4x16x16xf32>
    %6 = tpu.matmul %1, %3, %cst {dimension_numbers = #tpu.dot_dimension_numbers<[2], [2], [1], [1], [0, 0, 0, 1, 1, 1], [0], [0]>} : vector<4x16x32xf32>, vector<4x16x32xf32>, vector<4x16x16xf32> -> vector<4x16x16xf32>
    "tpu.trace_stop"() : () -> ()
    %cst_11 = arith.constant 0.176776692 : f32
    %7 = vector.broadcast %cst_11 : f32 to vector<4x16x16xf32>
    %8 = arith.mulf %6, %7 : vector<4x16x16xf32>
    %c0_12 = arith.constant 0 : index
    %c0_13 = arith.constant 0 : index
    %c0_14 = arith.constant 0 : index
    %9 = vector.load %arg4[%c0_12, %c0_13, %c0_14] : memref<4x16x16xf32, #tpu.memory_space<vmem>>, vector<4x16x16xf32>
    %10 = arith.addf %8, %9 : vector<4x16x16xf32>
    %cst_15 = arith.constant dense<0xFF800000> : vector<4x16xf32>
    %11 = vector.multi_reduction <maximumf>, %10, %cst_15 [2] : vector<4x16x16xf32> to vector<4x16xf32>
    %12 = vector.shape_cast %11 : vector<4x16xf32> to vector<4x16x1xf32>
    %13 = vector.broadcast %12 : vector<4x16x1xf32> to vector<4x16x16xf32>
    %14 = arith.subf %10, %13 : vector<4x16x16xf32>
    %15 = math.exp %14 : vector<4x16x16xf32>
    %cst_16 = arith.constant dense<0.000000e+00> : vector<4x16xf32>
    %16 = vector.multi_reduction <add>, %15, %cst_16 [2] : vector<4x16x16xf32> to vector<4x16xf32>
    %17 = vector.shape_cast %16 : vector<4x16xf32> to vector<4x16x1xf32>
    %18 = vector.broadcast %17 : vector<4x16x1xf32> to vector<4x16x16xf32>
    %19 = arith.divf %15, %18 : vector<4x16x16xf32>
    "tpu.trace_start"() <{level = 10 : i32, message = "wij,wjd->wid"}> : () -> ()
    %cst_17 = arith.constant dense<0.000000e+00> : vector<4x16x32xf32>
    %20 = tpu.matmul %19, %5, %cst_17 {dimension_numbers = #tpu.dot_dimension_numbers<[2], [1], [1], [2], [0, 0, 0, 1, 1, 2], [0], [0]>} : vector<4x16x16xf32>, vector<4x16x32xf32>, vector<4x16x32xf32> -> vector<4x16x32xf32>
    "tpu.trace_stop"() : () -> ()
    %c0_18 = arith.constant 0 : index
    %c0_19 = arith.constant 0 : index
    %c0_20 = arith.constant 0 : index
    %c0_21 = arith.constant 0 : index
    %21 = vector.load %arg5[%c0_18, %c0_19, %c0_20, %c0_21] : memref<1x4x16x32xf32, #tpu.memory_space<vmem>>, vector<1x4x16x32xf32>
    %22 = vector.shape_cast %21 : vector<1x4x16x32xf32> to vector<4x16x32xf32>
    %23 = vector.shape_cast %20 : vector<4x16x32xf32> to vector<1x4x16x32xf32>
    tpu.vector_store %arg5[%c0_18, %c0_19, %c0_20, %c0_21], %23 {strides = array<i32>} : memref<1x4x16x32xf32, #tpu.memory_space<vmem>>, vector<1x4x16x32xf32>,
    return
  }
  func.func @transform_0(%arg0: i32) -> (i32, i32, i32, i32) {
    %c0_i32 = arith.constant 0 : i32
    %c0_i32_0 = arith.constant 0 : i32
    %c0_i32_1 = arith.constant 0 : i32
    %c0_i32_2 = arith.constant 0 : i32
    return %arg0, %c0_i32, %c0_i32_0, %c0_i32_1 : i32, i32, i32, i32
  }
  func.func @transform_1(%arg0: i32) -> (i32, i32, i32, i32) {
    %c0_i32 = arith.constant 0 : i32
    %c0_i32_0 = arith.constant 0 : i32
    %c0_i32_1 = arith.constant 0 : i32
    %c0_i32_2 = arith.constant 0 : i32
    return %arg0, %c0_i32, %c0_i32_0, %c0_i32_1 : i32, i32, i32, i32
  }
  func.func @transform_2(%arg0: i32) -> (i32, i32, i32, i32) {
    %c0_i32 = arith.constant 0 : i32
    %c0_i32_0 = arith.constant 0 : i32
    %c0_i32_1 = arith.constant 0 : i32
    %c0_i32_2 = arith.constant 0 : i32
    return %arg0, %c0_i32, %c0_i32_0, %c0_i32_1 : i32, i32, i32, i32
  }
  func.func @transform_3(%arg0: i32) -> (i32, i32, i32) {
    %c0_i32 = arith.constant 0 : i32
    %c0_i32_0 = arith.constant 0 : i32
    %c0_i32_1 = arith.constant 0 : i32
    %c0_i32_2 = arith.constant 0 : i32
    return %c0_i32, %c0_i32_0, %c0_i32_1 : i32, i32, i32
  }
  func.func @transform_4(%arg0: i32) -> (i32, i32, i32, i32) {
    %c0_i32 = arith.constant 0 : i32
    %c0_i32_0 = arith.constant 0 : i32
    %c0_i32_1 = arith.constant 0 : i32
    %c0_i32_2 = arith.constant 0 : i32
    return %arg0, %c0_i32, %c0_i32_0, %c0_i32_1 : i32, i32, i32, i32
  }
}

module attributes {stable_mosaic.version = 11 : i64} {
  func.func @_linear_residual_kernel(%arg0: i32, %arg1: memref<128x128xf32, #tpu.memory_space<vmem>>, %arg2: memref<128x128xf32, #tpu.memory_space<vmem>>, %arg3: memref<1x128xf32, #tpu.memory_space<vmem>>, %arg4: memref<128x128xf32, #tpu.memory_space<vmem>>, %arg5: memref<128x128xf32, #tpu.memory_space<vmem>>) attributes {dimension_semantics = [#tpu.dimension_semantics<parallel>], iteration_bounds = array<i64: 1>, scalar_prefetch = 0 : i64, scratch_operands = 0 : i64, tpu.core_type = #tpu.core_type<tc>, window_params = [{transform_indices = @transform_0, window_bounds = array<i64: 128, 128>}, {pipeline_mode = #tpu.pipeline_mode<synchronous>, transform_indices = @transform_1, window_bounds = array<i64: 128, 128>}, {pipeline_mode = #tpu.pipeline_mode<synchronous>, transform_indices = @transform_2, window_bounds = array<i64: 1, 128>}, {transform_indices = @transform_3, window_bounds = array<i64: 128, 128>}, {transform_indices = @transform_4, window_bounds = array<i64: 128, 128>}]} {
    %c0 = arith.constant 0 : index
    %c0_0 = arith.constant 0 : index
    %0 = vector.load %arg1[%c0, %c0_0] : memref<128x128xf32, #tpu.memory_space<vmem>>, vector<128x128xf32>
    %c0_1 = arith.constant 0 : index
    %c0_2 = arith.constant 0 : index
    %1 = vector.load %arg2[%c0_1, %c0_2] : memref<128x128xf32, #tpu.memory_space<vmem>>, vector<128x128xf32>
    %cst = arith.constant dense<0.000000e+00> : vector<128x128xf32>
    %2 = tpu.matmul %0, %1, %cst {dimension_numbers = #tpu.dot_dimension_numbers<[1], [0], [0], [1], [0, 0, 1, 1], [], []>} : vector<128x128xf32>, vector<128x128xf32>, vector<128x128xf32> -> vector<128x128xf32>
    %c0_3 = arith.constant 0 : index
    %c0_4 = arith.constant 0 : index
    %3 = vector.load %arg3[%c0_3, %c0_4] : memref<1x128xf32, #tpu.memory_space<vmem>>, vector<1x128xf32>
    %4 = vector.broadcast %3 : vector<1x128xf32> to vector<128x128xf32>
    %5 = arith.addf %2, %4 : vector<128x128xf32>
    %c0_5 = arith.constant 0 : index
    %c0_6 = arith.constant 0 : index
    %6 = vector.load %arg4[%c0_5, %c0_6] : memref<128x128xf32, #tpu.memory_space<vmem>>, vector<128x128xf32>
    %7 = arith.addf %5, %6 : vector<128x128xf32>
    %c0_7 = arith.constant 0 : index
    %c0_8 = arith.constant 0 : index
    %8 = vector.load %arg5[%c0_7, %c0_8] : memref<128x128xf32, #tpu.memory_space<vmem>>, vector<128x128xf32>
    tpu.vector_store %arg5[%c0_7, %c0_8], %7 {strides = array<i32>} : memref<128x128xf32, #tpu.memory_space<vmem>>, vector<128x128xf32>,
    return
  }
  func.func @transform_0(%arg0: i32) -> (i32, i32) {
    %c0_i32 = arith.constant 0 : i32
    %c0_i32_0 = arith.constant 0 : i32
    return %arg0, %c0_i32 : i32, i32
  }
  func.func @transform_1(%arg0: i32) -> (i32, i32) {
    %c0_i32 = arith.constant 0 : i32
    %c0_i32_0 = arith.constant 0 : i32
    %c0_i32_1 = arith.constant 0 : i32
    return %c0_i32, %c0_i32_0 : i32, i32
  }
  func.func @transform_2(%arg0: i32) -> (i32, i32) {
    %c0_i32 = arith.constant 0 : i32
    %c0_i32_0 = arith.constant 0 : i32
    %c0_i32_1 = arith.constant 0 : i32
    return %c0_i32, %c0_i32_0 : i32, i32
  }
  func.func @transform_3(%arg0: i32) -> (i32, i32) {
    %c0_i32 = arith.constant 0 : i32
    %c0_i32_0 = arith.constant 0 : i32
    return %arg0, %c0_i32 : i32, i32
  }
  func.func @transform_4(%arg0: i32) -> (i32, i32) {
    %c0_i32 = arith.constant 0 : i32
    %c0_i32_0 = arith.constant 0 : i32
    return %arg0, %c0_i32 : i32, i32
  }
}

module attributes {stable_mosaic.version = 11 : i64} {
  func.func @_ln_mlp_residual_kernel(%arg0: i32, %arg1: memref<128x128xf32, #tpu.memory_space<vmem>>, %arg2: memref<1x128xf32, #tpu.memory_space<vmem>>, %arg3: memref<1x128xf32, #tpu.memory_space<vmem>>, %arg4: memref<128x256xf32, #tpu.memory_space<vmem>>, %arg5: memref<1x256xf32, #tpu.memory_space<vmem>>, %arg6: memref<256x128xf32, #tpu.memory_space<vmem>>, %arg7: memref<1x128xf32, #tpu.memory_space<vmem>>, %arg8: memref<128x128xf32, #tpu.memory_space<vmem>>) attributes {dimension_semantics = [#tpu.dimension_semantics<parallel>], iteration_bounds = array<i64: 1>, scalar_prefetch = 0 : i64, scratch_operands = 0 : i64, tpu.core_type = #tpu.core_type<tc>, window_params = [{transform_indices = @transform_0, window_bounds = array<i64: 128, 128>}, {pipeline_mode = #tpu.pipeline_mode<synchronous>, transform_indices = @transform_1, window_bounds = array<i64: 1, 128>}, {pipeline_mode = #tpu.pipeline_mode<synchronous>, transform_indices = @transform_2, window_bounds = array<i64: 1, 128>}, {pipeline_mode = #tpu.pipeline_mode<synchronous>, transform_indices = @transform_3, window_bounds = array<i64: 128, 256>}, {pipeline_mode = #tpu.pipeline_mode<synchronous>, transform_indices = @transform_4, window_bounds = array<i64: 1, 256>}, {pipeline_mode = #tpu.pipeline_mode<synchronous>, transform_indices = @transform_5, window_bounds = array<i64: 256, 128>}, {pipeline_mode = #tpu.pipeline_mode<synchronous>, transform_indices = @transform_6, window_bounds = array<i64: 1, 128>}, {transform_indices = @transform_7, window_bounds = array<i64: 128, 128>}]} {
    %c0 = arith.constant 0 : index
    %c0_0 = arith.constant 0 : index
    %0 = vector.load %arg1[%c0, %c0_0] : memref<128x128xf32, #tpu.memory_space<vmem>>, vector<128x128xf32>
    %cst = arith.constant dense<0.000000e+00> : vector<128xf32>
    %1 = vector.multi_reduction <add>, %0, %cst [1] : vector<128x128xf32> to vector<128xf32>
    %2 = vector.shape_cast %1 : vector<128xf32> to vector<128x1xf32>
    %cst_1 = arith.constant 1.280000e+02 : f32
    %3 = vector.broadcast %cst_1 : f32 to vector<128x1xf32>
    %4 = arith.divf %2, %3 : vector<128x1xf32>
    %5 = vector.broadcast %4 : vector<128x1xf32> to vector<128x128xf32>
    %6 = arith.subf %0, %5 : vector<128x128xf32>
    %7 = arith.mulf %6, %6 : vector<128x128xf32>
    %cst_2 = arith.constant dense<0.000000e+00> : vector<128xf32>
    %8 = vector.multi_reduction <add>, %7, %cst_2 [1] : vector<128x128xf32> to vector<128xf32>
    %9 = vector.shape_cast %8 : vector<128xf32> to vector<128x1xf32>
    %cst_3 = arith.constant 1.280000e+02 : f32
    %10 = vector.broadcast %cst_3 : f32 to vector<128x1xf32>
    %11 = arith.divf %9, %10 : vector<128x1xf32>
    %cst_4 = arith.constant 9.99999974E-6 : f32
    %12 = vector.broadcast %cst_4 : f32 to vector<128x1xf32>
    %13 = arith.addf %11, %12 : vector<128x1xf32>
    %14 = math.rsqrt %13 : vector<128x1xf32>
    %15 = vector.broadcast %14 : vector<128x1xf32> to vector<128x128xf32>
    %16 = arith.mulf %6, %15 : vector<128x128xf32>
    %c0_5 = arith.constant 0 : index
    %c0_6 = arith.constant 0 : index
    %17 = vector.load %arg2[%c0_5, %c0_6] : memref<1x128xf32, #tpu.memory_space<vmem>>, vector<1x128xf32>
    %18 = vector.broadcast %17 : vector<1x128xf32> to vector<128x128xf32>
    %19 = arith.mulf %16, %18 : vector<128x128xf32>
    %c0_7 = arith.constant 0 : index
    %c0_8 = arith.constant 0 : index
    %20 = vector.load %arg3[%c0_7, %c0_8] : memref<1x128xf32, #tpu.memory_space<vmem>>, vector<1x128xf32>
    %21 = vector.broadcast %20 : vector<1x128xf32> to vector<128x128xf32>
    %22 = arith.addf %19, %21 : vector<128x128xf32>
    %c0_9 = arith.constant 0 : index
    %c0_10 = arith.constant 0 : index
    %23 = vector.load %arg4[%c0_9, %c0_10] : memref<128x256xf32, #tpu.memory_space<vmem>>, vector<128x256xf32>
    %cst_11 = arith.constant dense<0.000000e+00> : vector<128x256xf32>
    %24 = tpu.matmul %22, %23, %cst_11 {dimension_numbers = #tpu.dot_dimension_numbers<[1], [0], [0], [1], [0, 0, 1, 1], [], []>} : vector<128x128xf32>, vector<128x256xf32>, vector<128x256xf32> -> vector<128x256xf32>
    %c0_12 = arith.constant 0 : index
    %c0_13 = arith.constant 0 : index
    %25 = vector.load %arg5[%c0_12, %c0_13] : memref<1x256xf32, #tpu.memory_space<vmem>>, vector<1x256xf32>
    %26 = vector.broadcast %25 : vector<1x256xf32> to vector<128x256xf32>
    %27 = arith.addf %24, %26 : vector<128x256xf32>
    %cst_14 = arith.constant 5.000000e-01 : f32
    %28 = vector.broadcast %cst_14 : f32 to vector<128x256xf32>
    %29 = arith.mulf %28, %27 : vector<128x256xf32>
    %cst_15 = arith.constant 4.471500e-02 : f32
    %30 = vector.broadcast %cst_15 : f32 to vector<128x256xf32>
    %31 = arith.mulf %30, %27 : vector<128x256xf32>
    %32 = arith.mulf %31, %27 : vector<128x256xf32>
    %33 = arith.mulf %32, %27 : vector<128x256xf32>
    %34 = arith.addf %27, %33 : vector<128x256xf32>
    %cst_16 = arith.constant 0.797884583 : f32
    %35 = vector.broadcast %cst_16 : f32 to vector<128x256xf32>
    %36 = arith.mulf %35, %34 : vector<128x256xf32>
    %37 = math.tanh %36 : vector<128x256xf32>
    %cst_17 = arith.constant 1.000000e+00 : f32
    %38 = vector.broadcast %cst_17 : f32 to vector<128x256xf32>
    %39 = arith.addf %38, %37 : vector<128x256xf32>
    %40 = arith.mulf %29, %39 : vector<128x256xf32>
    %c0_18 = arith.constant 0 : index
    %c0_19 = arith.constant 0 : index
    %41 = vector.load %arg6[%c0_18, %c0_19] : memref<256x128xf32, #tpu.memory_space<vmem>>, vector<256x128xf32>
    %cst_20 = arith.constant dense<0.000000e+00> : vector<128x128xf32>
    %42 = tpu.matmul %40, %41, %cst_20 {dimension_numbers = #tpu.dot_dimension_numbers<[1], [0], [0], [1], [0, 0, 1, 1], [], []>} : vector<128x256xf32>, vector<256x128xf32>, vector<128x128xf32> -> vector<128x128xf32>
    %c0_21 = arith.constant 0 : index
    %c0_22 = arith.constant 0 : index
    %43 = vector.load %arg7[%c0_21, %c0_22] : memref<1x128xf32, #tpu.memory_space<vmem>>, vector<1x128xf32>
    %44 = vector.broadcast %43 : vector<1x128xf32> to vector<128x128xf32>
    %45 = arith.addf %42, %44 : vector<128x128xf32>
    %46 = arith.addf %0, %45 : vector<128x128xf32>
    %c0_23 = arith.constant 0 : index
    %c0_24 = arith.constant 0 : index
    %47 = vector.load %arg8[%c0_23, %c0_24] : memref<128x128xf32, #tpu.memory_space<vmem>>, vector<128x128xf32>
    tpu.vector_store %arg8[%c0_23, %c0_24], %46 {strides = array<i32>} : memref<128x128xf32, #tpu.memory_space<vmem>>, vector<128x128xf32>,
    return
  }
  func.func @transform_0(%arg0: i32) -> (i32, i32) {
    %c0_i32 = arith.constant 0 : i32
    %c0_i32_0 = arith.constant 0 : i32
    return %arg0, %c0_i32 : i32, i32
  }
  func.func @transform_1(%arg0: i32) -> (i32, i32) {
    %c0_i32 = arith.constant 0 : i32
    %c0_i32_0 = arith.constant 0 : i32
    %c0_i32_1 = arith.constant 0 : i32
    return %c0_i32, %c0_i32_0 : i32, i32
  }
  func.func @transform_2(%arg0: i32) -> (i32, i32) {
    %c0_i32 = arith.constant 0 : i32
    %c0_i32_0 = arith.constant 0 : i32
    %c0_i32_1 = arith.constant 0 : i32
    return %c0_i32, %c0_i32_0 : i32, i32
  }
  func.func @transform_3(%arg0: i32) -> (i32, i32) {
    %c0_i32 = arith.constant 0 : i32
    %c0_i32_0 = arith.constant 0 : i32
    %c0_i32_1 = arith.constant 0 : i32
    return %c0_i32, %c0_i32_0 : i32, i32
  }
  func.func @transform_4(%arg0: i32) -> (i32, i32) {
    %c0_i32 = arith.constant 0 : i32
    %c0_i32_0 = arith.constant 0 : i32
    %c0_i32_1 = arith.constant 0 : i32
    return %c0_i32, %c0_i32_0 : i32, i32
  }
  func.func @transform_5(%arg0: i32) -> (i32, i32) {
    %c0_i32 = arith.constant 0 : i32
    %c0_i32_0 = arith.constant 0 : i32
    %c0_i32_1 = arith.constant 0 : i32
    return %c0_i32, %c0_i32_0 : i32, i32
  }
  func.func @transform_6(%arg0: i32) -> (i32, i32) {
    %c0_i32 = arith.constant 0 : i32
    %c0_i32_0 = arith.constant 0 : i32
    %c0_i32_1 = arith.constant 0 : i32
    return %c0_i32, %c0_i32_0 : i32, i32
  }
  func.func @transform_7(%arg0: i32) -> (i32, i32) {
    %c0_i32 = arith.constant 0 : i32
    %c0_i32_0 = arith.constant 0 : i32
    return %arg0, %c0_i32 : i32, i32
  }
}

</mosaic_0001>

<bundles_post_ra>
// kernel: a_call__.4
= control target key start
LH: loop header
LB: loop body
LE: loop exit
PB: predicated region body
PF: predicated region fallthrough
CT: control target
= control target key end

     0   :  { %s1419_s0 = inlined_call_operand.vmem [shape: f32[128,128], index: 0, kind: input, shape index: {}]   ;;  %s1420_s3 = inlined_call_operand.vmem [shape: f32[128,384], index: 3, kind: input, shape index: {}]   ;;  %s1421_s1 = inlined_call_operand.vmem [shape: f32[1,128], index: 1, kind: input, shape index: {}]   ;;  %s1422_s2 = inlined_call_operand.vmem [shape: f32[1,128], index: 2, kind: input, shape index: {}]   ;;  %s1423_s4 = inlined_call_operand.vmem [shape: f32[1,384], index: 4, kind: input, shape index: {}]   ;;  %s1424_s5 = inlined_call_operand.vmem [shape: f32[128,384], index: 5, kind: output, shape index: {}]  }
   0x1   :  { %v20_v0 = vld [vmem:[%s1419_s0] sm:$0xff]  ;;  %v22_v1 = vld [vmem:[%s1419_s0 + $0x10] sm:$0xff]  ;;  %v21_v2 = vld [vmem:[%s1419_s0 + $0x8] sm:$0xff] }
   0x2   :  { %36 = vadd.xlane.f32.xlu0 %v20_v0  ;;  %40 = vadd.xlane.f32.xlu1 %v22_v1  ;;  %v848_v3 = vld [vmem:[%s1419_s0 + $0x18] sm:$0xff]  ;;  %v854_v4 = vld [vmem:[%s1419_s0 + $0x20] sm:$0xff]  ;;  %v859_v5 = vld [vmem:[%s1419_s0 + $0x28] sm:$0xff] }
   0x3   :  { %v866_v6 = vld [vmem:[%s1419_s0 + $0x30] sm:$0xff]  ;;  %v871_v7 = vld [vmem:[%s1419_s0 + $0x38] sm:$0xff]  ;;  %v878_v8 = vld [vmem:[%s1419_s0 + $0x40] sm:$0xff] }
   0x4   :  { %v883_v9 = vld [vmem:[%s1419_s0 + $0x48] sm:$0xff]  ;;  %v890_v10 = vld [vmem:[%s1419_s0 + $0x50] sm:$0xff]  ;;  %v895_v11 = vld [vmem:[%s1419_s0 + $0x58] sm:$0xff] }
   0x5   :  { %v902_v12 = vld [vmem:[%s1419_s0 + $0x60] sm:$0xff]  ;;  %v907_v13 = vld [vmem:[%s1419_s0 + $0x68] sm:$0xff]  ;;  %v914_v14 = vld [vmem:[%s1419_s0 + $0x70] sm:$0xff] }
   0x6   :  { %38 = vadd.xlane.f32.xlu0 %v21_v2  ;;  %42 = vadd.xlane.f32.xlu1 %v848_v3  ;;  %v919_v15 = vld [vmem:[%s1419_s0 + $0x78] sm:$0xff]  ;;  %v305_v16 = vld [vmem:[%s1420_s3 + $0x170] sm:$0xff]  ;;  %v304_v17 = vld [vmem:[%s1420_s3 + $0x168] sm:$0xff] }
   0x7   :  { %v302_v18 = vld [vmem:[%s1420_s3 + $0x158] sm:$0xff]  ;;  %324 = vmatprep.subr.mxu0 %v305_v16  ;;  %v301_v19 = vld [vmem:[%s1420_s3 + $0x150] sm:$0xff]  ;;  %v299_v21 = vld [vmem:[%s1420_s3 + $0x140] sm:$0xff] }
   0x8   :  { %v306_v20 = vld [vmem:[%s1420_s3 + $0x178] sm:$0xff]  ;;  %325 = vmatpush1.msra.mxu0 %v304_v17  ;;  %v303_v22 = vld [vmem:[%s1420_s3 + $0x160] sm:$0xff]  ;;  %v296_v24 = vld [vmem:[%s1420_s3 + $0x128] sm:$0xff] }
   0x9   :  { %716 = vmatprep.subr.mxu1 %v306_v20  ;;  %326 = vmatprep.subr.mxu0 %v302_v18  ;;  %v298_v23 = vld [vmem:[%s1420_s3 + $0x138] sm:$0xff]  ;;  %v295_v25 = vld [vmem:[%s1420_s3 + $0x120] sm:$0xff]  ;;  %v293_v58 = vld [vmem:[%s1420_s3 + $0x110] sm:$0xff] }
   0xa   :  { %44 = vadd.xlane.f32.xlu0 %v854_v4  ;;  %46 = vadd.xlane.f32.xlu1 %v859_v5  ;;  %v300_v59 = vld [vmem:[%s1420_s3 + $0x148] sm:$0xff]  ;;  %v294_v18 = vld [vmem:[%s1420_s3 + $0x118] sm:$0xff] }
   0xb   :  { %717 = vmatpush3.msra.mxu1 %v306_v20  ;;  %327 = vmatpush1.msra.mxu0 %v301_v19  ;;  %v292_v63 = vld [vmem:[%s1420_s3 + $0x108] sm:$0xff]  ;;  %v286_v19 = vld [vmem:[%s1420_s3 + $0xd8] sm:$0xff] }
   0xc   :  { %718 = vmatprep.subr.mxu1 %v303_v22  ;;  %328 = vmatprep.subr.mxu0 %v299_v21 }
   0xd   :  { %719 = vmatpush3.msra.mxu1 %v303_v22  ;;  %329 = vmatpush1.msra.mxu0 %v298_v23  ;;  %v284_v23 = vld [vmem:[%s1420_s3 + $0xc8] sm:$0xff] }
   0xe   :  { %48 = vadd.xlane.f32.xlu0 %v866_v6  ;;  %50 = vadd.xlane.f32.xlu1 %v871_v7 }
   0xf   :  { %330 = vmatprep.subr.mxu0 %v296_v24  ;;  %720 = vmatprep.subr.mxu1 %v300_v59  ;;  %v291_v24 = vld [vmem:[%s1420_s3 + $0x100] sm:$0xff] }
  0x10   :  { %331 = vmatpush1.msra.mxu0 %v295_v25  ;;  %721 = vmatpush3.msra.mxu1 %v300_v59  ;;  %v276_v59 = vld [vmem:[%s1420_s3 + $0x88] sm:$0xff] }
  0x11   :  { %332 = vmatprep.subr.mxu0 %v293_v58  ;;  %v269_v58 = vld [vmem:[%s1420_s3 + $0x50] sm:$0xff] }
  0x12   :  { %52 = vadd.xlane.f32.xlu0 %v878_v8  ;;  %54 = vadd.xlane.f32.xlu1 %v883_v9 }
  0x13   :  { %333 = vmatpush1.msra.mxu0 %v292_v63  ;;  %v265_v63 = vld [vmem:[%s1420_s3 + $0x30] sm:$0xff] }
  0x16   :  { %56 = vadd.xlane.f32.xlu0 %v890_v10  ;;  %58 = vadd.xlane.f32.xlu1 %v895_v11 }
  0x1a   :  { %60 = vadd.xlane.f32.xlu0 %v902_v12  ;;  %62 = vadd.xlane.f32.xlu1 %v907_v13 }
  0x1e   :  { %64 = vadd.xlane.f32.xlu0 %v914_v14  ;;  %66 = vadd.xlane.f32.xlu1 %v919_v15 }
  0x8b   :  { %v37_v26 = vpop.xlane.xlu0 %36  ;;  %v41_v27 = vpop.xlane.xlu1 %40 }
  0x8c   :  { %v69_v28 = vmul.f32 0.0078125, %v37_v26  ;;  %v71_v29 = vmul.f32 0.0078125, %v41_v27 }
  0x8e   :  { %v953_v30 = vsub.f32 %v20_v0, %v69_v28  ;;  %v955_v31 = vsub.f32 %v22_v1, %v71_v29  ;;  %v290_v0 = vld [vmem:[%s1420_s3 + $0xf8] sm:$0xff]  ;;  %v297_v1 = vld [vmem:[%s1420_s3 + $0x130] sm:$0xff] }
  0x8f   :  { %v39_v32 = vpop.xlane.xlu0 %38  ;;  %v43_v33 = vpop.xlane.xlu1 %42  ;;  %334 = vmatprep.subr.mxu0 %v290_v0  ;;  %722 = vmatprep.subr.mxu1 %v297_v1  ;;  %v281_v29 = vld [vmem:[%s1420_s3 + $0xb0] sm:$0xff]  ;;  %v263_v0 = vld [vmem:[%s1420_s3 + $0x20] sm:$0xff] }
  0x90   :  { %v70_v34 = vmul.f32 0.0078125, %v39_v32  ;;  %v101_v35 = vmul.f32 %v953_v30, %v953_v30  ;;  %v72_v36 = vmul.f32 0.0078125, %v43_v33  ;;  %v103_v39 = vmul.f32 %v955_v31, %v955_v31  ;;  %723 = vmatpush3.msra.mxu1 %v297_v1  ;;  %v288_v32 = vld [vmem:[%s1420_s3 + $0xe8] sm:$0xff]  ;;  %v270_v1 = vld [vmem:[%s1420_s3 + $0x58] sm:$0xff] }
  0x91   :  { %724 = vmatprep.subr.mxu1 %v294_v18  ;;  %v280_v33 = vld [vmem:[%s1420_s3 + $0xa8] sm:$0xff] }
  0x92   :  { %v959_v37 = vsub.f32 %v21_v2, %v70_v34  ;;  %117 = vadd.xlane.f32.xlu0 %v101_v35  ;;  %v962_v38 = vsub.f32 %v848_v3, %v72_v36  ;;  %725 = vmatpush3.msra.mxu1 %v294_v18 }
  0x93   :  { %v45_v40 = vpop.xlane.xlu0 %44  ;;  %v47_v41 = vpop.xlane.xlu1 %46  ;;  %726 = vmatprep.subr.mxu1 %v291_v24 }
  0x94   :  { %v73_v42 = vmul.f32 0.0078125, %v45_v40  ;;  %v102_v43 = vmul.f32 %v959_v37, %v959_v37  ;;  %v74_v44 = vmul.f32 0.0078125, %v47_v41  ;;  %v104_v47 = vmul.f32 %v962_v38, %v962_v38  ;;  %727 = vmatpush3.msra.mxu1 %v291_v24  ;;  %v285_v40 = vld [vmem:[%s1420_s3 + $0xd0] sm:$0xff] }
  0x95   :  { %728 = vmatprep.subr.mxu1 %v288_v32 }
  0x96   :  { %v969_v45 = vsub.f32 %v854_v4, %v73_v42  ;;  %121 = vadd.xlane.f32.xlu0 %v103_v39  ;;  %119 = vadd.xlane.f32.xlu1 %v102_v43  ;;  %v972_v46 = vsub.f32 %v859_v5, %v74_v44  ;;  %v289_v5 = vld [vmem:[%s1420_s3 + $0xf0] sm:$0xff]  ;;  %v278_v39 = vld [vmem:[%s1420_s3 + $0x98] sm:$0xff] }
  0x97   :  { %v49_v48 = vpop.xlane.xlu0 %48  ;;  %v51_v49 = vpop.xlane.xlu1 %50  ;;  %335 = vmatpush1.msra.mxu0 %v289_v5  ;;  %729 = vmatpush3.msra.mxu1 %v288_v32  ;;  %v277_v44 = vld [vmem:[%s1420_s3 + $0x90] sm:$0xff]  ;;  %v260_v5 = vld [vmem:[%s1420_s3 + $0x8] sm:$0xff] }
  0x98   :  { %v75_v50 = vmul.f32 0.0078125, %v49_v48  ;;  %v105_v51 = vmul.f32 %v969_v45, %v969_v45  ;;  %v76_v52 = vmul.f32 0.0078125, %v51_v49  ;;  %v106_v55 = vmul.f32 %v972_v46, %v972_v46  ;;  %730 = vmatprep.subr.mxu1 %v285_v40  ;;  %v282_v48 = vld [vmem:[%s1420_s3 + $0xb8] sm:$0xff] }
  0x99   :  { %731 = vmatpush3.msra.mxu1 %v285_v40 }
  0x9a   :  { %v979_v53 = vsub.f32 %v866_v6, %v75_v50  ;;  %123 = vadd.xlane.f32.xlu1 %v104_v47  ;;  %125 = vadd.xlane.f32.xlu0 %v105_v51  ;;  %v982_v54 = vsub.f32 %v871_v7, %v76_v52  ;;  %v275_v47 = vld [vmem:[%s1420_s3 + $0x80] sm:$0xff]  ;;  %v274_v52 = vld [vmem:[%s1420_s3 + $0x78] sm:$0xff] }
  0x9b   :  { %v53_v56 = vpop.xlane.xlu0 %52  ;;  %v55_v57 = vpop.xlane.xlu1 %54  ;;  %732 = vmatprep.subr.mxu1 %v282_v48 }
  0x9c   :  { %v77_v60 = vmul.f32 0.0078125, %v53_v56  ;;  %v107_v61 = vmul.f32 %v979_v53, %v979_v53  ;;  %v78_v62 = vmul.f32 0.0078125, %v55_v57  ;;  %v108_v4 = vmul.f32 %v982_v54, %v982_v54  ;;  %733 = vmatpush3.msra.mxu1 %v282_v48  ;;  %v271_v56 = vld [vmem:[%s1420_s3 + $0x60] sm:$0xff] }
  0x9e   :  { %v1004_v2 = vsub.f32 %v878_v8, %v77_v60  ;;  %127 = vadd.xlane.f32.xlu1 %v106_v55  ;;  %129 = vadd.xlane.f32.xlu0 %v107_v61  ;;  %v1007_v3 = vsub.f32 %v883_v9, %v78_v62  ;;  %v287_v9 = vld [vmem:[%s1420_s3 + $0xe0] sm:$0xff]  ;;  %v268_v60 = vld [vmem:[%s1420_s3 + $0x48] sm:$0xff]  ;;  %v266_v61 = vld [vmem:[%s1420_s3 + $0x38] sm:$0xff] }
  0x9f   :  { %v57_v6 = vpop.xlane.xlu0 %56  ;;  %v59_v7 = vpop.xlane.xlu1 %58  ;;  %336 = vmatprep.subr.mxu0 %v287_v9  ;;  %v273_v62 = vld [vmem:[%s1420_s3 + $0x70] sm:$0xff] }
  0xa0   :  { %v79_v16 = vmul.f32 0.0078125, %v57_v6  ;;  %v109_v8 = vmul.f32 %v1004_v2, %v1004_v2  ;;  %v80_v17 = vmul.f32 0.0078125, %v59_v7  ;;  %v110_v22 = vmul.f32 %v1007_v3, %v1007_v3  ;;  %337 = vmatpush1.msra.mxu0 %v286_v19  ;;  %v267_v6 = vld [vmem:[%s1420_s3 + $0x40] sm:$0xff] }
  0xa1   :  { %338 = vmatprep.subr.mxu0 %v284_v23  ;;  %v259_v7 = vld [vmem:[%s1420_s3] sm:$0xff] }
  0xa2   :  { %v1026_v20 = vsub.f32 %v890_v10, %v79_v16  ;;  %131 = vadd.xlane.f32.xlu1 %v108_v4  ;;  %133 = vadd.xlane.f32.xlu0 %v109_v8  ;;  %v1029_v21 = vsub.f32 %v895_v11, %v80_v17  ;;  %v283_v10 = vld [vmem:[%s1420_s3 + $0xc0] sm:$0xff]  ;;  %v262_v4 = vld [vmem:[%s1420_s3 + $0x18] sm:$0xff]  ;;  %v264_v16 = vld [vmem:[%s1420_s3 + $0x28] sm:$0xff]  ;;  %v805_v8 = vmov 0.0  }
  0xa3   :  { %v61_v25 = vpop.xlane.xlu0 %60  ;;  %v63_v26 = vpop.xlane.xlu1 %62  ;;  %339 = vmatpush1.msra.mxu0 %v283_v10  ;;  %388 = vmatprep.mubr.f32.mxu0 %v805_v8  ;;  %v261_v17 = vld [vmem:[%s1420_s3 + $0x10] sm:$0xff] }
  0xa4   :  { %v81_v11 = vmul.f32 0.0078125, %v61_v25  ;;  %v111_v27 = vmul.f32 %v1026_v20, %v1026_v20  ;;  %v82_v28 = vmul.f32 0.0078125, %v63_v26  ;;  %v112_v36 = vmul.f32 %v1029_v21, %v1029_v21  ;;  %340 = vmatprep.subr.mxu0 %v281_v29 }
  0xa5   :  { %341 = vmatpush1.msra.mxu0 %v280_v33 }
  0xa6   :  { %v1054_v34 = vsub.f32 %v902_v12, %v81_v11  ;;  %135 = vadd.xlane.f32.xlu1 %v110_v22  ;;  %137 = vadd.xlane.f32.xlu0 %v111_v27  ;;  %v1057_v35 = vsub.f32 %v907_v13, %v82_v28 }
  0xa7   :  { %v65_v41 = vpop.xlane.xlu0 %64  ;;  %v67_v42 = vpop.xlane.xlu1 %66  ;;  %342 = vmatprep.subr.mxu0 %v278_v39 }
  0xa8   :  { %v83_v12 = vmul.f32 0.0078125, %v65_v41  ;;  %v113_v13 = vmul.f32 %v1054_v34, %v1054_v34  ;;  %v84_v43 = vmul.f32 0.0078125, %v67_v42  ;;  %v114_v51 = vmul.f32 %v1057_v35, %v1057_v35  ;;  %343 = vmatpush1.msra.mxu0 %v277_v44 }
  0xa9   :  { %344 = vmatprep.subr.mxu0 %v275_v47 }
  0xaa   :  { %v1079_v49 = vsub.f32 %v914_v14, %v83_v12  ;;  %139 = vadd.xlane.f32.xlu1 %v112_v36  ;;  %141 = vadd.xlane.f32.xlu0 %v113_v13  ;;  %v1082_v50 = vsub.f32 %v919_v15, %v84_v43  ;;  %v272_v14 = vld [vmem:[%s1420_s3 + $0x68] sm:$0xff]  ;;  %v279_v15 = vld [vmem:[%s1420_s3 + $0xa0] sm:$0xff] }
  0xab   :  { %345 = vmatpush1.msra.mxu0 %v274_v52  ;;  %734 = vmatprep.subr.mxu1 %v279_v15 }
  0xac   :  { %v115_v55 = vmul.f32 %v1079_v49, %v1079_v49  ;;  %v116_v57 = vmul.f32 %v1082_v50, %v1082_v50  ;;  %346 = vmatprep.subr.mxu0 %v272_v14  ;;  %735 = vmatpush3.msra.mxu1 %v279_v15 }
  0xad   :  { %347 = vmatpush1.msra.mxu0 %v271_v56  ;;  %736 = vmatprep.subr.mxu1 %v276_v59 }
  0xae   :  { %143 = vadd.xlane.f32.xlu1 %v114_v51  ;;  %145 = vadd.xlane.f32.xlu0 %v115_v55  ;;  %v1148_v51 = vld [vmem:[%s1421_s1] ss:$0 sm:$0xff] }
  0xaf   :  { %348 = vmatprep.subr.mxu0 %v269_v58  ;;  %737 = vmatpush3.msra.mxu1 %v276_v59 }
  0xb0   :  { %349 = vmatpush1.msra.mxu0 %v268_v60  ;;  %738 = vmatprep.subr.mxu1 %v273_v62 }
  0xb1   :  { %350 = vmatprep.subr.mxu0 %v266_v61  ;;  %739 = vmatpush3.msra.mxu1 %v273_v62 }
  0xb2   :  { %147 = vadd.xlane.f32.xlu1 %v116_v57  ;;  %351 = vmatpush1.msra.mxu0 %v265_v63  ;;  %v1154_v57 = vld [vmem:[%s1422_s2] ss:$0 sm:$0xff] }
  0xb3   :  { %352 = vmatprep.subr.mxu0 %v263_v0  ;;  %740 = vmatprep.subr.mxu1 %v270_v1 }
  0xb4   :  { %353 = vmatpush1.msra.mxu0 %v262_v4  ;;  %741 = vmatpush3.msra.mxu1 %v270_v1 }
  0xb5   :  { %354 = vmatprep.subr.mxu0 %v260_v5  ;;  %742 = vmatprep.subr.mxu1 %v267_v6 }
  0xb6   :  { %355 = vmatpush1.msra.mxu0 %v259_v7  ;;  %743 = vmatpush3.msra.mxu1 %v267_v6 }
  0xb7   :  { %744 = vmatprep.subr.mxu1 %v264_v16 }
  0xb8   :  { %745 = vmatpush3.msra.mxu1 %v264_v16 }
  0xb9   :  { %746 = vmatprep.subr.mxu1 %v261_v17 }
  0xba   :  { %747 = vmatpush3.msra.mxu1 %v261_v17 }
 0x11b   :  { %v118_v9 = vpop.xlane.xlu0 %117 }
 0x11c   :  { %v149_v18 = vmul.f32 0.0078125, %v118_v9 }
 0x11e   :  { %v165_v19 = vadd.f32 1e-05, %v149_v18 }
 0x11f   :  { %v120_v22 = vpop.xlane.xlu1 %119  ;;  %v122_v23 = vpop.xlane.xlu0 %121 }
 0x120   :  { %773 = vrsqrt.f32 %v165_v19  ;;  %v150_v24 = vmul.f32 0.0078125, %v120_v22  ;;  %v151_v25 = vmul.f32 0.0078125, %v122_v23 }
 0x122   :  { %v166_v26 = vadd.f32 1e-05, %v150_v24  ;;  %v167_v10 = vadd.f32 1e-05, %v151_v25 }
 0x123   :  { %v124_v11 = vpop.xlane.xlu1 %123  ;;  %v126_v27 = vpop.xlane.xlu0 %125 }
 0x124   :  { %775 = vrsqrt.f32 %v166_v26  ;;  %v152_v28 = vmul.f32 0.0078125, %v124_v11  ;;  %v153_v29 = vmul.f32 0.0078125, %v126_v27 }
 0x125   :  { %777 = vrsqrt.f32 %v167_v10 }
 0x126   :  { %v168_v32 = vadd.f32 1e-05, %v152_v28  ;;  %v169_v33 = vadd.f32 1e-05, %v153_v29 }
 0x127   :  { %v128_v36 = vpop.xlane.xlu1 %127  ;;  %v130_v39 = vpop.xlane.xlu0 %129 }
 0x128   :  { %779 = vrsqrt.f32 %v168_v32  ;;  %v154_v40 = vmul.f32 0.0078125, %v128_v36  ;;  %v155_v41 = vmul.f32 0.0078125, %v130_v39 }
 0x129   :  { %781 = vrsqrt.f32 %v169_v33 }
 0x12a   :  { %v170_v42 = vadd.f32 1e-05, %v154_v40  ;;  %v171_v12 = vadd.f32 1e-05, %v155_v41 }
 0x12b   :  { %v132_v13 = vpop.xlane.xlu1 %131  ;;  %v134_v43 = vpop.xlane.xlu0 %133 }
 0x12c   :  { %783 = vrsqrt.f32 %v170_v42  ;;  %v156_v44 = vmul.f32 0.0078125, %v132_v13  ;;  %v157_v47 = vmul.f32 0.0078125, %v134_v43 }
 0x12d   :  { %v774_v48 = vpop.eup %773  ;;  %785 = vrsqrt.f32 %v171_v12 }
 0x12e   :  { %v172_v52 = vadd.f32 1e-05, %v156_v44  ;;  %v173_v55 = vadd.f32 1e-05, %v157_v47  ;;  %v197_v14 = vmul.f32 %v774_v48, %v953_v30 }
 0x12f   :  { %v136_v15 = vpop.xlane.xlu1 %135  ;;  %v138_v56 = vpop.xlane.xlu0 %137 }
 0x130   :  { %787 = vrsqrt.f32 %v172_v52  ;;  %v158_v58 = vmul.f32 0.0078125, %v136_v15  ;;  %v159_v59 = vmul.f32 0.0078125, %v138_v56  ;;  %v220_v60 = vmul.f32 %v1148_v51, %v197_v14 }
 0x131   :  { %v776_v61 = vpop.eup %775  ;;  %789 = vrsqrt.f32 %v173_v55 }
 0x132   :  { %v778_v62 = vpop.eup %777  ;;  %v174_v63 = vadd.f32 1e-05, %v158_v58  ;;  %v175_v0 = vadd.f32 1e-05, %v159_v59  ;;  %v243_v1 = vadd.f32 %v1154_v57, %v220_v60  ;;  %v198_v30 = vmul.f32 %v776_v61, %v959_v37 }
 0x133   :  { %v140_v4 = vpop.xlane.xlu1 %139  ;;  %v142_v5 = vpop.xlane.xlu0 %141  ;;  %v199_v6 = vmul.f32 %v778_v62, %v955_v31 }
 0x134   :  { %791 = vrsqrt.f32 %v174_v63  ;;  %v160_v7 = vmul.f32 0.0078125, %v140_v4  ;;  %v161_v16 = vmul.f32 0.0078125, %v142_v5  ;;  %389 = vmatmul.mubr.f32.vlgmr.msra.gmra.mxu0 %v243_v1  ;;  %748 = vmatprep.mubr.f32.mxu1 %v243_v1  ;;  %v221_v17 = vmul.f32 %v1148_v51, %v198_v30 }
 0x135   :  { %v780_v9 = vpop.eup %779  ;;  %793 = vrsqrt.f32 %v175_v0  ;;  %394 = vmatprep.mubr.f32.mxu0 %v805_v8  ;;  %v222_v18 = vmul.f32 %v1148_v51, %v199_v6 }
 0x136   :  { %v782_v19 = vpop.eup %781  ;;  %v176_v22 = vadd.f32 1e-05, %v160_v7  ;;  %v177_v37 = vadd.f32 1e-05, %v161_v16  ;;  %v244_v23 = vadd.f32 %v1154_v57, %v221_v17  ;;  %v200_v31 = vmul.f32 %v780_v9, %v962_v38 }
 0x137   :  { %v144_v24 = vpop.xlane.xlu1 %143  ;;  %v146_v25 = vpop.xlane.xlu0 %145  ;;  %v245_v26 = vadd.f32 %v1154_v57, %v222_v18  ;;  %v201_v10 = vmul.f32 %v782_v19, %v969_v45 }
 0x138   :  { %795 = vrsqrt.f32 %v176_v22  ;;  %v162_v11 = vmul.f32 0.0078125, %v144_v24  ;;  %v163_v27 = vmul.f32 0.0078125, %v146_v25  ;;  %395 = vmatmul.mubr.f32.gmra.mxu0 %v244_v23  ;;  %749 = vmatmul.mubr.f32.vlgmr.msra.gmra.mxu1 %v244_v23  ;;  %v223_v28 = vmul.f32 %v1148_v51, %v200_v31  ;;  %v307_v31 = vld [vmem:[%s1423_s4] sm:$0x7] }
 0x139   :  { %v784_v29 = vpop.eup %783  ;;  %797 = vrsqrt.f32 %v177_v37  ;;  %751 = vmatprep.mubr.f32.mxu1 %v245_v26  ;;  %400 = vmatprep.mubr.f32.mxu0 %v805_v8  ;;  %v224_v38 = vmul.f32 %v1148_v51, %v201_v10 }
 0x13a   :  { %v786_v32 = vpop.eup %785  ;;  %v178_v33 = vadd.f32 1e-05, %v162_v11  ;;  %v179_v36 = vadd.f32 1e-05, %v163_v27  ;;  %v246_v39 = vadd.f32 %v1154_v57, %v223_v28  ;;  %v202_v45 = vmul.f32 %v784_v29, %v972_v46 }
 0x13b   :  { %v148_v40 = vpop.xlane.xlu1 %147  ;;  %v247_v41 = vadd.f32 %v1154_v57, %v224_v38  ;;  %v203_v42 = vmul.f32 %v786_v32, %v979_v53 }
 0x13c   :  { %799 = vrsqrt.f32 %v178_v33  ;;  %v164_v12 = vmul.f32 0.0078125, %v148_v40  ;;  %401 = vmatmul.mubr.f32.gmra.mxu0 %v245_v26  ;;  %752 = vmatmul.mubr.f32.gmra.mxu1 %v246_v39  ;;  %v225_v13 = vmul.f32 %v1148_v51, %v202_v45 }
 0x13d   :  { %v788_v43 = vpop.eup %787  ;;  %801 = vrsqrt.f32 %v179_v36  ;;  %754 = vmatprep.mubr.f32.mxu1 %v247_v41  ;;  %406 = vmatprep.mubr.f32.mxu0 %v805_v8  ;;  %v226_v44 = vmul.f32 %v1148_v51, %v203_v42 }
 0x13e   :  { %v790_v47 = vpop.eup %789  ;;  %v180_v46 = vadd.f32 1e-05, %v164_v12  ;;  %v248_v48 = vadd.f32 %v1154_v57, %v225_v13  ;;  %v204_v52 = vmul.f32 %v788_v43, %v982_v54 }
 0x13f   :  { %v249_v53 = vadd.f32 %v1154_v57, %v226_v44  ;;  %v205_v55 = vmul.f32 %v790_v47, %v1004_v2 }
 0x140   :  { %803 = vrsqrt.f32 %v180_v46  ;;  %407 = vmatmul.mubr.f32.gmra.mxu0 %v246_v39  ;;  %755 = vmatmul.mubr.f32.gmra.mxu1 %v248_v48  ;;  %v227_v14 = vmul.f32 %v1148_v51, %v204_v52 }
 0x141   :  { %v792_v15 = vpop.eup %791  ;;  %757 = vmatprep.mubr.f32.mxu1 %v249_v53  ;;  %412 = vmatprep.mubr.f32.mxu0 %v805_v8  ;;  %v228_v56 = vmul.f32 %v1148_v51, %v205_v55 }
 0x142   :  { %v794_v58 = vpop.eup %793  ;;  %v250_v59 = vadd.f32 %v1154_v57, %v227_v14  ;;  %v206_v54 = vmul.f32 %v792_v15, %v1007_v3 }
 0x143   :  { %v251_v60 = vadd.f32 %v1154_v57, %v228_v56  ;;  %v207_v2 = vmul.f32 %v794_v58, %v1026_v20 }
 0x144   :  { %413 = vmatmul.mubr.f32.gmra.mxu0 %v247_v41  ;;  %758 = vmatmul.mubr.f32.gmra.mxu1 %v250_v59  ;;  %v229_v61 = vmul.f32 %v1148_v51, %v206_v54 }
 0x145   :  { %v796_v62 = vpop.eup %795  ;;  %760 = vmatprep.mubr.f32.mxu1 %v251_v60  ;;  %418 = vmatprep.mubr.f32.mxu0 %v805_v8  ;;  %v230_v63 = vmul.f32 %v1148_v51, %v207_v2 }
 0x146   :  { %v798_v0 = vpop.eup %797  ;;  %v252_v1 = vadd.f32 %v1154_v57, %v229_v61  ;;  %v208_v30 = vmul.f32 %v796_v62, %v1029_v21 }
 0x147   :  { %v253_v3 = vadd.f32 %v1154_v57, %v230_v63  ;;  %v209_v4 = vmul.f32 %v798_v0, %v1054_v34 }
 0x148   :  { %419 = vmatmul.mubr.f32.gmra.mxu0 %v248_v48  ;;  %761 = vmatmul.mubr.f32.gmra.mxu1 %v252_v1  ;;  %v231_v20 = vmul.f32 %v1148_v51, %v208_v30 }
 0x149   :  { %v800_v5 = vpop.eup %799  ;;  %763 = vmatprep.mubr.f32.mxu1 %v253_v3  ;;  %424 = vmatprep.mubr.f32.mxu0 %v805_v8  ;;  %v232_v6 = vmul.f32 %v1148_v51, %v209_v4 }
 0x14a   :  { %v802_v7 = vpop.eup %801  ;;  %v254_v16 = vadd.f32 %v1154_v57, %v231_v20  ;;  %v210_v17 = vmul.f32 %v800_v5, %v1057_v35 }
 0x14b   :  { %v255_v21 = vadd.f32 %v1154_v57, %v232_v6  ;;  %v211_v9 = vmul.f32 %v802_v7, %v1079_v49 }
 0x14c   :  { %425 = vmatmul.mubr.f32.gmra.mxu0 %v249_v53  ;;  %764 = vmatmul.mubr.f32.gmra.mxu1 %v254_v16  ;;  %v233_v34 = vmul.f32 %v1148_v51, %v210_v17 }
 0x14d   :  { %v804_v18 = vpop.eup %803  ;;  %766 = vmatprep.mubr.f32.mxu1 %v255_v21  ;;  %430 = vmatprep.mubr.f32.mxu0 %v805_v8  ;;  %v234_v19 = vmul.f32 %v1148_v51, %v211_v9 }
 0x14e   :  { %v256_v22 = vadd.f32 %v1154_v57, %v233_v34  ;;  %v212_v37 = vmul.f32 %v804_v18, %v1082_v50  ;;  %v309_v50 = vlaneseq }
 0x14f   :  { %v257_v35 = vadd.f32 %v1154_v57, %v234_v19 }
 0x150   :  { %431 = vmatmul.mubr.f32.gmra.mxu0 %v250_v59  ;;  %767 = vmatmul.mubr.f32.gmra.mxu1 %v256_v22  ;;  %v235_v49 = vmul.f32 %v1148_v51, %v212_v37  ;;  %v310_v51 = vshrl.u32 %v309_v50, 7 }
 0x151   :  { %769 = vmatprep.mubr.f32.mxu1 %v257_v35  ;;  %436 = vmatprep.mubr.f32.mxu0 %v805_v8 }
 0x152   :  { %v258_v23 = vadd.f32 %v1154_v57, %v235_v49  ;;  %v311_v57 = vsub.s32 0, %v310_v51  ;;  %v315_v24 = vsub.s32 1, %v310_v51  ;;  %v319_v26 = vsub.s32 2, %v310_v51 }
 0x154   :  { %437 = vmatmul.mubr.f32.gmra.mxu0 %v251_v60  ;;  %770 = vmatmul.mubr.f32.gmra.mxu1 %v258_v23  ;;  %v1221_v25 = vrot.slane %v307_v31, %v311_v57  ;;  %v1223_v10 = vrot.slane %v307_v31, %v315_v24  ;;  %v1226_v28 = vrot.slane %v307_v31, %v319_v26 }
 0x155   :  { %442 = vmatprep.mubr.f32.mxu0 %v805_v8 }
 0x158   :  { %443 = vmatmul.mubr.f32.gmra.mxu0 %v252_v1 }
 0x159   :  { %448 = vmatprep.mubr.f32.mxu0 %v805_v8 }
 0x15c   :  { %449 = vmatmul.mubr.f32.gmra.mxu0 %v253_v3 }
 0x15d   :  { %454 = vmatprep.mubr.f32.mxu0 %v805_v8 }
 0x160   :  { %455 = vmatmul.mubr.f32.gmra.mxu0 %v254_v16 }
 0x161   :  { %460 = vmatprep.mubr.f32.mxu0 %v805_v8 }
 0x164   :  { %461 = vmatmul.mubr.f32.gmra.mxu0 %v255_v21 }
 0x165   :  { %466 = vmatprep.mubr.f32.mxu0 %v805_v8 }
 0x168   :  { %467 = vmatmul.mubr.f32.gmra.mxu0 %v256_v22 }
 0x169   :  { %472 = vmatprep.mubr.f32.mxu0 %v805_v8 }
 0x16c   :  { %473 = vmatmul.mubr.f32.gmra.mxu0 %v257_v35 }
 0x16d   :  { %478 = vmatprep.mubr.f32.mxu0 %v805_v8 }
 0x170   :  { %479 = vmatmul.mubr.f32.gmra.mxu0 %v258_v23 }
 0x1f4   :  { %v390_v11 = vpop.f32.mrf.mxu0 }
 0x1f5   :  { %v391_v27 = vadd.f32 %v390_v11, %v1221_v25 }
 0x1f6   :  { %v392_v8 = vpop.f32.mrf.mxu0 }
 0x1f7   :  { %630 = vst [vmem:[%s1424_s5] sm:$0xff] %v391_v27  ;;  %v393_v29 = vadd.f32 %v392_v8, %v1223_v10 }
 0x1f8   :  { %v396_v38 = vpop.f32.mrf.mxu0  ;;  %v750_v32 = vpop.f32.mrf.mxu1 }
 0x1f9   :  { %631 = vst [vmem:[%s1424_s5 + $0x8] sm:$0xff] %v393_v29  ;;  %v397_v33 = vadd.f32 %v396_v38, %v1221_v25  ;;  %v557_v36 = vadd.f32 %v750_v32, %v1226_v28 }
 0x1fa   :  { %v398_v39 = vpop.f32.mrf.mxu0  ;;  %v551_v45 = vpop.f32.mrf.mxu1 }
 0x1fb   :  { %633 = vst [vmem:[%s1424_s5 + $0x18] sm:$0xff] %v397_v33  ;;  %635 = vst [vmem:[%s1424_s5 + $0x28] sm:$0xff] %v557_v36  ;;  %v399_v40 = vadd.f32 %v398_v39, %v1223_v10  ;;  %v552_v41 = vadd.f32 %v551_v45, %v1226_v28 }
 0x1fc   :  { %v402_v42 = vpop.f32.mrf.mxu0  ;;  %v753_v12 = vpop.f32.mrf.mxu1 }
 0x1fd   :  { %634 = vst [vmem:[%s1424_s5 + $0x20] sm:$0xff] %v399_v40  ;;  %632 = vst [vmem:[%s1424_s5 + $0x10] sm:$0xff] %v552_v41  ;;  %v403_v13 = vadd.f32 %v402_v42, %v1221_v25  ;;  %v567_v43 = vadd.f32 %v753_v12, %v1226_v28 }
 0x1fe   :  { %v404_v44 = vpop.f32.mrf.mxu0  ;;  %v561_v47 = vpop.f32.mrf.mxu1 }
 0x1ff   :  { %636 = vst [vmem:[%s1424_s5 + $0x30] sm:$0xff] %v403_v13  ;;  %641 = vst [vmem:[%s1424_s5 + $0x58] sm:$0xff] %v567_v43  ;;  %v405_v46 = vadd.f32 %v404_v44, %v1223_v10  ;;  %v562_v48 = vadd.f32 %v561_v47, %v1226_v28 }
 0x200   :  { %v408_v52 = vpop.f32.mrf.mxu0  ;;  %v756_v53 = vpop.f32.mrf.mxu1 }
 0x201   :  { %637 = vst [vmem:[%s1424_s5 + $0x38] sm:$0xff] %v405_v46  ;;  %638 = vst [vmem:[%s1424_s5 + $0x40] sm:$0xff] %v562_v48  ;;  %v409_v55 = vadd.f32 %v408_v52, %v1221_v25  ;;  %v577_v14 = vadd.f32 %v756_v53, %v1226_v28 }
 0x202   :  { %v410_v15 = vpop.f32.mrf.mxu0  ;;  %v571_v56 = vpop.f32.mrf.mxu1 }
 0x203   :  { %639 = vst [vmem:[%s1424_s5 + $0x48] sm:$0xff] %v409_v55  ;;  %647 = vst [vmem:[%s1424_s5 + $0x88] sm:$0xff] %v577_v14  ;;  %v411_v58 = vadd.f32 %v410_v15, %v1223_v10  ;;  %v572_v59 = vadd.f32 %v571_v56, %v1226_v28 }
 0x204   :  { %v414_v54 = vpop.f32.mrf.mxu0  ;;  %v759_v60 = vpop.f32.mrf.mxu1 }
 0x205   :  { %640 = vst [vmem:[%s1424_s5 + $0x50] sm:$0xff] %v411_v58  ;;  %644 = vst [vmem:[%s1424_s5 + $0x70] sm:$0xff] %v572_v59  ;;  %v415_v2 = vadd.f32 %v414_v54, %v1221_v25  ;;  %v587_v61 = vadd.f32 %v759_v60, %v1226_v28 }
 0x206   :  { %v416_v62 = vpop.f32.mrf.mxu0  ;;  %v581_v63 = vpop.f32.mrf.mxu1 }
 0x207   :  { %642 = vst [vmem:[%s1424_s5 + $0x60] sm:$0xff] %v415_v2  ;;  %653 = vst [vmem:[%s1424_s5 + $0xb8] sm:$0xff] %v587_v61  ;;  %v417_v0 = vadd.f32 %v416_v62, %v1223_v10  ;;  %v582_v1 = vadd.f32 %v581_v63, %v1226_v28 }
 0x208   :  { %v420_v30 = vpop.f32.mrf.mxu0  ;;  %v762_v3 = vpop.f32.mrf.mxu1 }
 0x209   :  { %643 = vst [vmem:[%s1424_s5 + $0x68] sm:$0xff] %v417_v0  ;;  %650 = vst [vmem:[%s1424_s5 + $0xa0] sm:$0xff] %v582_v1  ;;  %v421_v4 = vadd.f32 %v420_v30, %v1221_v25  ;;  %v597_v20 = vadd.f32 %v762_v3, %v1226_v28 }
 0x20a   :  { %v422_v5 = vpop.f32.mrf.mxu0  ;;  %v591_v6 = vpop.f32.mrf.mxu1 }
 0x20b   :  { %645 = vst [vmem:[%s1424_s5 + $0x78] sm:$0xff] %v421_v4  ;;  %659 = vst [vmem:[%s1424_s5 + $0xe8] sm:$0xff] %v597_v20  ;;  %v423_v7 = vadd.f32 %v422_v5, %v1223_v10  ;;  %v592_v16 = vadd.f32 %v591_v6, %v1226_v28 }
 0x20c   :  { %v426_v17 = vpop.f32.mrf.mxu0  ;;  %v765_v21 = vpop.f32.mrf.mxu1 }
 0x20d   :  { %646 = vst [vmem:[%s1424_s5 + $0x80] sm:$0xff] %v423_v7  ;;  %656 = vst [vmem:[%s1424_s5 + $0xd0] sm:$0xff] %v592_v16  ;;  %v427_v9 = vadd.f32 %v426_v17, %v1221_v25  ;;  %v607_v34 = vadd.f32 %v765_v21, %v1226_v28 }
 0x20e   :  { %v428_v18 = vpop.f32.mrf.mxu0  ;;  %v601_v19 = vpop.f32.mrf.mxu1 }
 0x20f   :  { %648 = vst [vmem:[%s1424_s5 + $0x90] sm:$0xff] %v427_v9  ;;  %665 = vst [vmem:[%s1424_s5 + $0x118] sm:$0xff] %v607_v34  ;;  %v429_v22 = vadd.f32 %v428_v18, %v1223_v10  ;;  %v602_v37 = vadd.f32 %v601_v19, %v1226_v28 }
 0x210   :  { %v432_v35 = vpop.f32.mrf.mxu0  ;;  %v768_v49 = vpop.f32.mrf.mxu1 }
 0x211   :  { %649 = vst [vmem:[%s1424_s5 + $0x98] sm:$0xff] %v429_v22  ;;  %662 = vst [vmem:[%s1424_s5 + $0x100] sm:$0xff] %v602_v37  ;;  %v433_v23 = vadd.f32 %v432_v35, %v1221_v25  ;;  %v617_v50 = vadd.f32 %v768_v49, %v1226_v28 }
 0x212   :  { %v434_v51 = vpop.f32.mrf.mxu0  ;;  %v611_v57 = vpop.f32.mrf.mxu1 }
 0x213   :  { %651 = vst [vmem:[%s1424_s5 + $0xa8] sm:$0xff] %v433_v23  ;;  %671 = vst [vmem:[%s1424_s5 + $0x148] sm:$0xff] %v617_v50  ;;  %v435_v31 = vadd.f32 %v434_v51, %v1223_v10  ;;  %v612_v24 = vadd.f32 %v611_v57, %v1226_v28 }
 0x214   :  { %v438_v26 = vpop.f32.mrf.mxu0  ;;  %v771_v11 = vpop.f32.mrf.mxu1 }
 0x215   :  { %652 = vst [vmem:[%s1424_s5 + $0xb0] sm:$0xff] %v435_v31  ;;  %668 = vst [vmem:[%s1424_s5 + $0x130] sm:$0xff] %v612_v24  ;;  %v439_v27 = vadd.f32 %v438_v26, %v1221_v25  ;;  %v627_v8 = vadd.f32 %v771_v11, %v1226_v28 }
 0x216   :  { %v440_v29 = vpop.f32.mrf.mxu0  ;;  %v621_v38 = vpop.f32.mrf.mxu1 }
 0x217   :  { %654 = vst [vmem:[%s1424_s5 + $0xc0] sm:$0xff] %v439_v27  ;;  %677 = vst [vmem:[%s1424_s5 + $0x178] sm:$0xff] %v627_v8  ;;  %v441_v32 = vadd.f32 %v440_v29, %v1223_v10  ;;  %v622_v33 = vadd.f32 %v621_v38, %v1226_v28 }
 0x218   :  { %v444_v36 = vpop.f32.mrf.mxu0 }
 0x219   :  { %655 = vst [vmem:[%s1424_s5 + $0xc8] sm:$0xff] %v441_v32  ;;  %674 = vst [vmem:[%s1424_s5 + $0x160] sm:$0xff] %v622_v33  ;;  %v445_v39 = vadd.f32 %v444_v36, %v1221_v25 }
 0x21a   :  { %v446_v45 = vpop.f32.mrf.mxu0 }
 0x21b   :  { %657 = vst [vmem:[%s1424_s5 + $0xd8] sm:$0xff] %v445_v39  ;;  %v447_v40 = vadd.f32 %v446_v45, %v1223_v10 }
 0x21c   :  { %v450_v41 = vpop.f32.mrf.mxu0 }
 0x21d   :  { %658 = vst [vmem:[%s1424_s5 + $0xe0] sm:$0xff] %v447_v40  ;;  %v451_v28 = vadd.f32 %v450_v41, %v1221_v25 }
 0x21e   :  { %v452_v42 = vpop.f32.mrf.mxu0 }
 0x21f   :  { %660 = vst [vmem:[%s1424_s5 + $0xf0] sm:$0xff] %v451_v28  ;;  %v453_v12 = vadd.f32 %v452_v42, %v1223_v10 }
 0x220   :  { %v456_v13 = vpop.f32.mrf.mxu0 }
 0x221   :  { %661 = vst [vmem:[%s1424_s5 + $0xf8] sm:$0xff] %v453_v12  ;;  %v457_v43 = vadd.f32 %v456_v13, %v1221_v25 }
 0x222   :  { %v458_v44 = vpop.f32.mrf.mxu0 }
 0x223   :  { %663 = vst [vmem:[%s1424_s5 + $0x108] sm:$0xff] %v457_v43  ;;  %v459_v47 = vadd.f32 %v458_v44, %v1223_v10 }
 0x224   :  { %v462_v46 = vpop.f32.mrf.mxu0 }
 0x225   :  { %664 = vst [vmem:[%s1424_s5 + $0x110] sm:$0xff] %v459_v47  ;;  %v463_v48 = vadd.f32 %v462_v46, %v1221_v25 }
 0x226   :  { %v464_v52 = vpop.f32.mrf.mxu0 }
 0x227   :  { %666 = vst [vmem:[%s1424_s5 + $0x120] sm:$0xff] %v463_v48  ;;  %v465_v53 = vadd.f32 %v464_v52, %v1223_v10 }
 0x228   :  { %v468_v55 = vpop.f32.mrf.mxu0 }
 0x229   :  { %667 = vst [vmem:[%s1424_s5 + $0x128] sm:$0xff] %v465_v53  ;;  %v469_v14 = vadd.f32 %v468_v55, %v1221_v25 }
 0x22a   :  { %v470_v15 = vpop.f32.mrf.mxu0 }
 0x22b   :  { %669 = vst [vmem:[%s1424_s5 + $0x138] sm:$0xff] %v469_v14  ;;  %v471_v56 = vadd.f32 %v470_v15, %v1223_v10 }
 0x22c   :  { %v474_v58 = vpop.f32.mrf.mxu0 }
 0x22d   :  { %670 = vst [vmem:[%s1424_s5 + $0x140] sm:$0xff] %v471_v56  ;;  %v475_v59 = vadd.f32 %v474_v58, %v1221_v25 }
 0x22e   :  { %v476_v54 = vpop.f32.mrf.mxu0 }
 0x22f   :  { %672 = vst [vmem:[%s1424_s5 + $0x150] sm:$0xff] %v475_v59  ;;  %v477_v60 = vadd.f32 %v476_v54, %v1223_v10 }
 0x230   :  { %v480_v2 = vpop.f32.mrf.mxu0 }
 0x231   :  { %673 = vst [vmem:[%s1424_s5 + $0x158] sm:$0xff] %v477_v60  ;;  %v481_v61 = vadd.f32 %v480_v2, %v1221_v25 }
 0x232   :  { %v482_v62 = vpop.f32.mrf.mxu0 }
 0x233   :  { %675 = vst [vmem:[%s1424_s5 + $0x168] sm:$0xff] %v481_v61  ;;  %v483_v63 = vadd.f32 %v482_v62, %v1223_v10 }
 0x235   :  { %676 = vst [vmem:[%s1424_s5 + $0x170] sm:$0xff] %v483_v63 }

// kernel: a_call__.5
= control target key start
LH: loop header
LB: loop body
LE: loop exit
PB: predicated region body
PF: predicated region fallthrough
CT: control target
= control target key end

     0   :  { %s1339_s15 = smov 0   ;;  %s1488_s0 = inlined_call_operand.vmem [shape: f32[8,4,16,32], index: 0, kind: input, shape index: {}]   ;;  %s1489_s1 = inlined_call_operand.vmem [shape: f32[8,4,16,32], index: 1, kind: input, shape index: {}]   ;;  %s1490_s2 = inlined_call_operand.vmem [shape: f32[8,4,16,32], index: 2, kind: input, shape index: {}]   ;;  %s1491_s3 = inlined_call_operand.vmem [shape: f32[4,16,16], index: 3, kind: input, shape index: {}]   ;;  %s1492_s4 = inlined_call_operand.vmem [shape: f32[8,4,16,32], index: 4, kind: output, shape index: {}]  }
   0x1 LB: > { %s1135_s16 = sadd.s32 4294967295, %s1312_s15   ;;  %p1139_p0 = scmp.ge.s32.totalorder %s1312_s15, 1  ;;  %s1312_s15 = sphi %s1339_s15, %s14_s15  }
   0x2   : > { %p182_p1 = scmp.lt.s32.totalorder %s1312_s15, 9 }
   0x4   : > { %p183_p2 = pnand %p1139_p0, %p182_p1 }
   0x5   : > { %p218_p3 = scmp.lt.s32.totalorder (!%p183_p2), %s1135_s16, 7 }
   0x6   : > { %186 = sbr.rel (%p183_p2) target bundleno = 744 (0x2e8), region = 36 }
   0xb   : > { %s1494_s16 = smov (!%p218_p3, %s1135_s16), 7  ;;  %vm262_vm0 = vcmask 261120   ;;  %v620_v18 = vld [vmem:[%s1491_s3 + $0x8] sm:$0xff]  ;;  %v622_v19 = vld [vmem:[%s1491_s3 + $0x18] sm:$0xff]  ;;  %vm635_vm1 = vcmask 130048   ;;  %v619_v24 = vld [vmem:[%s1491_s3] sm:$0xff] }
   0xc   : > { %s1347_s17 = sshll.u32 %s1494_s16, 6  ;;  %v621_v29 = vld [vmem:[%s1491_s3 + $0x10] sm:$0xff]  ;;  %v623_v42 = vld [vmem:[%s1491_s3 + $0x20] sm:$0xff]  ;;  %v626_v46 = vld [vmem:[%s1491_s3 + $0x38] sm:$0xff] }
   0xd   : > { %s227_s20 = scalar_lea.vmem %s1489_s1, %s1347_s17  ;;  %s1357_s23 = scalar_lea.vmem %s1488_s0, %s1347_s17  ;;  %v625_v41 = vld [vmem:[%s1491_s3 + $0x30] sm:$0xff]  ;;  %v624_v47 = vld [vmem:[%s1491_s3 + $0x28] sm:$0xff] }
   0xe   : > { %v247_v0 = vld [vmem:[%s227_s20 + $0x8] sm:$0xff]  ;;  %v249_v1 = vld [vmem:[%s227_s20 + $0x18] sm:$0xff]  ;;  %v246_v2 = vld [vmem:[%s227_s20] sm:$0xff]  ;;  %s1450_s18 = scalar_lea.vmem %s1490_s2, %s1347_s17  ;;  %s237_s21 = scalar_lea.vmem %s1492_s4, %s1347_s17 }
   0xf   : > { %1210 = vmatprep.subr.msk.mxu0 %vm262_vm0, %v247_v0  ;;  %1217 = vmatprep.subr.msk.mxu1 %vm262_vm0, %v249_v1  ;;  %v248_v3 = vld [vmem:[%s227_s20 + $0x10] sm:$0xff]  ;;  %v238_v4 = vld [vmem:[%s1357_s23] sm:$0xff]  ;;  %v251_v6 = vld [vmem:[%s227_s20 + $0x28] sm:$0xff] }
  0x10   : > { %1211 = vmatpush3.xpose.msk.msra.mxu0 %vm262_vm0, %v247_v0  ;;  %1218 = vmatpush3.xpose.msk.msra.mxu1 %vm262_vm0, %v249_v1  ;;  %v240_v5 = vld [vmem:[%s1357_s23 + $0x10] sm:$0xff]  ;;  %v253_v7 = vld [vmem:[%s227_s20 + $0x38] sm:$0xff]  ;;  %v239_v8 = vld [vmem:[%s1357_s23 + $0x8] sm:$0xff] }
  0x11   : > { %1212 = vmatprep.subr.msk.mxu0 %vm262_vm0, %v246_v2  ;;  %1219 = vmatprep.subr.msk.mxu1 %vm262_vm0, %v248_v3  ;;  %v241_v9 = vld [vmem:[%s1357_s23 + $0x18] sm:$0xff]  ;;  %v250_v10 = vld [vmem:[%s227_s20 + $0x20] sm:$0xff]  ;;  %v252_v11 = vld [vmem:[%s227_s20 + $0x30] sm:$0xff] }
  0x12   : > { %1214 = vmatprep.mubr.msk.f32.mxu0 %vm262_vm0, %v238_v4  ;;  %1221 = vmatprep.mubr.msk.f32.mxu1 %vm262_vm0, %v240_v5  ;;  %v242_v12 = vld [vmem:[%s1357_s23 + $0x20] sm:$0xff]  ;;  %v244_v13 = vld [vmem:[%s1357_s23 + $0x30] sm:$0xff]  ;;  %v243_v14 = vld [vmem:[%s1357_s23 + $0x28] sm:$0xff] }
  0x13   : > { %v245_v15 = vld [vmem:[%s1357_s23 + $0x38] sm:$0xff] }
  0x14   : > { %1213 = vmatpush3.xpose.msk.msra.mxu0 %vm262_vm0, %v246_v2  ;;  %1220 = vmatpush3.xpose.msk.msra.mxu1 %vm262_vm0, %v248_v3 }
  0x15   : > { %1224 = vmatprep.subr.msk.mxu0 %vm262_vm0, %v251_v6  ;;  %1231 = vmatprep.subr.msk.mxu1 %vm262_vm0, %v253_v7 }
  0x17   : > { %1215 = vmatmul.mubr.msk.f32.vlgmr.msra.gmra.mxu0 %vm262_vm0, %v239_v8  ;;  %1222 = vmatmul.mubr.msk.f32.vlgmr.msra.gmra.mxu1 %vm262_vm0, %v241_v9 }
  0x18   : > { %1225 = vmatpush3.xpose.msk.msra.mxu0 %vm262_vm0, %v251_v6  ;;  %1232 = vmatpush3.xpose.msk.msra.mxu1 %vm262_vm0, %v253_v7 }
  0x19   : > { %1226 = vmatprep.subr.msk.mxu0 %vm262_vm0, %v250_v10  ;;  %1233 = vmatprep.subr.msk.mxu1 %vm262_vm0, %v252_v11 }
  0x1a   : > { %1228 = vmatprep.mubr.msk.f32.mxu0 %vm262_vm0, %v242_v12  ;;  %1235 = vmatprep.mubr.msk.f32.mxu1 %vm262_vm0, %v244_v13 }
  0x1c   : > { %1227 = vmatpush3.xpose.msk.msra.mxu0 %vm262_vm0, %v250_v10  ;;  %1234 = vmatpush3.xpose.msk.msra.mxu1 %vm262_vm0, %v252_v11 }
  0x1f   : > { %1229 = vmatmul.mubr.msk.f32.vlgmr.msra.gmra.mxu0 %vm262_vm0, %v243_v14  ;;  %1236 = vmatmul.mubr.msk.f32.vlgmr.msra.gmra.mxu1 %vm262_vm0, %v245_v15 }
  0xd7   : > { %v1216_v16 = vpop.f32.mrf.mxu0  ;;  %v1223_v17 = vpop.f32.mrf.mxu1 }
  0xd8   : > { %v612_v20 = vmul.f32 0.17677669, %v1216_v16  ;;  %v614_v21 = vmul.f32 0.17677669, %v1223_v17 }
  0xd9   : > { %v341_v22 = vpop.f32.mrf.mxu0  ;;  %v428_v23 = vpop.f32.mrf.mxu1 }
  0xda   : > { %v611_v25 = vmul.f32 0.17677669, %v341_v22  ;;  %v613_v26 = vmul.f32 0.17677669, %v428_v23  ;;  %v628_v27 = vadd.f32 %v620_v18, %v612_v20  ;;  %v630_v28 = vadd.f32 %v622_v19, %v614_v21 }
  0xdc   : > { %v639_v30 = vsel %vm635_vm1, %v628_v27, -inf  ;;  %v627_v31 = vadd.f32 %v619_v24, %v611_v25  ;;  %v629_v32 = vadd.f32 %v621_v29, %v613_v26  ;;  %v645_v34 = vsel %vm635_vm1, %v630_v28, -inf }
  0xdd   : > { %640 = vmax.xlane.f32.xlu1 %v639_v30 }
  0xde   : > { %v636_v33 = vsel %vm635_vm1, %v627_v31, -inf  ;;  %v642_v40 = vsel %vm635_vm1, %v629_v32, -inf }
  0xdf   : > { %v1237_v35 = vpop.f32.mrf.mxu1  ;;  %637 = vmax.xlane.f32.xlu0 %v636_v33  ;;  %v1230_v36 = vpop.f32.mrf.mxu0  ;;  %v254_v33 = vld [vmem:[%s1450_s18] sm:$0xff] }
  0xe0   : > { %v618_v37 = vmul.f32 0.17677669, %v1237_v35  ;;  %v616_v43 = vmul.f32 0.17677669, %v1230_v36  ;;  %v256_v35 = vld [vmem:[%s1450_s18 + $0x10] sm:$0xff]  ;;  %v259_v36 = vld [vmem:[%s1450_s18 + $0x28] sm:$0xff] }
  0xe1   : > { %v602_v38 = vpop.f32.mrf.mxu1  ;;  %646 = vmax.xlane.f32.xlu1 %v645_v34  ;;  %v515_v39 = vpop.f32.mrf.mxu0  ;;  %v257_v34 = vld [vmem:[%s1450_s18 + $0x18] sm:$0xff] }
  0xe2   : > { %v617_v44 = vmul.f32 0.17677669, %v602_v38  ;;  %v615_v45 = vmul.f32 0.17677669, %v515_v39  ;;  %v634_v52 = vadd.f32 %v626_v46, %v618_v37  ;;  %v632_v53 = vadd.f32 %v624_v47, %v616_v43  ;;  %1245 = vmatprep.subr.mxu1 %v257_v34  ;;  %v261_v37 = vld [vmem:[%s1450_s18 + $0x38] sm:$0xff] }
  0xe3   : > { %643 = vmax.xlane.f32.xlu0 %v642_v40  ;;  %1246 = vmatpush3.msra.mxu1 %v257_v34 }
  0xe4   : > { %v633_v48 = vadd.f32 %v625_v41, %v617_v44  ;;  %v631_v49 = vadd.f32 %v623_v42, %v615_v45  ;;  %v657_v54 = vsel %vm635_vm1, %v634_v52, -inf  ;;  %v651_v55 = vsel %vm635_vm1, %v632_v53, -inf  ;;  %1247 = vmatprep.subr.mxu1 %v256_v35 }
  0xe5   : > { %1248 = vmatpush3.msra.mxu1 %v256_v35 }
  0xe6   : > { %v654_v50 = vsel %vm635_vm1, %v633_v48, -inf  ;;  %v648_v51 = vsel %vm635_vm1, %v631_v49, -inf  ;;  %1259 = vmatprep.subr.mxu1 %v261_v37 }
  0xe7   : > { %655 = vmax.xlane.f32.xlu1 %v654_v50  ;;  %649 = vmax.xlane.f32.xlu0 %v648_v51 }
  0xeb   : > { %658 = vmax.xlane.f32.xlu1 %v657_v54  ;;  %652 = vmax.xlane.f32.xlu0 %v651_v55 }
 0x166   : > { %v641_v56 = vpop.xlane.xlu1 %640 }
 0x167   : > { %v661_v57 = vsub.f32 %v628_v27, %v641_v56  ;;  %v260_v56 = vld [vmem:[%s1450_s18 + $0x30] sm:$0xff] }
 0x168   : > { %v638_v58 = vpop.xlane.xlu0 %637 }
 0x169   : > { %v670_v59 = vmul.f32 1.442695, %v661_v57  ;;  %v660_v60 = vsub.f32 %v627_v31, %v638_v58 }
 0x16a   : > { %v647_v61 = vpop.xlane.xlu1 %646 }
 0x16b   : > { %1274 = vpow2.f32 %v670_v59  ;;  %v668_v62 = vmul.f32 1.442695, %v660_v60  ;;  %v663_v63 = vsub.f32 %v630_v28, %v647_v61 }
 0x16c   : > { %v644_v0 = vpop.xlane.xlu0 %643 }
 0x16d   : > { %1276 = vpow2.f32 %v668_v62  ;;  %v674_v1 = vmul.f32 1.442695, %v663_v63  ;;  %v662_v2 = vsub.f32 %v629_v32, %v644_v0  ;;  %v255_v32 = vld [vmem:[%s1450_s18 + $0x8] sm:$0xff] }
 0x16e   : > { %1238 = vmatprep.subr.mxu0 %v255_v32 }
 0x16f   : > { %1278 = vpow2.f32 %v674_v1  ;;  %v672_v3 = vmul.f32 1.442695, %v662_v2  ;;  %1239 = vmatpush3.msra.mxu0 %v255_v32 }
 0x170   : > { %v656_v4 = vpop.xlane.xlu1 %655  ;;  %v650_v5 = vpop.xlane.xlu0 %649  ;;  %1240 = vmatprep.subr.mxu0 %v254_v33 }
 0x171   : > { %1280 = vpow2.f32 %v672_v3  ;;  %v666_v6 = vsub.f32 %v633_v48, %v656_v4  ;;  %v664_v7 = vsub.f32 %v631_v49, %v650_v5  ;;  %1241 = vmatpush3.msra.mxu0 %v254_v33 }
 0x172   : > { %1252 = vmatprep.subr.mxu0 %v259_v36 }
 0x173   : > { %v680_v8 = vmul.f32 1.442695, %v666_v6  ;;  %v676_v9 = vmul.f32 1.442695, %v664_v7 }
 0x174   : > { %v659_v10 = vpop.xlane.xlu1 %658  ;;  %v653_v11 = vpop.xlane.xlu0 %652 }
 0x175   : > { %1282 = vpow2.f32 %v680_v8  ;;  %v667_v12 = vsub.f32 %v634_v52, %v659_v10  ;;  %v665_v13 = vsub.f32 %v632_v53, %v653_v11  ;;  %v258_v52 = vld [vmem:[%s1450_s18 + $0x20] sm:$0xff] }
 0x176   : > { %1284 = vpow2.f32 %v676_v9 }
 0x177   : > { %v682_v14 = vmul.f32 1.442695, %v667_v12  ;;  %v678_v15 = vmul.f32 1.442695, %v665_v13 }
 0x178   : > { %v1423_v16 = vpop.eup %1274 }
 0x179   : > { %1286 = vpow2.f32 %v682_v14  ;;  %v687_v17 = vsel %vm635_vm1, %v1423_v16, 0.0 }
 0x17a   : > { %v1277_v18 = vpop.eup %1276  ;;  %1288 = vpow2.f32 %v678_v15  ;;  %688 = vadd.xlane.f32.xlu0 %v687_v17 }
 0x17b   : > { %v684_v21 = vsel %vm635_vm1, %v1277_v18, 0.0 }
 0x17c   : > { %v1427_v19 = vpop.eup %1278 }
 0x17d   : > { %v693_v20 = vsel %vm635_vm1, %v1427_v19, 0.0 }
 0x17e   : > { %v1281_v22 = vpop.eup %1280  ;;  %694 = vadd.xlane.f32.xlu1 %v693_v20  ;;  %685 = vadd.xlane.f32.xlu0 %v684_v21 }
 0x17f   : > { %v690_v23 = vsel %vm635_vm1, %v1281_v22, 0.0 }
 0x182   : > { %v1433_v24 = vpop.eup %1282  ;;  %691 = vadd.xlane.f32.xlu1 %v690_v23 }
 0x183   : > { %v1285_v25 = vpop.eup %1284  ;;  %v702_v27 = vsel %vm635_vm1, %v1433_v24, 0.0 }
 0x184   : > { %v696_v26 = vsel %vm635_vm1, %v1285_v25, 0.0 }
 0x185   : > { %697 = vadd.xlane.f32.xlu0 %v696_v26 }
 0x186   : > { %v1438_v28 = vpop.eup %1286  ;;  %703 = vadd.xlane.f32.xlu1 %v702_v27 }
 0x187   : > { %v1440_v29 = vpop.eup %1288  ;;  %v705_v31 = vsel %vm635_vm1, %v1438_v28, 0.0 }
 0x188   : > { %v699_v30 = vsel %vm635_vm1, %v1440_v29, 0.0 }
 0x189   : > { %700 = vadd.xlane.f32.xlu0 %v699_v30 }
 0x18a   : > { %706 = vadd.xlane.f32.xlu1 %v705_v31 }
 0x203   : > { %v689_v38 = vpop.xlane.xlu0 %688 }
 0x204   : > { %1290 = vrcp.f32 %v689_v38 }
 0x207   : > { %v695_v39 = vpop.xlane.xlu1 %694  ;;  %v686_v40 = vpop.xlane.xlu0 %685 }
 0x208   : > { %1292 = vrcp.f32 %v686_v40 }
 0x209   : > { %1294 = vrcp.f32 %v695_v39 }
 0x20b   : > { %v692_v41 = vpop.xlane.xlu1 %691 }
 0x20c   : > { %1296 = vrcp.f32 %v692_v41 }
 0x20e   : > { %v698_v42 = vpop.xlane.xlu0 %697 }
 0x20f   : > { %1298 = vrcp.f32 %v698_v42  ;;  %v704_v43 = vpop.xlane.xlu1 %703 }
 0x210   : > { %1300 = vrcp.f32 %v704_v43 }
 0x211   : > { %v1291_v46 = vpop.eup %1290 }
 0x212   : > { %v701_v44 = vpop.xlane.xlu0 %700  ;;  %v711_v50 = vmul.f32 %v1291_v46, %v1423_v16 }
 0x213   : > { %1302 = vrcp.f32 %v701_v44  ;;  %v707_v45 = vpop.xlane.xlu1 %706 }
 0x214   : > { %1304 = vrcp.f32 %v707_v45 }
 0x215   : > { %v1293_v47 = vpop.eup %1292 }
 0x216   : > { %v709_v48 = vmul.f32 %v1293_v47, %v1277_v18  ;;  %v1295_v49 = vpop.eup %1294 }
 0x217   : > { %v715_v54 = vmul.f32 %v1295_v49, %v1427_v19 }
 0x218   : > { %1242 = vmatprep.mubr.msk.f32.mxu0 %vm635_vm1, %v709_v48 }
 0x219   : > { %v1297_v51 = vpop.eup %1296  ;;  %1243 = vmatmul.mubr.msk.f32.vlgmr.msra.gmra.mxu0 %vm635_vm1, %v711_v50 }
 0x21a   : > { %v713_v53 = vmul.f32 %v1297_v51, %v1281_v22  ;;  %1253 = vmatpush3.msra.mxu0 %v259_v36 }
 0x21b   : > { %1254 = vmatprep.subr.mxu0 %v258_v52 }
 0x21c   : > { %v1299_v55 = vpop.eup %1298  ;;  %1249 = vmatprep.mubr.msk.f32.mxu1 %vm635_vm1, %v713_v53  ;;  %1255 = vmatpush3.msra.mxu0 %v258_v52 }
 0x21d   : > { %v1301_v57 = vpop.eup %1300  ;;  %1250 = vmatmul.mubr.msk.f32.vlgmr.msra.gmra.mxu1 %vm635_vm1, %v715_v54  ;;  %v717_v58 = vmul.f32 %v1299_v55, %v1285_v25 }
 0x21e   : > { %1260 = vmatpush3.msra.mxu1 %v261_v37  ;;  %v721_v59 = vmul.f32 %v1301_v57, %v1433_v24 }
 0x21f   : > { %1256 = vmatprep.mubr.msk.f32.mxu0 %vm635_vm1, %v717_v58  ;;  %1261 = vmatprep.subr.mxu1 %v260_v56 }
 0x220   : > { %v1303_v60 = vpop.eup %1302  ;;  %1263 = vmatprep.mubr.msk.f32.mxu1 %vm635_vm1, %v721_v59  ;;  %1262 = vmatpush3.msra.mxu1 %v260_v56 }
 0x221   : > { %v1305_v61 = vpop.eup %1304  ;;  %v719_v62 = vmul.f32 %v1303_v60, %v1440_v29 }
 0x222   : > { %v723_v63 = vmul.f32 %v1305_v61, %v1438_v28 }
 0x223   : > { %1257 = vmatmul.mubr.msk.f32.vlgmr.msra.gmra.mxu0 %vm635_vm1, %v719_v62 }
 0x224   : > { %1264 = vmatmul.mubr.msk.f32.vlgmr.msra.gmra.mxu1 %vm635_vm1, %v723_v63 }
 0x2d9   : > { %v1244_v0 = vpop.f32.mrf.mxu0 }
 0x2da   : > { %1049 = vst.msk [vmem:[%s237_s21 + $0x8] sm:$0xff] %vm262_vm0, %v1244_v0 }
 0x2db   : > { %v796_v1 = vpop.f32.mrf.mxu0 }
 0x2dc   : > { %1048 = vst.msk [vmem:[%s237_s21] sm:$0xff] %vm262_vm0, %v796_v1 }
 0x2dd   : > { %v1251_v2 = vpop.f32.mrf.mxu1 }
 0x2de   : > { %1051 = vst.msk [vmem:[%s237_s21 + $0x18] sm:$0xff] %vm262_vm0, %v1251_v2 }
 0x2df   : > { %v877_v3 = vpop.f32.mrf.mxu1 }
 0x2e0   : > { %1050 = vst.msk [vmem:[%s237_s21 + $0x10] sm:$0xff] %vm262_vm0, %v877_v3 }
 0x2e3   : > { %v1258_v4 = vpop.f32.mrf.mxu0 }
 0x2e4   : > { %1053 = vst.msk [vmem:[%s237_s21 + $0x28] sm:$0xff] %vm262_vm0, %v1258_v4  ;;  %v1265_v5 = vpop.f32.mrf.mxu1 }
 0x2e5   : > { %v958_v6 = vpop.f32.mrf.mxu0  ;;  %1055 = vst.msk [vmem:[%s237_s21 + $0x38] sm:$0xff] %vm262_vm0, %v1265_v5 }
 0x2e6   : > { %1052 = vst.msk [vmem:[%s237_s21 + $0x20] sm:$0xff] %vm262_vm0, %v958_v6  ;;  %v1039_v7 = vpop.f32.mrf.mxu1 }
 0x2e7   : > { %1054 = vst.msk [vmem:[%s237_s21 + $0x30] sm:$0xff] %vm262_vm0, %v1039_v7 }
 0x2e8 PF: > { %s14_s15 = sadd.s32 1, %s1312_s15  }
 0x2e9   : > { %p11_p4 = scmp.ge.s32.totalorder %s14_s15, 10  }
 0x2eb   :  { %13 = sbr.rel (!%p11_p4) target bundleno = 1 (0x1), region = 72 }

// kernel: a_call__.6
= control target key start
LH: loop header
LB: loop body
LE: loop exit
PB: predicated region body
PF: predicated region fallthrough
CT: control target
= control target key end

     0   :  { %s612_s1 = inlined_call_operand.vmem [shape: f32[128,128], index: 1, kind: input, shape index: {}]   ;;  %s613_s0 = inlined_call_operand.vmem [shape: f32[128,128], index: 0, kind: input, shape index: {}]   ;;  %s614_s2 = inlined_call_operand.vmem [shape: f32[1,128], index: 2, kind: input, shape index: {}]   ;;  %s615_s3 = inlined_call_operand.vmem [shape: f32[128,128], index: 3, kind: input, shape index: {}]   ;;  %s616_s4 = inlined_call_operand.vmem [shape: f32[128,128], index: 4, kind: output, shape index: {}]  }
   0x1   :  { %v48_v0 = vld [vmem:[%s612_s1 + $0x78] sm:$0xff]  ;;  %v47_v1 = vld [vmem:[%s612_s1 + $0x70] sm:$0xff]  ;;  %v46_v2 = vld [vmem:[%s612_s1 + $0x68] sm:$0xff] }
   0x2   :  { %286 = vmatprep.subr.mxu0 %v48_v0  ;;  %342 = vmatprep.subr.mxu1 %v48_v0  ;;  %v45_v3 = vld [vmem:[%s612_s1 + $0x60] sm:$0xff]  ;;  %v44_v4 = vld [vmem:[%s612_s1 + $0x58] sm:$0xff]  ;;  %v43_v5 = vld [vmem:[%s612_s1 + $0x50] sm:$0xff] }
   0x3   :  { %287 = vmatpush3.msra.mxu0 %v48_v0  ;;  %358 = vmatpush3.msra.mxu1 %v48_v0  ;;  %v42_v6 = vld [vmem:[%s612_s1 + $0x48] sm:$0xff]  ;;  %v41_v7 = vld [vmem:[%s612_s1 + $0x40] sm:$0xff]  ;;  %v40_v8 = vld [vmem:[%s612_s1 + $0x38] sm:$0xff] }
   0x4   :  { %288 = vmatprep.subr.mxu0 %v47_v1  ;;  %343 = vmatprep.subr.mxu1 %v47_v1  ;;  %v39_v9 = vld [vmem:[%s612_s1 + $0x30] sm:$0xff]  ;;  %v38_v10 = vld [vmem:[%s612_s1 + $0x28] sm:$0xff]  ;;  %v37_v11 = vld [vmem:[%s612_s1 + $0x20] sm:$0xff] }
   0x5   :  { %289 = vmatpush3.msra.mxu0 %v47_v1  ;;  %359 = vmatpush3.msra.mxu1 %v47_v1  ;;  %v36_v12 = vld [vmem:[%s612_s1 + $0x18] sm:$0xff]  ;;  %v35_v13 = vld [vmem:[%s612_s1 + $0x10] sm:$0xff]  ;;  %v34_v14 = vld [vmem:[%s612_s1 + $0x8] sm:$0xff] }
   0x6   :  { %290 = vmatprep.subr.mxu0 %v46_v2  ;;  %344 = vmatprep.subr.mxu1 %v46_v2  ;;  %v33_v15 = vld [vmem:[%s612_s1] sm:$0xff]  ;;  %v18_v18 = vld [vmem:[%s613_s0 + $0x8] sm:$0xff]  ;;  %v19_v20 = vld [vmem:[%s613_s0 + $0x10] sm:$0xff] }
   0x7   :  { %291 = vmatpush3.msra.mxu0 %v46_v2  ;;  %360 = vmatpush3.msra.mxu1 %v46_v2  ;;  %v17_v16 = vld [vmem:[%s613_s0] sm:$0xff]  ;;  %v26_v19 = vld [vmem:[%s613_s0 + $0x48] sm:$0xff]  ;;  %v27_v21 = vld [vmem:[%s613_s0 + $0x50] sm:$0xff] }
   0x8   :  { %292 = vmatprep.subr.mxu0 %v45_v3  ;;  %345 = vmatprep.subr.mxu1 %v45_v3  ;;  %v25_v17 = vld [vmem:[%s613_s0 + $0x40] sm:$0xff]  ;;  %v20_v22 = vld [vmem:[%s613_s0 + $0x18] sm:$0xff]  ;;  %v22_v26 = vld [vmem:[%s613_s0 + $0x28] sm:$0xff] }
   0x9   :  { %293 = vmatpush3.msra.mxu0 %v45_v3  ;;  %361 = vmatpush3.msra.mxu1 %v45_v3  ;;  %v28_v23 = vld [vmem:[%s613_s0 + $0x58] sm:$0xff]  ;;  %v21_v24 = vld [vmem:[%s613_s0 + $0x20] sm:$0xff]  ;;  %v30_v27 = vld [vmem:[%s613_s0 + $0x68] sm:$0xff] }
   0xa   :  { %294 = vmatprep.subr.mxu0 %v44_v4  ;;  %346 = vmatprep.subr.mxu1 %v44_v4  ;;  %v29_v25 = vld [vmem:[%s613_s0 + $0x60] sm:$0xff]  ;;  %v23_v28 = vld [vmem:[%s613_s0 + $0x30] sm:$0xff]  ;;  %v24_v30 = vld [vmem:[%s613_s0 + $0x38] sm:$0xff] }
   0xb   :  { %295 = vmatpush3.msra.mxu0 %v44_v4  ;;  %362 = vmatpush3.msra.mxu1 %v44_v4  ;;  %v31_v29 = vld [vmem:[%s613_s0 + $0x70] sm:$0xff]  ;;  %v32_v31 = vld [vmem:[%s613_s0 + $0x78] sm:$0xff]  ;;  %v498_v32 = vld [vmem:[%s614_s2] ss:$0 sm:$0xff] }
   0xc   :  { %296 = vmatprep.subr.mxu0 %v43_v5  ;;  %347 = vmatprep.subr.mxu1 %v43_v5  ;;  %v202_v34 = vld [vmem:[%s615_s3 + $0x8] sm:$0xff]  ;;  %v201_v40 = vld [vmem:[%s615_s3] sm:$0xff]  ;;  %v204_v48 = vld [vmem:[%s615_s3 + $0x18] sm:$0xff] }
   0xd   :  { %297 = vmatpush3.msra.mxu0 %v43_v5  ;;  %363 = vmatpush3.msra.mxu1 %v43_v5  ;;  %v210_v36 = vld [vmem:[%s615_s3 + $0x48] sm:$0xff]  ;;  %v209_v42 = vld [vmem:[%s615_s3 + $0x40] sm:$0xff]  ;;  %v212_v50 = vld [vmem:[%s615_s3 + $0x58] sm:$0xff] }
   0xe   :  { %298 = vmatprep.subr.mxu0 %v42_v6  ;;  %348 = vmatprep.subr.mxu1 %v42_v6  ;;  %v203_v56 = vld [vmem:[%s615_s3 + $0x10] sm:$0xff]  ;;  %v206_v0 = vld [vmem:[%s615_s3 + $0x28] sm:$0xff] }
   0xf   :  { %299 = vmatpush3.msra.mxu0 %v42_v6  ;;  %364 = vmatpush3.msra.mxu1 %v42_v6  ;;  %v211_v58 = vld [vmem:[%s615_s3 + $0x50] sm:$0xff]  ;;  %v214_v2 = vld [vmem:[%s615_s3 + $0x68] sm:$0xff] }
  0x10   :  { %300 = vmatprep.subr.mxu0 %v41_v7  ;;  %349 = vmatprep.subr.mxu1 %v41_v7 }
  0x11   :  { %301 = vmatpush3.msra.mxu0 %v41_v7  ;;  %365 = vmatpush3.msra.mxu1 %v41_v7 }
  0x12   :  { %302 = vmatprep.subr.mxu0 %v40_v8  ;;  %350 = vmatprep.subr.mxu1 %v40_v8 }
  0x13   :  { %303 = vmatpush3.msra.mxu0 %v40_v8  ;;  %366 = vmatpush3.msra.mxu1 %v40_v8  ;;  %v205_v8 = vld [vmem:[%s615_s3 + $0x20] sm:$0xff] }
  0x14   :  { %304 = vmatprep.subr.mxu0 %v39_v9  ;;  %351 = vmatprep.subr.mxu1 %v39_v9 }
  0x15   :  { %305 = vmatpush3.msra.mxu0 %v39_v9  ;;  %367 = vmatpush3.msra.mxu1 %v39_v9 }
  0x16   :  { %306 = vmatprep.subr.mxu0 %v38_v10  ;;  %352 = vmatprep.subr.mxu1 %v38_v10 }
  0x17   :  { %307 = vmatpush3.msra.mxu0 %v38_v10  ;;  %368 = vmatpush3.msra.mxu1 %v38_v10  ;;  %v213_v10 = vld [vmem:[%s615_s3 + $0x60] sm:$0xff] }
  0x18   :  { %308 = vmatprep.subr.mxu0 %v37_v11  ;;  %353 = vmatprep.subr.mxu1 %v37_v11 }
  0x19   :  { %309 = vmatpush3.msra.mxu0 %v37_v11  ;;  %369 = vmatpush3.msra.mxu1 %v37_v11 }
  0x1a   :  { %310 = vmatprep.subr.mxu0 %v36_v12  ;;  %354 = vmatprep.subr.mxu1 %v36_v12 }
  0x1b   :  { %311 = vmatpush3.msra.mxu0 %v36_v12  ;;  %370 = vmatpush3.msra.mxu1 %v36_v12 }
  0x1c   :  { %312 = vmatprep.subr.mxu0 %v35_v13  ;;  %355 = vmatprep.subr.mxu1 %v35_v13 }
  0x1d   :  { %313 = vmatpush3.msra.mxu0 %v35_v13  ;;  %371 = vmatpush3.msra.mxu1 %v35_v13 }
  0x1e   :  { %314 = vmatprep.subr.mxu0 %v34_v14  ;;  %356 = vmatprep.subr.mxu1 %v34_v14 }
  0x1f   :  { %315 = vmatpush3.msra.mxu0 %v34_v14  ;;  %372 = vmatpush3.msra.mxu1 %v34_v14 }
  0x20   :  { %316 = vmatprep.subr.mxu0 %v33_v15  ;;  %357 = vmatprep.subr.mxu1 %v33_v15 }
  0x21   :  { %317 = vmatpush3.msra.mxu0 %v33_v15  ;;  %373 = vmatpush3.msra.mxu1 %v33_v15 }
  0x22   :  { %318 = vmatprep.mubr.f32.mxu0 %v17_v16  ;;  %330 = vmatprep.mubr.f32.mxu1 %v25_v17  ;;  %v208_v16 = vld [vmem:[%s615_s3 + $0x38] sm:$0xff] }
  0x23   :  { %319 = vmatmul.mubr.f32.vlgmr.msra.gmra.mxu0 %v18_v18  ;;  %331 = vmatmul.mubr.f32.vlgmr.msra.gmra.mxu1 %v26_v19  ;;  %v216_v18 = vld [vmem:[%s615_s3 + $0x78] sm:$0xff] }
  0x24   :  { %321 = vmatprep.mubr.f32.mxu0 %v19_v20  ;;  %333 = vmatprep.mubr.f32.mxu1 %v27_v21 }
  0x27   :  { %322 = vmatmul.mubr.f32.gmra.mxu0 %v20_v22  ;;  %334 = vmatmul.mubr.f32.gmra.mxu1 %v28_v23 }
  0x28   :  { %324 = vmatprep.mubr.f32.mxu0 %v21_v24  ;;  %336 = vmatprep.mubr.f32.mxu1 %v29_v25  ;;  %v207_v24 = vld [vmem:[%s615_s3 + $0x30] sm:$0xff] }
  0x2b   :  { %325 = vmatmul.mubr.f32.gmra.mxu0 %v22_v26  ;;  %337 = vmatmul.mubr.f32.gmra.mxu1 %v30_v27  ;;  %v215_v26 = vld [vmem:[%s615_s3 + $0x70] sm:$0xff] }
  0x2c   :  { %327 = vmatprep.mubr.f32.mxu0 %v23_v28  ;;  %339 = vmatprep.mubr.f32.mxu1 %v31_v29 }
  0x2f   :  { %328 = vmatmul.mubr.f32.gmra.mxu0 %v24_v30  ;;  %340 = vmatmul.mubr.f32.gmra.mxu1 %v32_v31 }
  0xe3   :  { %v320_v33 = vpop.f32.mrf.mxu0  ;;  %v332_v35 = vpop.f32.mrf.mxu1 }
  0xe4   :  { %v128_v37 = vadd.f32 %v320_v33, %v498_v32  ;;  %v168_v38 = vadd.f32 %v332_v35, %v498_v32 }
  0xe5   :  { %v122_v39 = vpop.f32.mrf.mxu0  ;;  %v162_v41 = vpop.f32.mrf.mxu1 }
  0xe6   :  { %v218_v43 = vadd.f32 %v202_v34, %v128_v37  ;;  %v226_v44 = vadd.f32 %v210_v36, %v168_v38  ;;  %v123_v45 = vadd.f32 %v498_v32, %v122_v39  ;;  %v163_v46 = vadd.f32 %v498_v32, %v162_v41 }
  0xe7   :  { %v323_v47 = vpop.f32.mrf.mxu0  ;;  %v335_v49 = vpop.f32.mrf.mxu1 }
  0xe8   :  { %234 = vst [vmem:[%s616_s4 + $0x8] sm:$0xff] %v218_v43  ;;  %242 = vst [vmem:[%s616_s4 + $0x48] sm:$0xff] %v226_v44  ;;  %v217_v51 = vadd.f32 %v201_v40, %v123_v45  ;;  %v225_v52 = vadd.f32 %v209_v42, %v163_v46  ;;  %v138_v53 = vadd.f32 %v323_v47, %v498_v32 }
  0xe9   :  { %v178_v54 = vadd.f32 %v335_v49, %v498_v32  ;;  %v132_v55 = vpop.f32.mrf.mxu0  ;;  %v172_v57 = vpop.f32.mrf.mxu1 }
  0xea   :  { %233 = vst [vmem:[%s616_s4] sm:$0xff] %v217_v51  ;;  %241 = vst [vmem:[%s616_s4 + $0x40] sm:$0xff] %v225_v52  ;;  %v220_v59 = vadd.f32 %v204_v48, %v138_v53  ;;  %v133_v61 = vadd.f32 %v498_v32, %v132_v55  ;;  %v173_v62 = vadd.f32 %v498_v32, %v172_v57 }
  0xeb   :  { %v228_v60 = vadd.f32 %v212_v50, %v178_v54  ;;  %v326_v63 = vpop.f32.mrf.mxu0  ;;  %v338_v1 = vpop.f32.mrf.mxu1 }
  0xec   :  { %236 = vst [vmem:[%s616_s4 + $0x18] sm:$0xff] %v220_v59  ;;  %v219_v3 = vadd.f32 %v203_v56, %v133_v61  ;;  %v227_v4 = vadd.f32 %v211_v58, %v173_v62  ;;  %v148_v5 = vadd.f32 %v326_v63, %v498_v32  ;;  %v188_v6 = vadd.f32 %v338_v1, %v498_v32 }
  0xed   :  { %244 = vst [vmem:[%s616_s4 + $0x58] sm:$0xff] %v228_v60  ;;  %v142_v7 = vpop.f32.mrf.mxu0  ;;  %v182_v9 = vpop.f32.mrf.mxu1 }
  0xee   :  { %235 = vst [vmem:[%s616_s4 + $0x10] sm:$0xff] %v219_v3  ;;  %243 = vst [vmem:[%s616_s4 + $0x50] sm:$0xff] %v227_v4  ;;  %v222_v11 = vadd.f32 %v206_v0, %v148_v5  ;;  %v230_v12 = vadd.f32 %v214_v2, %v188_v6  ;;  %v143_v13 = vadd.f32 %v498_v32, %v142_v7 }
  0xef   :  { %v183_v14 = vadd.f32 %v498_v32, %v182_v9  ;;  %v329_v15 = vpop.f32.mrf.mxu0  ;;  %v341_v17 = vpop.f32.mrf.mxu1 }
  0xf0   :  { %238 = vst [vmem:[%s616_s4 + $0x28] sm:$0xff] %v222_v11  ;;  %246 = vst [vmem:[%s616_s4 + $0x68] sm:$0xff] %v230_v12  ;;  %v221_v19 = vadd.f32 %v205_v8, %v143_v13  ;;  %v158_v21 = vadd.f32 %v329_v15, %v498_v32  ;;  %v198_v22 = vadd.f32 %v341_v17, %v498_v32 }
  0xf1   :  { %v229_v20 = vadd.f32 %v213_v10, %v183_v14  ;;  %v152_v23 = vpop.f32.mrf.mxu0  ;;  %v192_v25 = vpop.f32.mrf.mxu1 }
  0xf2   :  { %237 = vst [vmem:[%s616_s4 + $0x20] sm:$0xff] %v221_v19  ;;  %v224_v27 = vadd.f32 %v208_v16, %v158_v21  ;;  %v232_v28 = vadd.f32 %v216_v18, %v198_v22  ;;  %v153_v29 = vadd.f32 %v498_v32, %v152_v23  ;;  %v193_v30 = vadd.f32 %v498_v32, %v192_v25 }
  0xf3   :  { %245 = vst [vmem:[%s616_s4 + $0x60] sm:$0xff] %v229_v20 }
  0xf4   :  { %240 = vst [vmem:[%s616_s4 + $0x38] sm:$0xff] %v224_v27  ;;  %248 = vst [vmem:[%s616_s4 + $0x78] sm:$0xff] %v232_v28  ;;  %v223_v31 = vadd.f32 %v207_v24, %v153_v29  ;;  %v231_v33 = vadd.f32 %v215_v26, %v193_v30 }
  0xf6   :  { %239 = vst [vmem:[%s616_s4 + $0x30] sm:$0xff] %v223_v31  ;;  %247 = vst [vmem:[%s616_s4 + $0x70] sm:$0xff] %v231_v33 }

// kernel: a_call__.7
= control target key start
LH: loop header
LB: loop body
LE: loop exit
PB: predicated region body
PF: predicated region fallthrough
CT: control target
= control target key end

     0   :  { %s2024_s0 = inlined_call_operand.vmem [shape: f32[128,128], index: 0, kind: input, shape index: {}]   ;;  %s2025_s1 = inlined_call_operand.vmem [shape: f32[1,128], index: 1, kind: input, shape index: {}]   ;;  %s2026_s2 = inlined_call_operand.vmem [shape: f32[1,128], index: 2, kind: input, shape index: {}]   ;;  %s2027_s3 = inlined_call_operand.vmem [shape: f32[128,256], index: 3, kind: input, shape index: {}]   ;;  %s2028_s4 = inlined_call_operand.vmem [shape: f32[1,256], index: 4, kind: input, shape index: {}]   ;;  %s2029_s5 = inlined_call_operand.vmem [shape: f32[256,128], index: 5, kind: input, shape index: {}]   ;;  %s2030_s6 = inlined_call_operand.vmem [shape: f32[1,128], index: 6, kind: input, shape index: {}]   ;;  %s2031_s7 = inlined_call_operand.hbm [shape: f32[128,128], index: 7, kind: output, shape index: {}]  }
   0x1   :  { %v27_v0 = vld [vmem:[%s2024_s0] sm:$0xff]  ;;  %v29_v1 = vld [vmem:[%s2024_s0 + $0x10] sm:$0xff]  ;;  %v28_v2 = vld [vmem:[%s2024_s0 + $0x8] sm:$0xff] }
   0x2   :  { %43 = vadd.xlane.f32.xlu0 %v27_v0  ;;  %47 = vadd.xlane.f32.xlu1 %v29_v1  ;;  %v30_v3 = vld [vmem:[%s2024_s0 + $0x18] sm:$0xff] }
   0x6   :  { %45 = vadd.xlane.f32.xlu0 %v28_v2  ;;  %49 = vadd.xlane.f32.xlu1 %v30_v3 }
   0x7   :  { %12 = vsyncpa [#allocation3], 0  ;;  %v31_v4 = vld [vmem:[%s2024_s0 + $0x20] sm:$0xff]  ;;  %v32_v5 = vld [vmem:[%s2024_s0 + $0x28] sm:$0xff]  ;;  %s1213_s21 = smov [#allocation2]  }
   0x8   :  { %v1277_v6 = vld [vmem:[%s2024_s0 + $0x30] sm:$0xff]  ;;  %v1282_v7 = vld [vmem:[%s2024_s0 + $0x38] sm:$0xff]  ;;  %v1289_v8 = vld [vmem:[%s2024_s0 + $0x40] sm:$0xff]  ;;  %s980_s22 = sshll.u32 %s1213_s21, 4  ;;  %s981_s22 = int_to_ptr.vmem [resolvable:$true] %s980_s22 }
   0x9   :  { %v1294_v9 = vld [vmem:[%s2024_s0 + $0x48] sm:$0xff]  ;;  %v1301_v10 = vld [vmem:[%s2024_s0 + $0x50] sm:$0xff]  ;;  %v1306_v11 = vld [vmem:[%s2024_s0 + $0x58] sm:$0xff]  ;;  %s1190_s24 = scalar_lea.vmem %s981_s22, 2048  ;;  %p1195_p1 = scmp.lt.s32.totalorder %s981_s22, %s981_s22 }
   0xa   :  { %51 = vadd.xlane.f32.xlu0 %v31_v4  ;;  %53 = vadd.xlane.f32.xlu1 %v32_v5  ;;  %v1313_v12 = vld [vmem:[%s2024_s0 + $0x60] sm:$0xff]  ;;  %v1318_v13 = vld [vmem:[%s2024_s0 + $0x68] sm:$0xff]  ;;  %v1325_v14 = vld [vmem:[%s2024_s0 + $0x70] sm:$0xff]  ;;  %p1191_p0 = scmp.ne.s32.totalorder %s981_s22, %s1190_s24  ;;  %p1196_p2 = scmp.lt.s32.totalorder %s1190_s24, %s1190_s24 }
   0xb   :  { %v1330_v15 = vld [vmem:[%s2024_s0 + $0x78] sm:$0xff]  ;;  %v296_v17 = vld [vmem:[%s2027_s3 + $0xf0] sm:$0xff]  ;;  %v295_v18 = vld [vmem:[%s2027_s3 + $0xe8] sm:$0xff] }
   0xc   :  { %v297_v16 = vld [vmem:[%s2027_s3 + $0xf8] sm:$0xff]  ;;  %v294_v19 = vld [vmem:[%s2027_s3 + $0xe0] sm:$0xff]  ;;  %v292_v21 = vld [vmem:[%s2027_s3 + $0xd0] sm:$0xff]  ;;  %p1197_p3 = por %p1196_p2, %p1195_p1 }
   0xd   :  { %310 = vmatprep.subr.mxu0 %v297_v16  ;;  %v293_v20 = vld [vmem:[%s2027_s3 + $0xd8] sm:$0xff]  ;;  %v291_v22 = vld [vmem:[%s2027_s3 + $0xc8] sm:$0xff]  ;;  %v290_v23 = vld [vmem:[%s2027_s3 + $0xc0] sm:$0xff] }
   0xe   :  { %55 = vadd.xlane.f32.xlu0 %v1277_v6  ;;  %57 = vadd.xlane.f32.xlu1 %v1282_v7  ;;  %v289_v56 = vld [vmem:[%s2027_s3 + $0xb8] sm:$0xff]  ;;  %v288_v60 = vld [vmem:[%s2027_s3 + $0xb0] sm:$0xff]  ;;  %v287_v61 = vld [vmem:[%s2027_s3 + $0xa8] sm:$0xff]  ;;  %p1198_p4 = pnand %p1197_p3, %p1191_p0 }
   0xf   :  { %311 = vmatpush1.msra.mxu0 %v296_v17 }
  0x10   :  { %312 = vmatprep.subr.mxu0 %v295_v18  ;;  %v283_v18 = vld [vmem:[%s2027_s3 + $0x88] sm:$0xff] }
  0x11   :  { %313 = vmatpush1.msra.mxu0 %v294_v19 }
  0x12   :  { %59 = vadd.xlane.f32.xlu0 %v1289_v8  ;;  %61 = vadd.xlane.f32.xlu1 %v1294_v9 }
  0x13   :  { %314 = vmatprep.subr.mxu0 %v293_v20 }
  0x14   :  { %315 = vmatpush1.msra.mxu0 %v292_v21 }
  0x15   :  { %316 = vmatprep.subr.mxu0 %v291_v22 }
  0x16   :  { %63 = vadd.xlane.f32.xlu0 %v1301_v10  ;;  %65 = vadd.xlane.f32.xlu1 %v1306_v11 }
  0x17   :  { %317 = vmatpush1.msra.mxu0 %v290_v23  ;;  %v281_v23 = vld [vmem:[%s2027_s3 + $0x78] sm:$0xff] }
  0x18   :  { %318 = vmatprep.subr.mxu0 %v289_v56  ;;  %v266_v56 = vld [vmem:[%s2027_s3] sm:$0xff] }
  0x19   :  { %319 = vmatpush1.msra.mxu0 %v288_v60 }
  0x1a   :  { %67 = vadd.xlane.f32.xlu0 %v1313_v12  ;;  %69 = vadd.xlane.f32.xlu1 %v1318_v13 }
  0x1b   :  { %320 = vmatprep.subr.mxu0 %v287_v61 }
  0x1e   :  { %71 = vadd.xlane.f32.xlu0 %v1325_v14  ;;  %73 = vadd.xlane.f32.xlu1 %v1330_v15 }
  0x8b   :  { %v44_v24 = vpop.xlane.xlu0 %43  ;;  %v48_v25 = vpop.xlane.xlu1 %47 }
  0x8c   :  { %v76_v26 = vmul.f32 0.0078125, %v44_v24  ;;  %v78_v27 = vmul.f32 0.0078125, %v48_v25  ;;  %v280_v24 = vld [vmem:[%s2027_s3 + $0x70] sm:$0xff] }
  0x8e   :  { %v1358_v28 = vsub.f32 %v27_v0, %v76_v26  ;;  %v1360_v29 = vsub.f32 %v29_v1, %v78_v27  ;;  %v286_v1 = vld [vmem:[%s2027_s3 + $0xa0] sm:$0xff] }
  0x8f   :  { %v46_v30 = vpop.xlane.xlu0 %45  ;;  %v50_v31 = vpop.xlane.xlu1 %49  ;;  %321 = vmatpush1.msra.mxu0 %v286_v1 }
  0x90   :  { %v77_v32 = vmul.f32 0.0078125, %v46_v30  ;;  %v108_v33 = vmul.f32 %v1358_v28, %v1358_v28  ;;  %v79_v34 = vmul.f32 0.0078125, %v50_v31  ;;  %v110_v37 = vmul.f32 %v1360_v29, %v1360_v29  ;;  %v279_v30 = vld [vmem:[%s2027_s3 + $0x68] sm:$0xff] }
  0x92   :  { %v1364_v35 = vsub.f32 %v28_v2, %v77_v32  ;;  %124 = vadd.xlane.f32.xlu0 %v108_v33  ;;  %v1366_v36 = vsub.f32 %v30_v3, %v79_v34 }
  0x93   :  { %v52_v38 = vpop.xlane.xlu0 %51  ;;  %v54_v39 = vpop.xlane.xlu1 %53 }
  0x94   :  { %v80_v40 = vmul.f32 0.0078125, %v52_v38  ;;  %v109_v41 = vmul.f32 %v1364_v35, %v1364_v35  ;;  %v81_v42 = vmul.f32 0.0078125, %v54_v39  ;;  %v111_v45 = vmul.f32 %v1366_v36, %v1366_v36 }
  0x96   :  { %v1372_v43 = vsub.f32 %v31_v4, %v80_v40  ;;  %128 = vadd.xlane.f32.xlu0 %v110_v37  ;;  %126 = vadd.xlane.f32.xlu1 %v109_v41  ;;  %v1374_v44 = vsub.f32 %v32_v5, %v81_v42  ;;  %v277_v37 = vld [vmem:[%s2027_s3 + $0x58] sm:$0xff]  ;;  %v276_v41 = vld [vmem:[%s2027_s3 + $0x50] sm:$0xff] }
  0x97   :  { %v56_v46 = vpop.xlane.xlu0 %55  ;;  %v58_v47 = vpop.xlane.xlu1 %57 }
  0x98   :  { %v82_v48 = vmul.f32 0.0078125, %v56_v46  ;;  %v112_v49 = vmul.f32 %v1372_v43, %v1372_v43  ;;  %v83_v50 = vmul.f32 0.0078125, %v58_v47  ;;  %v113_v53 = vmul.f32 %v1374_v44, %v1374_v44  ;;  %v273_v46 = vld [vmem:[%s2027_s3 + $0x38] sm:$0xff]  ;;  %v272_v47 = vld [vmem:[%s2027_s3 + $0x30] sm:$0xff] }
  0x9a   :  { %v1381_v51 = vsub.f32 %v1277_v6, %v82_v48  ;;  %130 = vadd.xlane.f32.xlu1 %v111_v45  ;;  %132 = vadd.xlane.f32.xlu0 %v112_v49  ;;  %v1384_v52 = vsub.f32 %v1282_v7, %v83_v50  ;;  %v285_v7 = vld [vmem:[%s2027_s3 + $0x98] sm:$0xff]  ;;  %v271_v48 = vld [vmem:[%s2027_s3 + $0x28] sm:$0xff]  ;;  %v270_v49 = vld [vmem:[%s2027_s3 + $0x20] sm:$0xff] }
  0x9b   :  { %v60_v54 = vpop.xlane.xlu0 %59  ;;  %v62_v55 = vpop.xlane.xlu1 %61  ;;  %322 = vmatprep.subr.mxu0 %v285_v7  ;;  %v269_v50 = vld [vmem:[%s2027_s3 + $0x18] sm:$0xff] }
  0x9c   :  { %v84_v57 = vmul.f32 0.0078125, %v60_v54  ;;  %v114_v58 = vmul.f32 %v1381_v51, %v1381_v51  ;;  %v85_v59 = vmul.f32 0.0078125, %v62_v55  ;;  %v115_v0 = vmul.f32 %v1384_v52, %v1384_v52  ;;  %v267_v54 = vld [vmem:[%s2027_s3 + $0x8] sm:$0xff] }
  0x9d   :  { %v1212_v55 = vmov 0.0  }
  0x9e   :  { %v1400_v62 = vsub.f32 %v1289_v8, %v84_v57  ;;  %134 = vadd.xlane.f32.xlu1 %v113_v53  ;;  %136 = vadd.xlane.f32.xlu0 %v114_v58  ;;  %v1403_v63 = vsub.f32 %v1294_v9, %v85_v59  ;;  %v284_v8 = vld [vmem:[%s2027_s3 + $0x90] sm:$0xff] }
  0x9f   :  { %v64_v2 = vpop.xlane.xlu0 %63  ;;  %v66_v3 = vpop.xlane.xlu1 %65  ;;  %323 = vmatpush1.msra.mxu0 %v284_v8  ;;  %v268_v53 = vld [vmem:[%s2027_s3 + $0x10] sm:$0xff]  ;;  %374 = vmatprep.mubr.f32.mxu0 %v1212_v55 }
  0xa0   :  { %v86_v4 = vmul.f32 0.0078125, %v64_v2  ;;  %v116_v5 = vmul.f32 %v1400_v62, %v1400_v62  ;;  %v87_v6 = vmul.f32 0.0078125, %v66_v3  ;;  %v117_v17 = vmul.f32 %v1403_v63, %v1403_v63  ;;  %324 = vmatprep.subr.mxu0 %v283_v18 }
  0xa2   :  { %v1419_v9 = vsub.f32 %v1301_v10, %v86_v4  ;;  %138 = vadd.xlane.f32.xlu1 %v115_v0  ;;  %140 = vadd.xlane.f32.xlu0 %v116_v5  ;;  %v1422_v16 = vsub.f32 %v1306_v11, %v87_v6  ;;  %v282_v10 = vld [vmem:[%s2027_s3 + $0x80] sm:$0xff] }
  0xa3   :  { %v68_v19 = vpop.xlane.xlu0 %67  ;;  %v70_v20 = vpop.xlane.xlu1 %69  ;;  %325 = vmatpush1.msra.mxu0 %v282_v10 }
  0xa4   :  { %v88_v21 = vmul.f32 0.0078125, %v68_v19  ;;  %v118_v22 = vmul.f32 %v1419_v9, %v1419_v9  ;;  %v89_v11 = vmul.f32 0.0078125, %v70_v20  ;;  %v119_v27 = vmul.f32 %v1422_v16, %v1422_v16  ;;  %326 = vmatprep.subr.mxu0 %v281_v23  ;;  %v1508_v23 = vld [vmem:[%s2025_s1] ss:$0 sm:$0xff] }
  0xa5   :  { %327 = vmatpush1.msra.mxu0 %v280_v24 }
  0xa6   :  { %v1441_v25 = vsub.f32 %v1313_v12, %v88_v21  ;;  %142 = vadd.xlane.f32.xlu1 %v117_v17  ;;  %144 = vadd.xlane.f32.xlu0 %v118_v22  ;;  %v1444_v26 = vsub.f32 %v1318_v13, %v89_v11  ;;  %v278_v13 = vld [vmem:[%s2027_s3 + $0x60] sm:$0xff] }
  0xa7   :  { %v72_v31 = vpop.xlane.xlu0 %71  ;;  %v74_v32 = vpop.xlane.xlu1 %73  ;;  %328 = vmatprep.subr.mxu0 %v279_v30 }
  0xa8   :  { %v90_v33 = vmul.f32 0.0078125, %v72_v31  ;;  %v120_v12 = vmul.f32 %v1441_v25, %v1441_v25  ;;  %v91_v34 = vmul.f32 0.0078125, %v74_v32  ;;  %v121_v40 = vmul.f32 %v1444_v26, %v1444_v26  ;;  %329 = vmatpush1.msra.mxu0 %v278_v13  ;;  %v1514_v32 = vld [vmem:[%s2026_s2] ss:$0 sm:$0xff] }
  0xa9   :  { %330 = vmatprep.subr.mxu0 %v277_v37 }
  0xaa   :  { %v1460_v38 = vsub.f32 %v1325_v14, %v90_v33  ;;  %146 = vadd.xlane.f32.xlu1 %v119_v27  ;;  %148 = vadd.xlane.f32.xlu0 %v120_v12  ;;  %v1463_v39 = vsub.f32 %v1330_v15, %v91_v34  ;;  %v275_v14 = vld [vmem:[%s2027_s3 + $0x48] sm:$0xff]  ;;  %v274_v15 = vld [vmem:[%s2027_s3 + $0x40] sm:$0xff] }
  0xab   :  { %331 = vmatpush1.msra.mxu0 %v276_v41 }
  0xac   :  { %v122_v42 = vmul.f32 %v1460_v38, %v1460_v38  ;;  %v123_v45 = vmul.f32 %v1463_v39, %v1463_v39  ;;  %332 = vmatprep.subr.mxu0 %v275_v14 }
  0xad   :  { %333 = vmatpush1.msra.mxu0 %v274_v15 }
  0xae   :  { %150 = vadd.xlane.f32.xlu1 %v121_v40  ;;  %152 = vadd.xlane.f32.xlu0 %v122_v42 }
  0xaf   :  { %334 = vmatprep.subr.mxu0 %v273_v46 }
  0xb0   :  { %335 = vmatpush1.msra.mxu0 %v272_v47 }
  0xb1   :  { %336 = vmatprep.subr.mxu0 %v271_v48 }
  0xb2   :  { %154 = vadd.xlane.f32.xlu1 %v123_v45  ;;  %337 = vmatpush1.msra.mxu0 %v270_v49 }
  0xb3   :  { %338 = vmatprep.subr.mxu0 %v269_v50 }
  0xb4   :  { %339 = vmatpush1.msra.mxu0 %v268_v53 }
  0xb5   :  { %340 = vmatprep.subr.mxu0 %v267_v54 }
  0xb6   :  { %341 = vmatpush1.msra.mxu0 %v266_v56 }
 0x11b   :  { %v125_v57 = vpop.xlane.xlu0 %124 }
 0x11c   :  { %v156_v58 = vmul.f32 0.0078125, %v125_v57 }
 0x11e   :  { %v172_v59 = vadd.f32 1e-05, %v156_v58 }
 0x11f   :  { %v127_v60 = vpop.xlane.xlu1 %126  ;;  %v129_v61 = vpop.xlane.xlu0 %128 }
 0x120   :  { %1078 = vrsqrt.f32 %v172_v59  ;;  %v157_v0 = vmul.f32 0.0078125, %v127_v60  ;;  %v158_v1 = vmul.f32 0.0078125, %v129_v61 }
 0x122   :  { %v173_v2 = vadd.f32 1e-05, %v157_v0  ;;  %v174_v3 = vadd.f32 1e-05, %v158_v1 }
 0x123   :  { %v131_v4 = vpop.xlane.xlu1 %130  ;;  %v133_v5 = vpop.xlane.xlu0 %132 }
 0x124   :  { %1080 = vrsqrt.f32 %v173_v2  ;;  %v159_v6 = vmul.f32 0.0078125, %v131_v4  ;;  %v160_v7 = vmul.f32 0.0078125, %v133_v5 }
 0x125   :  { %1082 = vrsqrt.f32 %v174_v3 }
 0x126   :  { %v175_v8 = vadd.f32 1e-05, %v159_v6  ;;  %v176_v17 = vadd.f32 1e-05, %v160_v7 }
 0x127   :  { %v135_v18 = vpop.xlane.xlu1 %134  ;;  %v137_v19 = vpop.xlane.xlu0 %136 }
 0x128   :  { %1084 = vrsqrt.f32 %v175_v8  ;;  %v161_v20 = vmul.f32 0.0078125, %v135_v18  ;;  %v162_v21 = vmul.f32 0.0078125, %v137_v19 }
 0x129   :  { %1086 = vrsqrt.f32 %v176_v17 }
 0x12a   :  { %v177_v10 = vadd.f32 1e-05, %v161_v20  ;;  %v178_v24 = vadd.f32 1e-05, %v162_v21 }
 0x12b   :  { %v139_v22 = vpop.xlane.xlu1 %138  ;;  %v141_v30 = vpop.xlane.xlu0 %140 }
 0x12c   :  { %1088 = vrsqrt.f32 %v177_v10  ;;  %v163_v27 = vmul.f32 0.0078125, %v139_v22  ;;  %v164_v34 = vmul.f32 0.0078125, %v141_v30 }
 0x12d   :  { %v1079_v11 = vpop.eup %1078  ;;  %1090 = vrsqrt.f32 %v178_v24 }
 0x12e   :  { %v204_v31 = vmul.f32 %v1079_v11, %v1358_v28  ;;  %v179_v37 = vadd.f32 1e-05, %v163_v27  ;;  %v180_v45 = vadd.f32 1e-05, %v164_v34 }
 0x12f   :  { %v143_v40 = vpop.xlane.xlu1 %142  ;;  %v145_v47 = vpop.xlane.xlu0 %144 }
 0x130   :  { %v227_v33 = vmul.f32 %v1508_v23, %v204_v31  ;;  %v165_v46 = vmul.f32 0.0078125, %v143_v40  ;;  %1092 = vrsqrt.f32 %v179_v37 }
 0x131   :  { %v1081_v12 = vpop.eup %1080  ;;  %1094 = vrsqrt.f32 %v180_v45 }
 0x132   :  { %v1083_v13 = vpop.eup %1082  ;;  %v250_v41 = vadd.f32 %v1514_v32, %v227_v33  ;;  %v205_v42 = vmul.f32 %v1081_v12, %v1364_v35  ;;  %v181_v35 = vadd.f32 1e-05, %v165_v46 }
 0x133   :  { %v206_v14 = vmul.f32 %v1083_v13, %v1360_v29  ;;  %v166_v29 = vmul.f32 0.0078125, %v145_v47  ;;  %v147_v59 = vpop.xlane.xlu1 %146  ;;  %v149_v61 = vpop.xlane.xlu0 %148 }
 0x134   :  { %375 = vmatmul.mubr.f32.vlgmr.msra.gmra.mxu0 %v250_v41  ;;  %v228_v28 = vmul.f32 %v1508_v23, %v205_v42  ;;  %1096 = vrsqrt.f32 %v181_v35  ;;  %v168_v4 = vmul.f32 0.0078125, %v149_v61  ;;  %v772_v61 = vld [vmem:[%s2029_s5 + $0x68] sm:$0xff] }
 0x135   :  { %v1085_v15 = vpop.eup %1084  ;;  %380 = vmatprep.mubr.f32.mxu0 %v1212_v55  ;;  %v229_v49 = vmul.f32 %v1508_v23, %v206_v14  ;;  %v182_v60 = vadd.f32 1e-05, %v166_v29 }
 0x136   :  { %v251_v48 = vadd.f32 %v1514_v32, %v228_v28  ;;  %v207_v50 = vmul.f32 %v1085_v15, %v1366_v36  ;;  %v1087_v53 = vpop.eup %1086  ;;  %v167_v36 = vmul.f32 0.0078125, %v147_v59  ;;  %v184_v18 = vadd.f32 1e-05, %v168_v4  ;;  %v785_v4 = vld [vmem:[%s2029_s5 + $0xd0] sm:$0xff] }
 0x137   :  { %v252_v54 = vadd.f32 %v1514_v32, %v229_v49  ;;  %v208_v57 = vmul.f32 %v1087_v53, %v1372_v43  ;;  %1098 = vrsqrt.f32 %v182_v60  ;;  %v151_v5 = vpop.xlane.xlu1 %150 }
 0x138   :  { %381 = vmatmul.mubr.f32.gmra.mxu0 %v251_v48  ;;  %v230_v56 = vmul.f32 %v1508_v23, %v207_v50  ;;  %v183_v43 = vadd.f32 1e-05, %v167_v36  ;;  %v169_v19 = vmul.f32 0.0078125, %v151_v5  ;;  %v790_v36 = vld [vmem:[%s2029_s5 + $0xf8] sm:$0xff]  ;;  %v784_v5 = vld [vmem:[%s2029_s5 + $0xc8] sm:$0xff] }
 0x139   :  { %386 = vmatprep.mubr.f32.mxu0 %v1212_v55  ;;  %v1089_v58 = vpop.eup %1088  ;;  %v231_v1 = vmul.f32 %v1508_v23, %v208_v57  ;;  %994 = vmatprep.subr.mxu1 %v790_v36 }
 0x13a   :  { %v253_v0 = vadd.f32 %v1514_v32, %v230_v56  ;;  %v209_v2 = vmul.f32 %v1089_v58, %v1374_v44  ;;  %v1091_v3 = vpop.eup %1090  ;;  %1100 = vrsqrt.f32 %v183_v43  ;;  %v153_v44 = vpop.xlane.xlu0 %152  ;;  %v185_v11 = vadd.f32 1e-05, %v169_v19  ;;  %v769_v43 = vld [vmem:[%s2029_s5 + $0x50] sm:$0xff] }
 0x13b   :  { %v254_v6 = vadd.f32 %v1514_v32, %v231_v1  ;;  %v210_v8 = vmul.f32 %v1091_v3, %v1381_v51  ;;  %v170_v24 = vmul.f32 0.0078125, %v153_v44  ;;  %1102 = vrsqrt.f32 %v184_v18  ;;  %v155_v33 = vpop.xlane.xlu1 %154  ;;  %v771_v1 = vld [vmem:[%s2029_s5 + $0x60] sm:$0xff]  ;;  %v770_v3 = vld [vmem:[%s2029_s5 + $0x58] sm:$0xff]  ;;  %v781_v19 = vld [vmem:[%s2029_s5 + $0xb0] sm:$0xff] }
 0x13c   :  { %387 = vmatmul.mubr.f32.gmra.mxu0 %v252_v54  ;;  %v232_v7 = vmul.f32 %v1508_v23, %v209_v2  ;;  %1104 = vrsqrt.f32 %v185_v11  ;;  %v171_v34 = vmul.f32 0.0078125, %v155_v33  ;;  %v786_v2 = vld [vmem:[%s2029_s5 + $0xd8] sm:$0xff]  ;;  %v765_v44 = vld [vmem:[%s2029_s5 + $0x30] sm:$0xff]  ;;  %v775_v33 = vld [vmem:[%s2029_s5 + $0x80] sm:$0xff] }
 0x13d   :  { %392 = vmatprep.mubr.f32.mxu0 %v1212_v55  ;;  %v1093_v17 = vpop.eup %1092  ;;  %v233_v10 = vmul.f32 %v1508_v23, %v210_v8  ;;  %v186_v12 = vadd.f32 1e-05, %v170_v24  ;;  %v767_v8 = vld [vmem:[%s2029_s5 + $0x40] sm:$0xff]  ;;  %v766_v18 = vld [vmem:[%s2029_s5 + $0x38] sm:$0xff] }
 0x13e   :  { %v255_v20 = vadd.f32 %v1514_v32, %v232_v7  ;;  %v211_v21 = vmul.f32 %v1093_v17, %v1384_v52  ;;  %v1095_v22 = vpop.eup %1094  ;;  %v187_v41 = vadd.f32 1e-05, %v171_v34  ;;  %v783_v7 = vld [vmem:[%s2029_s5 + $0xc0] sm:$0xff]  ;;  %v782_v17 = vld [vmem:[%s2029_s5 + $0xb8] sm:$0xff] }
 0x13f   :  { %v256_v27 = vadd.f32 %v1514_v32, %v233_v10  ;;  %v212_v31 = vmul.f32 %v1095_v22, %v1400_v62  ;;  %1106 = vrsqrt.f32 %v186_v12  ;;  %v764_v10 = vld [vmem:[%s2029_s5 + $0x28] sm:$0xff]  ;;  %v763_v22 = vld [vmem:[%s2029_s5 + $0x20] sm:$0xff]  ;;  %v778_v11 = vld [vmem:[%s2029_s5 + $0x98] sm:$0xff] }
 0x140   :  { %393 = vmatmul.mubr.f32.gmra.mxu0 %v253_v0  ;;  %v234_v30 = vmul.f32 %v1508_v23, %v211_v21  ;;  %1108 = vrsqrt.f32 %v187_v41  ;;  %v787_v0 = vld [vmem:[%s2029_s5 + $0xe0] sm:$0xff]  ;;  %v762_v24 = vld [vmem:[%s2029_s5 + $0x18] sm:$0xff] }
 0x141   :  { %398 = vmatprep.mubr.f32.mxu0 %v1212_v55  ;;  %v1097_v51 = vpop.eup %1096  ;;  %v235_v37 = vmul.f32 %v1508_v23, %v212_v31  ;;  %v779_v21 = vld [vmem:[%s2029_s5 + $0xa0] sm:$0xff]  ;;  %v760_v31 = vld [vmem:[%s2029_s5 + $0x8] sm:$0xff] }
 0x142   :  { %v257_v13 = vadd.f32 %v1514_v32, %v234_v30  ;;  %v213_v40 = vmul.f32 %v1097_v51, %v1403_v63  ;;  %v777_v51 = vld [vmem:[%s2029_s5 + $0x90] sm:$0xff]  ;;  %v776_v30 = vld [vmem:[%s2029_s5 + $0x88] sm:$0xff]  ;;  %v759_v12 = vld [vmem:[%s2029_s5] sm:$0xff] }
 0x143   :  { %v258_v62 = vadd.f32 %v1514_v32, %v235_v37  ;;  %v298_v37 = vld [vmem:[%s2028_s4] sm:$0x3] }
 0x144   :  { %399 = vmatmul.mubr.f32.gmra.mxu0 %v254_v6  ;;  %v1099_v52 = vpop.eup %1098  ;;  %v236_v42 = vmul.f32 %v1508_v23, %v213_v40  ;;  %v768_v6 = vld [vmem:[%s2029_s5 + $0x48] sm:$0xff] }
 0x145   :  { %404 = vmatprep.mubr.f32.mxu0 %v1212_v55  ;;  %v214_v14 = vmul.f32 %v1099_v52, %v1419_v9  ;;  %v300_v52 = vlaneseq }
 0x146   :  { %v259_v15 = vadd.f32 %v1514_v32, %v236_v42 }
 0x147   :  { %v1101_v28 = vpop.eup %1100  ;;  %v237_v63 = vmul.f32 %v1508_v23, %v214_v14  ;;  %v301_v34 = vshrl.u32 %v300_v52, 7 }
 0x148   :  { %405 = vmatmul.mubr.f32.gmra.mxu0 %v255_v20  ;;  %v215_v45 = vmul.f32 %v1101_v28, %v1422_v16  ;;  %v1103_v46 = vpop.eup %1102  ;;  %v780_v20 = vld [vmem:[%s2029_s5 + $0xa8] sm:$0xff] }
 0x149   :  { %410 = vmatprep.mubr.f32.mxu0 %v1212_v55  ;;  %v1105_v47 = vpop.eup %1104  ;;  %v260_v48 = vadd.f32 %v1514_v32, %v237_v63  ;;  %v216_v49 = vmul.f32 %v1103_v46, %v1441_v25  ;;  %v306_v40 = vsub.s32 1, %v301_v34 }
 0x14a   :  { %v238_v9 = vmul.f32 %v1508_v23, %v215_v45  ;;  %v217_v16 = vmul.f32 %v1105_v47, %v1444_v26 }
 0x14b   :  { %v239_v35 = vmul.f32 %v1508_v23, %v216_v49 }
 0x14c   :  { %411 = vmatmul.mubr.f32.gmra.mxu0 %v256_v27  ;;  %v1107_v50 = vpop.eup %1106  ;;  %v261_v53 = vadd.f32 %v1514_v32, %v238_v9  ;;  %v240_v54 = vmul.f32 %v1508_v23, %v217_v16  ;;  %v761_v27 = vld [vmem:[%s2029_s5 + $0x10] sm:$0xff] }
 0x14d   :  { %416 = vmatprep.mubr.f32.mxu0 %v1212_v55  ;;  %v262_v29 = vadd.f32 %v1514_v32, %v239_v35  ;;  %v218_v56 = vmul.f32 %v1107_v50, %v1460_v38  ;;  %v1109_v25 = vpop.eup %1108 }
 0x14e   :  { %v263_v57 = vadd.f32 %v1514_v32, %v240_v54  ;;  %v219_v59 = vmul.f32 %v1109_v25, %v1463_v39  ;;  %v774_v39 = vld [vmem:[%s2029_s5 + $0x78] sm:$0xff] }
 0x14f   :  { %v241_v58 = vmul.f32 %v1508_v23, %v218_v56  ;;  %995 = vmatpush3.msra.mxu1 %v774_v39 }
 0x150   :  { %417 = vmatmul.mubr.f32.gmra.mxu0 %v257_v13  ;;  %v242_v60 = vmul.f32 %v1508_v23, %v219_v59  ;;  %v789_v23 = vld [vmem:[%s2029_s5 + $0xf0] sm:$0xff]  ;;  %v302_v13 = vsub.s32 0, %v301_v34 }
 0x151   :  { %422 = vmatprep.mubr.f32.mxu0 %v1212_v55  ;;  %v264_v26 = vadd.f32 %v1514_v32, %v241_v58  ;;  %996 = vmatprep.subr.mxu1 %v789_v23 }
 0x152   :  { %v265_v38 = vadd.f32 %v1514_v32, %v242_v60  ;;  %v788_v32 = vld [vmem:[%s2029_s5 + $0xe8] sm:$0xff]  ;;  %v1677_v41 = vrot.slane %v298_v37, %v302_v13 }
 0x154   :  { %423 = vmatmul.mubr.f32.gmra.mxu0 %v258_v62  ;;  %v1679_v62 = vrot.slane %v298_v37, %v306_v40 }
 0x155   :  { %428 = vmatprep.mubr.f32.mxu0 %v1212_v55 }
 0x158   :  { %429 = vmatmul.mubr.f32.gmra.mxu0 %v259_v15 }
 0x159   :  { %434 = vmatprep.mubr.f32.mxu0 %v1212_v55 }
 0x15c   :  { %435 = vmatmul.mubr.f32.gmra.mxu0 %v260_v48 }
 0x15d   :  { %440 = vmatprep.mubr.f32.mxu0 %v1212_v55 }
 0x160   :  { %441 = vmatmul.mubr.f32.gmra.mxu0 %v261_v53 }
 0x161   :  { %446 = vmatprep.mubr.f32.mxu0 %v1212_v55 }
 0x164   :  { %447 = vmatmul.mubr.f32.gmra.mxu0 %v262_v29 }
 0x165   :  { %452 = vmatprep.mubr.f32.mxu0 %v1212_v55 }
 0x168   :  { %453 = vmatmul.mubr.f32.gmra.mxu0 %v263_v57 }
 0x169   :  { %458 = vmatprep.mubr.f32.mxu0 %v1212_v55 }
 0x16c   :  { %459 = vmatmul.mubr.f32.gmra.mxu0 %v264_v26 }
 0x16d   :  { %464 = vmatprep.mubr.f32.mxu0 %v1212_v55  ;;  %v773_v55 = vld [vmem:[%s2029_s5 + $0x70] sm:$0xff] }
 0x16e   :  { %997 = vmatpush3.msra.mxu1 %v773_v55 }
 0x16f   :  { %998 = vmatprep.subr.mxu1 %v788_v32 }
 0x170   :  { %465 = vmatmul.mubr.f32.gmra.mxu0 %v265_v38  ;;  %999 = vmatpush3.msra.mxu1 %v772_v61 }
 0x171   :  { %1000 = vmatprep.subr.mxu1 %v787_v0 }
 0x172   :  { %1001 = vmatpush3.msra.mxu1 %v771_v1 }
 0x173   :  { %1002 = vmatprep.subr.mxu1 %v786_v2 }
 0x174   :  { %1003 = vmatpush3.msra.mxu1 %v770_v3 }
 0x175   :  { %1004 = vmatprep.subr.mxu1 %v785_v4 }
 0x176   :  { %1005 = vmatpush3.msra.mxu1 %v769_v43 }
 0x177   :  { %1006 = vmatprep.subr.mxu1 %v784_v5 }
 0x178   :  { %1007 = vmatpush3.msra.mxu1 %v768_v6 }
 0x179   :  { %1008 = vmatprep.subr.mxu1 %v783_v7 }
 0x17a   :  { %1009 = vmatpush3.msra.mxu1 %v767_v8 }
 0x17b   :  { %1010 = vmatprep.subr.mxu1 %v782_v17 }
 0x17c   :  { %1011 = vmatpush3.msra.mxu1 %v766_v18 }
 0x17d   :  { %1012 = vmatprep.subr.mxu1 %v781_v19 }
 0x17e   :  { %1013 = vmatpush3.msra.mxu1 %v765_v44 }
 0x17f   :  { %1014 = vmatprep.subr.mxu1 %v780_v20 }
 0x180   :  { %1015 = vmatpush3.msra.mxu1 %v764_v10 }
 0x181   :  { %1016 = vmatprep.subr.mxu1 %v779_v21 }
 0x182   :  { %1017 = vmatpush3.msra.mxu1 %v763_v22 }
 0x183   :  { %1018 = vmatprep.subr.mxu1 %v778_v11 }
 0x184   :  { %1019 = vmatpush3.msra.mxu1 %v762_v24 }
 0x185   :  { %1020 = vmatprep.subr.mxu1 %v777_v51 }
 0x186   :  { %1021 = vmatpush3.msra.mxu1 %v761_v27 }
 0x187   :  { %1022 = vmatprep.subr.mxu1 %v776_v30 }
 0x188   :  { %1023 = vmatpush3.msra.mxu1 %v760_v31 }
 0x189   :  { %1024 = vmatprep.subr.mxu1 %v775_v33 }
 0x18a   :  { %1025 = vmatpush3.msra.mxu1 %v759_v12 }
 0x1f4   :  { %v376_v42 = vpop.f32.mrf.mxu0 }
 0x1f5   :  { %v1682_v14 = vadd.f32 %v376_v42, %v1677_v41 }
 0x1f6   :  { %v378_v28 = vpop.f32.mrf.mxu0 }
 0x1f7   :  { %v503_v15 = vmul.f32 0.044715, %v1682_v14  ;;  %v1686_v63 = vadd.f32 %v378_v28, %v1679_v62 }
 0x1f8   :  { %v382_v45 = vpop.f32.mrf.mxu0 }
 0x1f9   :  { %v535_v46 = vmul.f32 %v503_v15, %v1682_v14  ;;  %v1690_v47 = vadd.f32 %v382_v45, %v1677_v41  ;;  %v504_v48 = vmul.f32 0.044715, %v1686_v63 }
 0x1fa   :  { %v384_v9 = vpop.f32.mrf.mxu0 }
 0x1fb   :  { %v505_v49 = vmul.f32 0.044715, %v1690_v47  ;;  %v1695_v50 = vadd.f32 %v384_v9, %v1679_v62  ;;  %v536_v53 = vmul.f32 %v504_v48, %v1686_v63  ;;  %v567_v35 = vmul.f32 %v535_v46, %v1682_v14 }
 0x1fc   :  { %v388_v16 = vpop.f32.mrf.mxu0 }
 0x1fd   :  { %v537_v29 = vmul.f32 %v505_v49, %v1690_v47  ;;  %v506_v54 = vmul.f32 0.044715, %v1695_v50  ;;  %v1702_v56 = vadd.f32 %v388_v16, %v1677_v41  ;;  %v568_v25 = vmul.f32 %v536_v53, %v1686_v63 }
 0x1fe   :  { %v390_v57 = vpop.f32.mrf.mxu0  ;;  %v599_v58 = vadd.f32 %v567_v35, %v1682_v14  ;;  %v471_v16 = vmul.f32 0.5, %v1682_v14 }
 0x1ff   :  { %v538_v59 = vmul.f32 %v506_v54, %v1695_v50  ;;  %v507_v26 = vmul.f32 0.044715, %v1702_v56  ;;  %v1709_v60 = vadd.f32 %v390_v57, %v1679_v62  ;;  %v600_v38 = vadd.f32 %v568_v25, %v1686_v63 }
 0x200   :  { %v394_v36 = vpop.f32.mrf.mxu0  ;;  %v631_v39 = vmul.f32 0.7978846, %v599_v58  ;;  %v569_v23 = vmul.f32 %v537_v29, %v1690_v47 }
 0x201   :  { %v539_v55 = vmul.f32 %v507_v26, %v1702_v56  ;;  %v508_v32 = vmul.f32 0.044715, %v1709_v60  ;;  %v1716_v61 = vadd.f32 %v394_v36, %v1677_v41  ;;  %v632_v0 = vmul.f32 0.7978846, %v600_v38 }
 0x202   :  { %v396_v1 = vpop.f32.mrf.mxu0  ;;  %1110 = vtanh.f32 %v631_v39  ;;  %v570_v2 = vmul.f32 %v538_v59, %v1695_v50  ;;  %v601_v3 = vadd.f32 %v569_v23, %v1690_v47  ;;  %v472_v36 = vmul.f32 0.5, %v1686_v63 }
 0x203   :  { %v540_v4 = vmul.f32 %v508_v32, %v1709_v60  ;;  %v509_v43 = vmul.f32 0.044715, %v1716_v61  ;;  %v1723_v5 = vadd.f32 %v396_v1, %v1679_v62  ;;  %1112 = vtanh.f32 %v632_v0 }
 0x204   :  { %v400_v6 = vpop.f32.mrf.mxu0  ;;  %v602_v7 = vadd.f32 %v570_v2, %v1695_v50  ;;  %v633_v8 = vmul.f32 0.7978846, %v601_v3  ;;  %v571_v17 = vmul.f32 %v539_v55, %v1702_v56  ;;  %v474_v3 = vmul.f32 0.5, %v1695_v50 }
 0x205   :  { %v541_v18 = vmul.f32 %v509_v43, %v1716_v61  ;;  %v510_v19 = vmul.f32 0.044715, %v1723_v5  ;;  %v1730_v44 = vadd.f32 %v400_v6, %v1677_v41  ;;  %v572_v20 = vmul.f32 %v540_v4, %v1709_v60 }
 0x206   :  { %v402_v10 = vpop.f32.mrf.mxu0  ;;  %v634_v21 = vmul.f32 0.7978846, %v602_v7  ;;  %1114 = vtanh.f32 %v633_v8  ;;  %v603_v22 = vadd.f32 %v571_v17, %v1702_v56  ;;  %v473_v4 = vmul.f32 0.5, %v1690_v47 }
 0x207   :  { %v542_v11 = vmul.f32 %v510_v19, %v1723_v5  ;;  %v511_v24 = vmul.f32 0.044715, %v1730_v44  ;;  %v1737_v51 = vadd.f32 %v402_v10, %v1679_v62  ;;  %v604_v27 = vadd.f32 %v572_v20, %v1709_v60 }
 0x208   :  { %v406_v30 = vpop.f32.mrf.mxu0  ;;  %1116 = vtanh.f32 %v634_v21  ;;  %v635_v31 = vmul.f32 0.7978846, %v603_v22  ;;  %v573_v33 = vmul.f32 %v541_v18, %v1716_v61 }
 0x209   :  { %v543_v12 = vmul.f32 %v511_v24, %v1730_v44  ;;  %v512_v52 = vmul.f32 0.044715, %v1737_v51  ;;  %v1744_v34 = vadd.f32 %v406_v30, %v1677_v41  ;;  %v636_v13 = vmul.f32 0.7978846, %v604_v27 }
 0x20a   :  { %v408_v37 = vpop.f32.mrf.mxu0  ;;  %1118 = vtanh.f32 %v635_v31  ;;  %v574_v40 = vmul.f32 %v542_v11, %v1723_v5  ;;  %v605_v42 = vadd.f32 %v573_v33, %v1716_v61  ;;  %v476_v27 = vmul.f32 0.5, %v1709_v60 }
 0x20b   :  { %v544_v28 = vmul.f32 %v512_v52, %v1737_v51  ;;  %v513_v15 = vmul.f32 0.044715, %v1744_v34  ;;  %v1751_v45 = vadd.f32 %v408_v37, %v1679_v62  ;;  %1120 = vtanh.f32 %v636_v13 }
 0x20c   :  { %v412_v46 = vpop.f32.mrf.mxu0  ;;  %v606_v48 = vadd.f32 %v574_v40, %v1723_v5  ;;  %v637_v9 = vmul.f32 0.7978846, %v605_v42  ;;  %v575_v49 = vmul.f32 %v543_v12, %v1730_v44  ;;  %v475_v30 = vmul.f32 0.5, %v1702_v56 }
 0x20d   :  { %v545_v53 = vmul.f32 %v513_v15, %v1744_v34  ;;  %v514_v35 = vmul.f32 0.044715, %v1751_v45  ;;  %v576_v29 = vmul.f32 %v544_v28, %v1737_v51  ;;  %v1760_v54 = vadd.f32 %v412_v46, %v1677_v41 }
 0x20e   :  { %v414_v25 = vpop.f32.mrf.mxu0  ;;  %v638_v57 = vmul.f32 0.7978846, %v606_v48  ;;  %1122 = vtanh.f32 %v637_v9  ;;  %v607_v58 = vadd.f32 %v575_v49, %v1730_v44  ;;  %v478_v42 = vmul.f32 0.5, %v1723_v5 }
 0x20f   :  { %v1111_v59 = vpop.eup %1110  ;;  %v546_v26 = vmul.f32 %v514_v35, %v1751_v45  ;;  %v1765_v38 = vadd.f32 %v414_v25, %v1679_v62  ;;  %v608_v14 = vadd.f32 %v576_v29, %v1737_v51  ;;  %v577_v0 = vmul.f32 %v545_v53, %v1744_v34 }
 0x210   :  { %v1113_v39 = vpop.eup %1112  ;;  %v418_v23 = vpop.f32.mrf.mxu0  ;;  %v695_v55 = vadd.f32 1.0, %v1111_v59  ;;  %1124 = vtanh.f32 %v638_v57  ;;  %v639_v32 = vmul.f32 0.7978846, %v607_v58  ;;  %v515_v43 = vmul.f32 0.044715, %v1760_v54 }
 0x211   :  { %v516_v1 = vmul.f32 0.044715, %v1765_v38  ;;  %v696_v2 = vadd.f32 1.0, %v1113_v39  ;;  %v640_v63 = vmul.f32 0.7978846, %v608_v14  ;;  %v578_v7 = vmul.f32 %v546_v26, %v1751_v45 }
 0x212   :  { %v420_v6 = vpop.f32.mrf.mxu0  ;;  %1126 = vtanh.f32 %v639_v32  ;;  %v1777_v18 = vadd.f32 %v418_v23, %v1677_v41  ;;  %v727_v10 = vmul.f32 %v695_v55, %v471_v16  ;;  %v609_v21 = vadd.f32 %v577_v0, %v1744_v34 }
 0x213   :  { %v1115_v8 = vpop.eup %1114  ;;  %v548_v17 = vmul.f32 %v516_v1, %v1765_v38  ;;  %v1780_v19 = vadd.f32 %v420_v6, %v1679_v62  ;;  %v728_v20 = vmul.f32 %v696_v2, %v472_v36  ;;  %1128 = vtanh.f32 %v640_v63 }
 0x214   :  { %v424_v50 = vpop.f32.mrf.mxu0  ;;  %v610_v47 = vadd.f32 %v578_v7, %v1751_v45  ;;  %v697_v24 = vadd.f32 1.0, %v1115_v8  ;;  %v547_v31 = vmul.f32 %v515_v43, %v1760_v54  ;;  %v641_v13 = vmul.f32 0.7978846, %v609_v21 }
 0x215   :  { %v1117_v22 = vpop.eup %1116  ;;  %v518_v11 = vmul.f32 0.044715, %v1780_v19  ;;  %862 = vmatprep.mubr.f32.mxu1 %v728_v20  ;;  %v1789_v40 = vadd.f32 %v424_v50, %v1677_v41  ;;  %v477_v28 = vmul.f32 0.5, %v1716_v61  ;;  %v580_v15 = vmul.f32 %v548_v17, %v1765_v38 }
 0x216   :  { %v426_v33 = vpop.f32.mrf.mxu0  ;;  %863 = vmatmul.mubr.f32.vlgmr.msra.gmra.mxu1 %v727_v10  ;;  %v698_v12 = vadd.f32 1.0, %v1117_v22  ;;  %v642_v52 = vmul.f32 0.7978846, %v610_v47  ;;  %v517_v56 = vmul.f32 0.044715, %v1777_v18  ;;  %v729_v53 = vmul.f32 %v697_v24, %v473_v4 }
 0x217   :  { %v1119_v37 = vpop.eup %1118  ;;  %v1796_v46 = vadd.f32 %v426_v33, %v1679_v62  ;;  %v550_v49 = vmul.f32 %v518_v11, %v1780_v19  ;;  %v479_v61 = vmul.f32 0.5, %v1730_v44  ;;  %v612_v29 = vadd.f32 %v580_v15, %v1765_v38 }
 0x218   :  { %v1121_v60 = vpop.eup %1120  ;;  %v430_v48 = vpop.f32.mrf.mxu0  ;;  %v730_v9 = vmul.f32 %v698_v12, %v474_v3  ;;  %1130 = vtanh.f32 %v642_v52  ;;  %v699_v16 = vadd.f32 1.0, %v1119_v37  ;;  %v579_v25 = vmul.f32 %v547_v31, %v1760_v54 }
 0x219   :  { %v700_v35 = vadd.f32 1.0, %v1121_v60  ;;  %1132 = vtanh.f32 %v641_v13  ;;  %v519_v58 = vmul.f32 0.044715, %v1789_v40  ;;  %v480_v26 = vmul.f32 0.5, %v1737_v51 }
 0x21a   :  { %867 = vmatprep.mubr.f32.mxu1 %v730_v9  ;;  %v432_v5 = vpop.f32.mrf.mxu0  ;;  %v1805_v36 = vmul.f32 0.5, %v1744_v34  ;;  %v520_v14 = vmul.f32 0.044715, %v1796_v46  ;;  %v1809_v39 = vadd.f32 %v430_v48, %v1677_v41  ;;  %v644_v23 = vmul.f32 0.7978846, %v612_v29 }
 0x21b   :  { %v1123_v57 = vpop.eup %1122  ;;  %868 = vmatmul.mubr.f32.gmra.mxu1 %v729_v53  ;;  %v732_v59 = vmul.f32 %v700_v35, %v476_v27  ;;  %v611_v55 = vadd.f32 %v579_v25, %v1760_v54  ;;  %v549_v0 = vmul.f32 %v517_v56, %v1777_v18  ;;  %v731_v1 = vmul.f32 %v699_v16, %v475_v30 }
 0x21c   :  { %v436_v44 = vpop.f32.mrf.mxu0  ;;  %v701_v2 = vadd.f32 1.0, %v1123_v57  ;;  %v582_v51 = vmul.f32 %v550_v49, %v1780_v19  ;;  %v1815_v34 = vadd.f32 %v432_v5, %v1679_v62  ;;  %1134 = vtanh.f32 %v644_v23 }
 0x21d   :  { %v1125_v32 = vpop.eup %1124  ;;  %872 = vmatprep.mubr.f32.mxu1 %v732_v59  ;;  %v643_v43 = vmul.f32 0.7978846, %v611_v55  ;;  %v551_v63 = vmul.f32 %v519_v58, %v1789_v40  ;;  %v1819_v7 = vadd.f32 %v436_v44, %v1677_v41  ;;  %v482_v8 = vmul.f32 0.5, %v1751_v45 }
 0x21e   :  { %v438_v3 = vpop.f32.mrf.mxu0  ;;  %v702_v4 = vadd.f32 1.0, %v1125_v32  ;;  %v614_v17 = vadd.f32 %v582_v51, %v1780_v19  ;;  %v552_v20 = vmul.f32 %v520_v14, %v1796_v46  ;;  %v521_v50 = vmul.f32 0.044715, %v1809_v39 }
 0x21f   :  { %v1127_v6 = vpop.eup %1126  ;;  %873 = vmatmul.mubr.f32.gmra.mxu1 %v731_v1  ;;  %1136 = vtanh.f32 %v643_v43  ;;  %v1826_v22 = vadd.f32 %v438_v3, %v1679_v62  ;;  %v733_v11 = vmul.f32 %v701_v2, %v477_v28  ;;  %v522_v30 = vmul.f32 0.044715, %v1815_v34 }
 0x220   :  { %v442_v10 = vpop.f32.mrf.mxu0  ;;  %v734_v47 = vmul.f32 %v702_v4, %v478_v42  ;;  %v1129_v21 = vpop.eup %1128  ;;  %v703_v24 = vadd.f32 1.0, %v1127_v6  ;;  %v646_v27 = vmul.f32 0.7978846, %v614_v17  ;;  %v484_v33 = vmul.f32 0.5, %v1765_v38 }
 0x221   :  { %v704_v31 = vadd.f32 1.0, %v1129_v21  ;;  %v581_v12 = vmul.f32 %v549_v0, %v1777_v18  ;;  %v523_v52 = vmul.f32 0.044715, %v1819_v7  ;;  %v1833_v13 = vmul.f32 0.5, %v1760_v54 }
 0x222   :  { %877 = vmatprep.mubr.f32.mxu1 %v734_v47  ;;  %v444_v45 = vpop.f32.mrf.mxu0  ;;  %v1836_v37 = vmul.f32 0.5, %v1780_v19  ;;  %1138 = vtanh.f32 %v646_v27  ;;  %v553_v42 = vmul.f32 %v521_v50, %v1809_v39  ;;  %v584_v38 = vmul.f32 %v552_v20, %v1796_v46 }
 0x223   :  { %878 = vmatmul.mubr.f32.gmra.mxu1 %v733_v11  ;;  %v736_v15 = vmul.f32 %v704_v31, %v480_v26  ;;  %v613_v60 = vadd.f32 %v581_v12, %v1777_v18  ;;  %v524_v48 = vmul.f32 0.044715, %v1826_v22  ;;  %v1843_v9 = vadd.f32 %v444_v45, %v1679_v62 }
 0x224   :  { %v448_v28 = vpop.f32.mrf.mxu0  ;;  %v735_v54 = vmul.f32 %v703_v24, %v479_v61  ;;  %v583_v49 = vmul.f32 %v551_v63, %v1789_v40  ;;  %v554_v19 = vmul.f32 %v522_v30, %v1815_v34  ;;  %v616_v5 = vadd.f32 %v584_v38, %v1796_v46 }
 0x225   :  { %v1131_v56 = vpop.eup %1130  ;;  %882 = vmatprep.mubr.f32.mxu1 %v736_v15  ;;  %v645_v16 = vmul.f32 0.7978846, %v613_v60  ;;  %v555_v25 = vmul.f32 %v523_v52, %v1819_v7  ;;  %v1850_v57 = vadd.f32 %v442_v10, %v1677_v41  ;;  %v1853_v58 = vmul.f32 0.5, %v1777_v18 }
 0x226   :  { %v450_v53 = vpop.f32.mrf.mxu0  ;;  %v706_v35 = vadd.f32 1.0, %v1131_v56  ;;  %v1133_v29 = vpop.eup %1132  ;;  %v615_v61 = vadd.f32 %v583_v49, %v1789_v40  ;;  %v648_v44 = vmul.f32 0.7978846, %v616_v5  ;;  %v556_v23 = vmul.f32 %v524_v48, %v1826_v22 }
 0x227   :  { %883 = vmatmul.mubr.f32.gmra.mxu1 %v735_v54  ;;  %v705_v14 = vadd.f32 1.0, %v1133_v29  ;;  %1140 = vtanh.f32 %v645_v16  ;;  %v526_v55 = vmul.f32 0.044715, %v1843_v9  ;;  %v1859_v32 = vadd.f32 %v450_v53, %v1679_v62 }
 0x228   :  { %v454_v59 = vpop.f32.mrf.mxu0  ;;  %v738_v26 = vmul.f32 %v706_v35, %v482_v8  ;;  %v647_v0 = vmul.f32 0.7978846, %v615_v61  ;;  %v1863_v2 = vmul.f32 0.5, %v1796_v46  ;;  %1142 = vtanh.f32 %v648_v44 }
 0x229   :  { %v737_v18 = vmul.f32 %v705_v14, %v1805_v36  ;;  %v586_v51 = vmul.f32 %v554_v19, %v1815_v34  ;;  %v1135_v3 = vpop.eup %1134  ;;  %v525_v4 = vmul.f32 0.044715, %v1850_v57  ;;  %v1868_v43 = vadd.f32 %v448_v28, %v1677_v41 }
 0x22a   :  { %887 = vmatprep.mubr.f32.mxu1 %v738_v26  ;;  %v456_v1 = vpop.f32.mrf.mxu0  ;;  %v1871_v6 = vadd.f32 %v454_v59, %v1677_v41  ;;  %1144 = vtanh.f32 %v647_v0  ;;  %v708_v46 = vadd.f32 1.0, %v1135_v3  ;;  %v585_v17 = vmul.f32 %v553_v42, %v1809_v39 }
 0x22b   :  { %v1874_v63 = vadd.f32 %v456_v1, %v1679_v62  ;;  %888 = vmatmul.mubr.f32.gmra.mxu1 %v737_v18  ;;  %v618_v8 = vadd.f32 %v586_v51, %v1815_v34  ;;  %v558_v50 = vmul.f32 %v526_v55, %v1843_v9  ;;  %v528_v10 = vmul.f32 0.044715, %v1859_v32 }
 0x22c   :  { %v460_v36 = vpop.f32.mrf.mxu0  ;;  %v1137_v20 = vpop.eup %1136  ;;  %v588_v21 = vmul.f32 %v556_v23, %v1826_v22  ;;  %v740_v11 = vmul.f32 %v708_v46, %v484_v33  ;;  %v617_v45 = vadd.f32 %v585_v17, %v1809_v39  ;;  %v527_v31 = vmul.f32 0.044715, %v1868_v43 }
 0x22d   :  { %v1881_v47 = vadd.f32 %v460_v36, %v1677_v41  ;;  %v707_v27 = vadd.f32 1.0, %v1137_v20  ;;  %v650_v30 = vmul.f32 0.7978846, %v618_v8  ;;  %v529_v12 = vmul.f32 0.044715, %v1871_v6 }
 0x22e   :  { %v462_v24 = vpop.f32.mrf.mxu0  ;;  %v620_v42 = vadd.f32 %v588_v21, %v1826_v22  ;;  %v530_v15 = vmul.f32 0.044715, %v1874_v63  ;;  %892 = vmatprep.mubr.f32.mxu1 %v740_v11  ;;  %v649_v38 = vmul.f32 0.7978846, %v617_v45  ;;  %v557_v56 = vmul.f32 %v525_v4, %v1850_v57 }
 0x22f   :  { %v1888_v52 = vadd.f32 %v462_v24, %v1679_v62  ;;  %v1139_v28 = vpop.eup %1138  ;;  %v739_v33 = vmul.f32 %v707_v27, %v1833_v13  ;;  %1146 = vtanh.f32 %v650_v30  ;;  %v531_v48 = vmul.f32 0.044715, %v1881_v47 }
 0x230   :  { %v466_v60 = vpop.f32.mrf.mxu0  ;;  %v710_v49 = vadd.f32 1.0, %v1139_v28  ;;  %v560_v19 = vmul.f32 %v528_v10, %v1859_v32  ;;  %1148 = vtanh.f32 %v649_v38  ;;  %v652_v35 = vmul.f32 0.7978846, %v620_v42 }
 0x231   :  { %v532_v54 = vmul.f32 0.044715, %v1888_v52  ;;  %893 = vmatmul.mubr.f32.gmra.mxu1 %v739_v33  ;;  %v587_v16 = vmul.f32 %v555_v25, %v1819_v7  ;;  %v559_v13 = vmul.f32 %v527_v31, %v1868_v43  ;;  %v1900_v5 = vadd.f32 %v466_v60, %v1677_v41 }
 0x232   :  { %v468_v53 = vpop.f32.mrf.mxu0  ;;  %v742_v29 = vmul.f32 %v710_v49, %v1836_v37  ;;  %v561_v59 = vmul.f32 %v529_v12, %v1871_v6  ;;  %1150 = vtanh.f32 %v652_v35  ;;  %v590_v14 = vmul.f32 %v558_v50, %v1843_v9 }
 0x233   :  { %v1904_v61 = vadd.f32 %v468_v53, %v1679_v62  ;;  %v619_v26 = vadd.f32 %v587_v16, %v1819_v7  ;;  %v562_v25 = vmul.f32 %v530_v15, %v1874_v63  ;;  %v563_v23 = vmul.f32 %v531_v48, %v1881_v47 }
 0x234   :  { %v1141_v44 = vpop.eup %1140  ;;  %v564_v41 = vmul.f32 %v532_v54, %v1888_v52  ;;  %897 = vmatprep.mubr.f32.mxu1 %v742_v29  ;;  %v589_v37 = vmul.f32 %v557_v56, %v1850_v57  ;;  %v622_v0 = vadd.f32 %v590_v14, %v1843_v9  ;;  %v592_v1 = vmul.f32 %v560_v19, %v1859_v32 }
 0x235   :  { %v709_v55 = vadd.f32 1.0, %v1141_v44  ;;  %v651_v62 = vmul.f32 0.7978846, %v619_v26  ;;  %v1143_v18 = vpop.eup %1142  ;;  %v533_v51 = vmul.f32 0.044715, %v1900_v5  ;;  %v591_v36 = vmul.f32 %v559_v13, %v1868_v43 }
 0x236   :  { %v534_v3 = vmul.f32 0.044715, %v1904_v61  ;;  %v621_v4 = vadd.f32 %v589_v37, %v1850_v57  ;;  %v712_v17 = vadd.f32 1.0, %v1143_v18  ;;  %v654_v20 = vmul.f32 0.7978846, %v622_v0 }
 0x237   :  { %v1145_v46 = vpop.eup %1144  ;;  %v741_v8 = vmul.f32 %v709_v55, %v1853_v58  ;;  %1152 = vtanh.f32 %v651_v62  ;;  %v624_v21 = vadd.f32 %v592_v1, %v1859_v32  ;;  %v623_v11 = vadd.f32 %v591_v36, %v1868_v43 }
 0x238   :  { %v711_v50 = vadd.f32 1.0, %v1145_v46  ;;  %v653_v10 = vmul.f32 0.7978846, %v621_v4  ;;  %v744_v24 = vmul.f32 %v712_v17, %v1863_v2  ;;  %v487_v27 = vmul.f32 0.5, %v1789_v40 }
 0x239   :  { %898 = vmatmul.mubr.f32.gmra.mxu1 %v741_v8  ;;  %1154 = vtanh.f32 %v654_v20  ;;  %v594_v30 = vmul.f32 %v562_v25, %v1874_v63  ;;  %v566_v45 = vmul.f32 %v534_v3, %v1904_v61  ;;  %v656_v58 = vmul.f32 0.7978846, %v624_v21 }
 0x23a   :  { %1156 = vtanh.f32 %v653_v10  ;;  %v655_v31 = vmul.f32 0.7978846, %v623_v11  ;;  %902 = vmatprep.mubr.f32.mxu1 %v744_v24  ;;  %v743_v12 = vmul.f32 %v711_v50, %v487_v27  ;;  %v490_v42 = vmul.f32 0.5, %v1815_v34 }
 0x23b   :  { %v626_v28 = vadd.f32 %v594_v30, %v1874_v63  ;;  %v593_v15 = vmul.f32 %v561_v59, %v1871_v6  ;;  %v565_v2 = vmul.f32 %v533_v51, %v1900_v5  ;;  %1158 = vtanh.f32 %v656_v58 }
 0x23c   :  { %v1147_v33 = vpop.eup %1146  ;;  %v596_v40 = vmul.f32 %v564_v41, %v1888_v52  ;;  %v595_v60 = vmul.f32 %v563_v23, %v1881_v47  ;;  %1160 = vtanh.f32 %v655_v31  ;;  %v489_v34 = vmul.f32 0.5, %v1809_v39 }
 0x23d   :  { %903 = vmatmul.mubr.f32.gmra.mxu1 %v743_v12  ;;  %v714_v38 = vadd.f32 1.0, %v1147_v33  ;;  %v658_v56 = vmul.f32 0.7978846, %v626_v28  ;;  %v625_v48 = vadd.f32 %v593_v15, %v1871_v6  ;;  %v1149_v54 = vpop.eup %1148  ;;  %v598_v53 = vmul.f32 %v566_v45, %v1904_v61 }
 0x23e   :  { %v628_v49 = vadd.f32 %v596_v40, %v1888_v52  ;;  %v627_v19 = vadd.f32 %v595_v60, %v1881_v47  ;;  %v713_v16 = vadd.f32 1.0, %v1149_v54  ;;  %v492_v59 = vmul.f32 0.5, %v1826_v22 }
 0x23f   :  { %v746_v35 = vmul.f32 %v714_v38, %v490_v42  ;;  %1162 = vtanh.f32 %v658_v56  ;;  %v657_v13 = vmul.f32 0.7978846, %v625_v48  ;;  %v1151_v29 = vpop.eup %1150  ;;  %v630_v44 = vadd.f32 %v598_v53, %v1904_v61  ;;  %v1955_v53 = vld [vmem:[%s2030_s6] ss:$0 sm:$0xff] }
 0x240   :  { %v660_v26 = vmul.f32 0.7978846, %v628_v49  ;;  %v659_v14 = vmul.f32 0.7978846, %v627_v19  ;;  %v745_v25 = vmul.f32 %v713_v16, %v489_v34  ;;  %v716_v39 = vadd.f32 1.0, %v1151_v29 }
 0x241   :  { %907 = vmatprep.mubr.f32.mxu1 %v746_v35  ;;  %1164 = vtanh.f32 %v657_v13  ;;  %v597_v23 = vmul.f32 %v565_v2, %v1900_v5  ;;  %v662_v41 = vmul.f32 0.7978846, %v630_v44  ;;  %v491_v22 = vmul.f32 0.5, %v1819_v7  ;;  %v1174_v13 = vld [vmem:[%s2024_s0] sm:$0xff] }
 0x242   :  { %1166 = vtanh.f32 %v660_v26  ;;  %908 = vmatmul.mubr.f32.gmra.mxu1 %v745_v25  ;;  %v748_v37 = vmul.f32 %v716_v39, %v492_v59  ;;  %v494_v4 = vmul.f32 0.5, %v1843_v9  ;;  %v493_v20 = vmul.f32 0.5, %v1850_v57  ;;  %v1175_v25 = vld [vmem:[%s2024_s0 + $0x8] sm:$0xff] }
 0x243   :  { %1168 = vtanh.f32 %v659_v14  ;;  %v629_v55 = vadd.f32 %v597_v23, %v1900_v5  ;;  %v496_v10 = vmul.f32 0.5, %v1859_v32  ;;  %v495_v9 = vmul.f32 0.5, %v1868_v43 }
 0x244   :  { %v1153_v62 = vpop.eup %1152  ;;  %1170 = vtanh.f32 %v662_v41  ;;  %912 = vmatprep.mubr.f32.mxu1 %v748_v37  ;;  %v498_v30 = vmul.f32 0.5, %v1874_v63  ;;  %v500_v32 = vmul.f32 0.5, %v1888_v52  ;;  %v497_v2 = vmul.f32 0.5, %v1871_v6 }
 0x245   :  { %v715_v0 = vadd.f32 1.0, %v1153_v62  ;;  %v661_v1 = vmul.f32 0.7978846, %v629_v55  ;;  %v502_v56 = vmul.f32 0.5, %v1904_v61  ;;  %v499_v48 = vmul.f32 0.5, %v1881_v47  ;;  %v1176_v62 = vld [vmem:[%s2024_s0 + $0x10] sm:$0xff] }
 0x246   :  { %v1155_v18 = vpop.eup %1154  ;;  %v501_v49 = vmul.f32 0.5, %v1900_v5 }
 0x247   :  { %v1157_v51 = vpop.eup %1156  ;;  %v747_v3 = vmul.f32 %v715_v0, %v491_v22  ;;  %v718_v36 = vadd.f32 1.0, %v1155_v18  ;;  %1172 = vtanh.f32 %v661_v1 }
 0x248   :  { %v717_v46 = vadd.f32 1.0, %v1157_v51  ;;  %v1159_v8 = vpop.eup %1158 }
 0x249   :  { %913 = vmatmul.mubr.f32.gmra.mxu1 %v747_v3  ;;  %v750_v17 = vmul.f32 %v718_v36, %v494_v4  ;;  %v1161_v50 = vpop.eup %1160  ;;  %v720_v21 = vadd.f32 1.0, %v1159_v8  ;;  %v1177_v3 = vld [vmem:[%s2024_s0 + $0x18] sm:$0xff] }
 0x24a   :  { %v749_v7 = vmul.f32 %v717_v46, %v493_v20  ;;  %v719_v11 = vadd.f32 1.0, %v1161_v50 }
 0x24b   :  { %917 = vmatprep.mubr.f32.mxu1 %v750_v17  ;;  %v752_v27 = vmul.f32 %v720_v21, %v496_v10  ;;  %v1178_v17 = vld [vmem:[%s2024_s0 + $0x20] sm:$0xff] }
 0x24c   :  { %v1163_v24 = vpop.eup %1162  ;;  %v751_v12 = vmul.f32 %v719_v11, %v495_v9  ;;  %v1179_v11 = vld [vmem:[%s2024_s0 + $0x28] sm:$0xff] }
 0x24d   :  { %918 = vmatmul.mubr.f32.gmra.mxu1 %v749_v7  ;;  %v722_v45 = vadd.f32 1.0, %v1163_v24 }
 0x24e   :  { %v1165_v58 = vpop.eup %1164  ;;  %922 = vmatprep.mubr.f32.mxu1 %v752_v27 }
 0x24f   :  { %v1167_v31 = vpop.eup %1166  ;;  %v754_v57 = vmul.f32 %v722_v45, %v498_v30  ;;  %v721_v42 = vadd.f32 1.0, %v1165_v58  ;;  %v1180_v45 = vld [vmem:[%s2024_s0 + $0x30] sm:$0xff] }
 0x250   :  { %v1169_v28 = vpop.eup %1168  ;;  %v724_v15 = vadd.f32 1.0, %v1167_v31 }
 0x251   :  { %v1171_v33 = vpop.eup %1170  ;;  %923 = vmatmul.mubr.f32.gmra.mxu1 %v751_v12  ;;  %v753_v60 = vmul.f32 %v721_v42, %v497_v2  ;;  %v723_v63 = vadd.f32 1.0, %v1169_v28 }
 0x252   :  { %927 = vmatprep.mubr.f32.mxu1 %v754_v57  ;;  %v756_v40 = vmul.f32 %v724_v15, %v500_v32  ;;  %v726_v43 = vadd.f32 1.0, %v1171_v33  ;;  %v1181_v15 = vld [vmem:[%s2024_s0 + $0x38] sm:$0xff] }
 0x253   :  { %v755_v34 = vmul.f32 %v723_v63, %v499_v48 }
 0x254   :  { %v1173_v38 = vpop.eup %1172  ;;  %v758_v54 = vmul.f32 %v726_v43, %v502_v56 }
 0x255   :  { %928 = vmatmul.mubr.f32.gmra.mxu1 %v753_v60  ;;  %v725_v52 = vadd.f32 1.0, %v1173_v38  ;;  %v1182_v60 = vld [vmem:[%s2024_s0 + $0x40] sm:$0xff] }
 0x256   :  { %932 = vmatprep.mubr.f32.mxu1 %v756_v40 }
 0x257   :  { %v757_v6 = vmul.f32 %v725_v52, %v501_v49 }
 0x259   :  { %933 = vmatmul.mubr.f32.gmra.mxu1 %v755_v34  ;;  %v1183_v34 = vld [vmem:[%s2024_s0 + $0x48] sm:$0xff] }
 0x25a   :  { %937 = vmatprep.mubr.f32.mxu1 %v758_v54 }
 0x25d   :  { %938 = vmatmul.mubr.f32.gmra.mxu1 %v757_v6 }
 0x2d6   :  { %v1026_v19 = vpop.f32.mrf.mxu1 }
 0x2d8   :  { %v1027_v61 = vpop.f32.mrf.mxu1 }
 0x2d9   :  { %v1028_v35 = vadd.f32 %v1027_v61, %v1026_v19 }
 0x2db   :  { %v865_v47 = vadd.f32 %v1028_v35, %v1955_v53  ;;  %v1029_v16 = vpop.f32.mrf.mxu1 }
 0x2dd   :  { %v943_v29 = vadd.f32 %v1174_v13, %v865_v47  ;;  %v1030_v5 = vpop.f32.mrf.mxu1  ;;  %v1184_v47 = vld [vmem:[%s2024_s0 + $0x50] sm:$0xff] }
 0x2de   :  { %v1031_v59 = vadd.f32 %v1030_v5, %v1029_v16 }
 0x2df   :  { %959 = vst [vmem:[#allocation2] sm:$0xff] %v943_v29  ;;  %v1032_v26 = vpop.f32.mrf.mxu1 }
 0x2e0   :  { %v870_v14 = vadd.f32 %v1031_v59, %v1955_v53 }
 0x2e1   :  { %v1033_v44 = vpop.f32.mrf.mxu1 }
 0x2e2   :  { %v944_v39 = vadd.f32 %v1175_v25, %v870_v14  ;;  %v1034_v23 = vadd.f32 %v1033_v44, %v1032_v26  ;;  %v1185_v26 = vld [vmem:[%s2024_s0 + $0x58] sm:$0xff] }
 0x2e3   :  { %v1035_v41 = vpop.f32.mrf.mxu1 }
 0x2e4   :  { %960 = vst [vmem:[#allocation2 + $0x8] sm:$0xff] %v944_v39  ;;  %v875_v37 = vadd.f32 %v1034_v23, %v1955_v53 }
 0x2e5   :  { %v1036_v55 = vpop.f32.mrf.mxu1 }
 0x2e6   :  { %v945_v22 = vadd.f32 %v1176_v62, %v875_v37  ;;  %v1037_v0 = vadd.f32 %v1036_v55, %v1035_v41  ;;  %v1186_v41 = vld [vmem:[%s2024_s0 + $0x60] sm:$0xff] }
 0x2e7   :  { %v1038_v1 = vpop.f32.mrf.mxu1 }
 0x2e8   :  { %961 = vst [vmem:[#allocation2 + $0x10] sm:$0xff] %v945_v22  ;;  %v880_v18 = vadd.f32 %v1037_v0, %v1955_v53 }
 0x2e9   :  { %v1039_v51 = vpop.f32.mrf.mxu1 }
 0x2ea   :  { %v946_v4 = vadd.f32 %v1177_v3, %v880_v18  ;;  %v1040_v36 = vadd.f32 %v1039_v51, %v1038_v1  ;;  %v1187_v1 = vld [vmem:[%s2024_s0 + $0x68] sm:$0xff] }
 0x2eb   :  { %v1041_v8 = vpop.f32.mrf.mxu1 }
 0x2ec   :  { %962 = vst [vmem:[#allocation2 + $0x18] sm:$0xff] %v946_v4  ;;  %v885_v46 = vadd.f32 %v1040_v36, %v1955_v53 }
 0x2ed   :  { %v1042_v50 = vpop.f32.mrf.mxu1 }
 0x2ee   :  { %v947_v20 = vadd.f32 %v1178_v17, %v885_v46  ;;  %v1043_v10 = vadd.f32 %v1042_v50, %v1041_v8  ;;  %v1188_v46 = vld [vmem:[%s2024_s0 + $0x70] sm:$0xff]  ;;  %v1189_v50 = vld [vmem:[%s2024_s0 + $0x78] sm:$0xff] }
 0x2f0   :  { %963 = vst [vmem:[#allocation2 + $0x20] sm:$0xff] %v947_v20  ;;  %v890_v21 = vadd.f32 %v1043_v10, %v1955_v53 }
 0x2f1   :  { %v1044_v7 = vpop.f32.mrf.mxu1 }
 0x2f2   :  { %v948_v24 = vadd.f32 %v1179_v11, %v890_v21 }
 0x2f3   :  { %v1045_v27 = vpop.f32.mrf.mxu1 }
 0x2f4   :  { %964 = vst [vmem:[#allocation2 + $0x28] sm:$0xff] %v948_v24  ;;  %v1046_v9 = vadd.f32 %v1045_v27, %v1044_v7 }
 0x2f6   :  { %v895_v30 = vadd.f32 %v1046_v9, %v1955_v53 }
 0x2f8   :  { %v949_v58 = vadd.f32 %v1180_v45, %v895_v30 }
 0x2f9   :  { %v1047_v31 = vpop.f32.mrf.mxu1 }
 0x2fa   :  { %965 = vst [vmem:[#allocation2 + $0x30] sm:$0xff] %v949_v58 }
 0x2fb   :  { %v1048_v12 = vpop.f32.mrf.mxu1 }
 0x2fc   :  { %v1049_v57 = vadd.f32 %v1048_v12, %v1047_v31 }
 0x2fd   :  { %v1050_v42 = vpop.f32.mrf.mxu1 }
 0x2fe   :  { %v900_v28 = vadd.f32 %v1049_v57, %v1955_v53 }
 0x2ff   :  { %v1051_v32 = vpop.f32.mrf.mxu1 }
 0x300   :  { %v950_v33 = vadd.f32 %v1181_v15, %v900_v28  ;;  %v1052_v2 = vadd.f32 %v1051_v32, %v1050_v42 }
 0x302   :  { %966 = vst [vmem:[#allocation2 + $0x38] sm:$0xff] %v950_v33  ;;  %v905_v40 = vadd.f32 %v1052_v2, %v1955_v53  ;;  %v1053_v43 = vpop.f32.mrf.mxu1 }
 0x304   :  { %v951_v63 = vadd.f32 %v1182_v60, %v905_v40  ;;  %v1054_v38 = vpop.f32.mrf.mxu1 }
 0x305   :  { %v1055_v56 = vadd.f32 %v1054_v38, %v1053_v43 }
 0x306   :  { %967 = vst [vmem:[#allocation2 + $0x40] sm:$0xff] %v951_v63 }
 0x307   :  { %v910_v48 = vadd.f32 %v1055_v56, %v1955_v53 }
 0x309   :  { %v1056_v54 = vpop.f32.mrf.mxu1  ;;  %v952_v52 = vadd.f32 %v1183_v34, %v910_v48 }
 0x30b   :  { %v1057_v49 = vpop.f32.mrf.mxu1  ;;  %968 = vst [vmem:[#allocation2 + $0x48] sm:$0xff] %v952_v52 }
 0x30c   :  { %v1058_v6 = vadd.f32 %v1057_v49, %v1056_v54 }
 0x30d   :  { %v1059_v19 = vpop.f32.mrf.mxu1 }
 0x30e   :  { %v915_v61 = vadd.f32 %v1058_v6, %v1955_v53 }
 0x30f   :  { %v1060_v35 = vpop.f32.mrf.mxu1 }
 0x310   :  { %v953_v16 = vadd.f32 %v1184_v47, %v915_v61  ;;  %v1061_v13 = vadd.f32 %v1060_v35, %v1059_v19 }
 0x311   :  { %v1062_v29 = vpop.f32.mrf.mxu1 }
 0x312   :  { %969 = vst [vmem:[#allocation2 + $0x50] sm:$0xff] %v953_v16  ;;  %v920_v5 = vadd.f32 %v1061_v13, %v1955_v53 }
 0x313   :  { %v1063_v59 = vpop.f32.mrf.mxu1 }
 0x314   :  { %v954_v14 = vadd.f32 %v1185_v26, %v920_v5  ;;  %v1064_v44 = vadd.f32 %v1063_v59, %v1062_v29 }
 0x315   :  { %v1065_v25 = vpop.f32.mrf.mxu1 }
 0x316   :  { %970 = vst [vmem:[#allocation2 + $0x58] sm:$0xff] %v954_v14  ;;  %v925_v39 = vadd.f32 %v1064_v44, %v1955_v53 }
 0x317   :  { %v1066_v23 = vpop.f32.mrf.mxu1 }
 0x318   :  { %v955_v37 = vadd.f32 %v1186_v41, %v925_v39  ;;  %v1067_v55 = vadd.f32 %v1066_v23, %v1065_v25 }
 0x319   :  { %v1068_v62 = vpop.f32.mrf.mxu1 }
 0x31a   :  { %971 = vst [vmem:[#allocation2 + $0x60] sm:$0xff] %v955_v37  ;;  %v930_v22 = vadd.f32 %v1067_v55, %v1955_v53 }
 0x31b   :  { %v1069_v0 = vpop.f32.mrf.mxu1 }
 0x31c   :  { %v956_v18 = vadd.f32 %v1187_v1, %v930_v22  ;;  %v1070_v51 = vadd.f32 %v1069_v0, %v1068_v62 }
 0x31d   :  { %v1071_v3 = vpop.f32.mrf.mxu1 }
 0x31e   :  { %972 = vst [vmem:[#allocation2 + $0x68] sm:$0xff] %v956_v18  ;;  %v935_v4 = vadd.f32 %v1070_v51, %v1955_v53 }
 0x31f   :  { %v1072_v36 = vpop.f32.mrf.mxu1 }
 0x320   :  { %v957_v8 = vadd.f32 %v1188_v46, %v935_v4  ;;  %v1073_v17 = vadd.f32 %v1072_v36, %v1071_v3 }
 0x322   :  { %973 = vst [vmem:[#allocation2 + $0x70] sm:$0xff] %v957_v8  ;;  %v940_v20 = vadd.f32 %v1073_v17, %v1955_v53 }
 0x324   :  { %v958_v10 = vadd.f32 %v1189_v50, %v940_v20 }
 0x326   :  { %974 = vst [vmem:[#allocation2 + $0x78] sm:$0xff] %v958_v10 }
 0x327   :  { %1201 = shalt.err (!%p1198_p4)
}
 0x328   :  { %s1214_s25 = smov 128   ;;  %s1215_s26 = smov 8  }
 0x329   :  { %986 = dma.vmem_to_hbm [thread:$0]  %s981_s22, 2048, %s2031_s7, [#allocation3], %s1214_s25, %s1214_s25, %s1215_s26  }
 0x32a   :  { %1210 = dma.done.wait [#allocation3], 2048  }
 0x32b   :  { %1211 = vsyncadd [#allocation3], 4294965248 }
 0x32c   :  { %990 = vsyncpa [#allocation3], 1 }

</bundles_post_ra>
